<compile_context>
chip_gen: v6e
topology: v6e:2x2x1
jax: 0.10.0
libtpu: 0.0.40
codegen_flags: <defaults>
</compile_context>

<pallas_src>
import functools
import math

import jax
import jax.numpy as jnp
from jax.experimental import pallas as pl
from jax.experimental.pallas import tpu as pltpu  # noqa: F401  (kept for parity)


# ----------------------------------------------------------------------------
# Fused forward kernel (whole batch, whole network, one invocation)
# ----------------------------------------------------------------------------

def _fused_forward_kernel(
    x_ref,                       # [B, S, D]   f32
    pe_ref,                      # [S, D]      f32 (input-proj bias folded in)
    inp_w_ref,                   # [D, D]      bf16
    qkv_w_ref, qkv_b_ref,        # [L, D, 3D] bf16, [L, 1, 3D] f32
    aout_w_ref, aout_b_ref,      # [L, D, D]  bf16, [L, 1, D]  f32
    ln1_g_ref, ln1_b_ref,        # [L, 1, D]  f32
    ff_w1_ref, ff_b1_ref,        # [L, D, Fd] bf16, [L, 1, Fd] f32
    ff_w2_ref, ff_b2_ref,        # [L, Fd, D] bf16, [L, 1, D]  f32
    ln2_g_ref, ln2_b_ref,        # [L, 1, D]  f32
    hw1_ref, hb1_ref,            # [D, 1024]  bf16, [1, 1024]  f32
    hw2_ref, hb2_ref,            # [1024, OUT] bf16, [1, OUT]  f32
    o_ref,                       # [B, OUT]   f32
    *, num_heads, num_layers, eps, scale):
  f32 = jnp.float32
  bf16 = jnp.bfloat16
  B, S, D = x_ref.shape
  BS = B * S
  Dh = D // num_heads

  def mm(a, w):
    # bf16 x bf16 -> f32 accumulate: guaranteed single-pass MXU.
    return jnp.dot(a.astype(bf16), w, preferred_element_type=f32)

  def layer_norm(x2, g, b):
    mu = jnp.mean(x2, axis=-1, keepdims=True)
    xc = x2 - mu
    var = jnp.mean(xc * xc, axis=-1, keepdims=True)
    return xc * jax.lax.rsqrt(var + eps) * g + b

  # ---- input_projection + positional encoding (dropout == identity) ----
  x = x_ref[...].astype(f32).reshape(BS, D)
  h = mm(x, inp_w_ref[...])                       # bias folded into pe
  h = (h.reshape(B, S, D) + pe_ref[...]).reshape(BS, D)

  # ---- transformer encoder stack (post-norm, ReLU FFN) ----
  for li in range(num_layers):
    # fused QKV projection: one matmul + one bias add per layer
    qkv = mm(h, qkv_w_ref[li]) + qkv_b_ref[li]    # [BS, 3D]
    qkv3 = qkv.reshape(B, S, 3 * D)

    heads = []
    for hh in range(num_heads):
      q = qkv3[:, :, hh * Dh:(hh + 1) * Dh]                  # [B, S, Dh]
      k = qkv3[:, :, D + hh * Dh:D + (hh + 1) * Dh]
      v = qkv3[:, :, 2 * D + hh * Dh:2 * D + (hh + 1) * Dh]
      s = jnp.einsum("bqd,bkd->bqk", q, k,
                     preferred_element_type=f32) * scale
      m = jnp.max(s, axis=-1, keepdims=True)
      p = jnp.exp(s - m)
      p = p * pl.reciprocal(jnp.sum(p, axis=-1, keepdims=True), approx=True)
      heads.append(jnp.einsum("bqk,bkd->bqd", p, v,
                              preferred_element_type=f32))
    # concatenate heads and run ONE (BS,D)@(D,D) out-projection matmul
    o_cat = jnp.concatenate(heads, axis=-1).reshape(BS, D)
    attn = mm(o_cat, aout_w_ref[li]) + aout_b_ref[li]
    h = layer_norm(h + attn, ln1_g_ref[li], ln1_b_ref[li])

    # feed-forward (Linear -> ReLU -> Linear) + residual + LN
    f = mm(h, ff_w1_ref[li]) + ff_b1_ref[li]
    f = jnp.maximum(f, 0.0)
    f = mm(f, ff_w2_ref[li]) + ff_b2_ref[li]
    h = layer_norm(h + f, ln2_g_ref[li], ln2_b_ref[li])

  # ---- mean over the sequence axis ----
  pooled = jnp.mean(h.reshape(B, S, D), axis=1)              # [B, D]

  # ---- output head: Linear -> ReLU -> Linear -> Sigmoid ----
  hid = mm(pooled, hw1_ref[...]) + hb1_ref[...]
  hid = jnp.maximum(hid, 0.0)
  y = mm(hid, hw2_ref[...]) + hb2_ref[...]
  # exact numerically-stable sigmoid (runs once; keeps output strictly in [0,1])
  z = jnp.exp(-jnp.abs(y))
  denom = 1.0 + z
  sig = jnp.where(y >= 0.0, 1.0 / denom, z / denom)
  o_ref[...] = sig.astype(o_ref.dtype)


# ----------------------------------------------------------------------------
# Host-side helpers
# ----------------------------------------------------------------------------

def make_pos_encoding(seq_len, d_model):
  # PositionalEncoding1 (sin on even cols, cos on odd cols).
  position = jnp.arange(seq_len, dtype=jnp.float32)[:, None]
  div_term = jnp.exp(
      jnp.arange(0, d_model, 2, dtype=jnp.float32)
      * (-math.log(10000.0) / d_model))
  pe = jnp.zeros((seq_len, d_model), dtype=jnp.float32)
  pe = pe.at[:, 0::2].set(jnp.sin(position * div_term))
  pe = pe.at[:, 1::2].set(jnp.cos(position * div_term))
  return pe


def prep_params(params, cfg):
  """One-time weight rearrangement / bf16 cast for the kernel."""
  D = cfg["samples_per_chirp"] * 2
  L = cfg["num_encoder_layers"]
  Fd = cfg["dim_feedforward"]
  bf16 = jnp.bfloat16

  def stack(name):
    return jnp.stack([lp[name] for lp in params["layers"]])

  return dict(
      # fold input-projection bias into the positional encoding table
      pe=(params["pe"] + params["in_proj_b"][None, :]).astype(jnp.float32),
      inp_w=params["in_proj_w"].astype(bf16),
      qkv_w=stack("in_w").astype(bf16),                    # [L, D, 3D]
      qkv_b=stack("in_b").reshape(L, 1, 3 * D),
      attn_out_w=stack("out_w").astype(bf16),              # [L, D, D]
      attn_out_b=stack("out_b").reshape(L, 1, D),
      ln1_g=stack("ln1_g").reshape(L, 1, D),
      ln1_b=stack("ln1_b").reshape(L, 1, D),
      ff_w1=stack("ff_w1").astype(bf16),                   # [L, D, Fd]
      ff_b1=stack("ff_b1").reshape(L, 1, Fd),
      ff_w2=stack("ff_w2").astype(bf16),                   # [L, Fd, D]
      ff_b2=stack("ff_b2").reshape(L, 1, D),
      ln2_g=stack("ln2_g").reshape(L, 1, D),
      ln2_b=stack("ln2_b").reshape(L, 1, D),
      head_w1=params["out_w1"].astype(bf16),               # [D, 1024]
      head_b1=params["out_b1"].reshape(1, -1),
      head_w2=params["out_w2"].astype(bf16),               # [1024, OUT]
      head_b2=params["out_b2"].reshape(1, -1),
  )


_WEIGHT_ORDER = [
    "pe", "inp_w", "qkv_w", "qkv_b", "attn_out_w", "attn_out_b",
    "ln1_g", "ln1_b", "ff_w1", "ff_b1", "ff_w2", "ff_b2",
    "ln2_g", "ln2_b", "head_w1", "head_b1", "head_w2", "head_b2",
]


def radar_transformer_basic_forward(x5, kparams, cfg):
  """x5: [B, num_rx, num_chirps, samples_per_chirp, 2]
     -> [B, out_doppler_bins, out_range_bins, 1]."""
  B = x5.shape[0]
  S = cfg["num_rx"] * cfg["num_chirps"]
  D = cfg["samples_per_chirp"] * 2
  H = cfg["num_heads"]
  L = cfg["num_encoder_layers"]
  OUT = cfg["out_doppler_bins"] * cfg["out_range_bins"]
  Dh = D // H

  x = x5.reshape(B, S, D).astype(jnp.float32)
  weight_args = [kparams[n] for n in _WEIGHT_ORDER]

  kernel = functools.partial(
      _fused_forward_kernel, num_heads=H, num_layers=L,
      eps=1e-5, scale=1.0 / math.sqrt(Dh))

  # Grid-less call: whole batch + all weights resident in VMEM, single block,
  # single lane-dense (B, OUT) store. (At this size one block beats splitting
  # the batch over the grid even on 2-TC chips.)
  out = pl.pallas_call(
      kernel,
      out_shape=jax.ShapeDtypeStruct((B, OUT), jnp.float32),
  )(x, *weight_args)
  return out.reshape(B, cfg["out_doppler_bins"], cfg["out_range_bins"], 1)


# ----------------------------------------------------------------------------
# Parameter init (shapes follow the nn.Module __init__) and pure-JAX reference
# ----------------------------------------------------------------------------

def init_params(key, cfg):
  D = cfg["samples_per_chirp"] * 2
  Fd = cfg["dim_feedforward"]
  S = cfg["num_rx"] * cfg["num_chirps"]
  out_dim = cfg["out_doppler_bins"] * cfg["out_range_bins"]

  def lin(k, fan_in, fan_out):
    scale = 1.0 / math.sqrt(fan_in)
    kw, kb = jax.random.split(k)
    w = jax.random.uniform(kw, (fan_in, fan_out), jnp.float32, -scale, scale)
    b = jax.random.uniform(kb, (fan_out,), jnp.float32, -scale, scale)
    return w, b

  keys = jax.random.split(key, 3 + cfg["num_encoder_layers"])
  params = {}
  params["in_proj_w"], params["in_proj_b"] = lin(keys[0], D, D)
  params["pe"] = make_pos_encoding(S, D)

  layers = []
  for li in range(cfg["num_encoder_layers"]):
    ks = jax.random.split(keys[3 + li], 4)
    in_w, in_b = lin(ks[0], D, 3 * D)      # MHA in_proj (q,k,v concatenated)
    out_w, out_b = lin(ks[1], D, D)        # MHA out_proj
    ff_w1, ff_b1 = lin(ks[2], D, Fd)
    ff_w2, ff_b2 = lin(ks[3], Fd, D)
    layers.append(dict(
        in_w=in_w, in_b=in_b, out_w=out_w, out_b=out_b,
        ln1_g=jnp.ones((D,), jnp.float32), ln1_b=jnp.zeros((D,), jnp.float32),
        ln2_g=jnp.ones((D,), jnp.float32), ln2_b=jnp.zeros((D,), jnp.float32),
        ff_w1=ff_w1, ff_b1=ff_b1, ff_w2=ff_w2, ff_b2=ff_b2))
  params["layers"] = layers

  params["out_w1"], params["out_b1"] = lin(keys[1], D, 1024)  # hardcoded 1024
  params["out_w2"], params["out_b2"] = lin(keys[2], 1024, out_dim)
  return params


def _ln_ref(x, g, b, eps=1e-5):
  mu = jnp.mean(x, axis=-1, keepdims=True)
  xc = x - mu
  var = jnp.mean(xc * xc, axis=-1, keepdims=True)
  return xc * jax.lax.rsqrt(var + eps) * g + b


def reference_forward(x5, params, cfg):
  """Pure-JAX reference of the PyTorch forward (eval mode), full f32."""
  B = x5.shape[0]
  S = cfg["num_rx"] * cfg["num_chirps"]
  D = cfg["samples_per_chirp"] * 2
  H = cfg["num_heads"]
  Dh = D // H
  x = x5.reshape(B, S, D).astype(jnp.float32)
  x = x @ params["in_proj_w"] + params["in_proj_b"]
  x = x + params["pe"][:S]
  for lp in params["layers"]:
    qkv = x @ lp["in_w"] + lp["in_b"]
    q, k, v = jnp.split(qkv, 3, axis=-1)
    def split_heads(t):
      return t.reshape(B, S, H, Dh).transpose(0, 2, 1, 3)
    q, k, v = split_heads(q), split_heads(k), split_heads(v)
    s = jnp.einsum("bhqd,bhkd->bhqk", q, k) / math.sqrt(Dh)
    p = jax.nn.softmax(s, axis=-1)
    o = jnp.einsum("bhqk,bhkd->bhqd", p, v)
    o = o.transpose(0, 2, 1, 3).reshape(B, S, D)
    attn = o @ lp["out_w"] + lp["out_b"]
    x = _ln_ref(x + attn, lp["ln1_g"], lp["ln1_b"])
    f = jax.nn.relu(x @ lp["ff_w1"] + lp["ff_b1"]) @ lp["ff_w2"] + lp["ff_b2"]
    x = _ln_ref(x + f, lp["ln2_g"], lp["ln2_b"])
  x = jnp.mean(x, axis=1)
  h = jax.nn.relu(x @ params["out_w1"] + params["out_b1"])
  y = jax.nn.sigmoid(h @ params["out_w2"] + params["out_b2"])
  return y.reshape(B, cfg["out_doppler_bins"], cfg["out_range_bins"], 1)


# ----------------------------------------------------------------------------
if __name__ == "__main__":
  cfg = dict(num_rx=2, num_chirps=4, samples_per_chirp=16,
             out_doppler_bins=8, out_range_bins=16,
             num_heads=4, dim_feedforward=64, num_encoder_layers=2)
  batch = 2

  key = jax.random.PRNGKey(0)
  kx, kp = jax.random.split(key)
  x = jax.random.normal(
      kx, (batch, cfg["num_rx"], cfg["num_chirps"], cfg["samples_per_chirp"], 2),
      jnp.float32)
  params = init_params(kp, cfg)
  kparams = prep_params(params, cfg)   # one-time weight-layout / bf16 prep

  fwd = jax.jit(lambda xx, pp: radar_transformer_basic_forward(xx, pp, cfg))
  out = fwd(x, kparams)
  jax.block_until_ready(out)

  assert out.shape == (batch, cfg["out_doppler_bins"], cfg["out_range_bins"], 1)
  assert bool(jnp.all(jnp.isfinite(out)))
  assert bool(jnp.all((out >= 0.0) & (out <= 1.0)))   # sigmoid output

  ref = reference_forward(x, params, cfg)
  max_err = float(jnp.max(jnp.abs(out - ref)))
  assert max_err < 5e-2, f"max abs error vs reference: {max_err}"
  print("KERNEL_OK")
</pallas_src>

<mosaic_0001>
module attributes {stable_mosaic.version = 11 : i64} {
  func.func @_fused_forward_kernel(%arg0: memref<2x8x32xf32, #tpu.memory_space<vmem>>, %arg1: memref<8x32xf32, #tpu.memory_space<vmem>>, %arg2: memref<32x32xbf16, #tpu.memory_space<vmem>>, %arg3: memref<2x32x96xbf16, #tpu.memory_space<vmem>>, %arg4: memref<2x1x96xf32, #tpu.memory_space<vmem>>, %arg5: memref<2x32x32xbf16, #tpu.memory_space<vmem>>, %arg6: memref<2x1x32xf32, #tpu.memory_space<vmem>>, %arg7: memref<2x1x32xf32, #tpu.memory_space<vmem>>, %arg8: memref<2x1x32xf32, #tpu.memory_space<vmem>>, %arg9: memref<2x32x64xbf16, #tpu.memory_space<vmem>>, %arg10: memref<2x1x64xf32, #tpu.memory_space<vmem>>, %arg11: memref<2x64x32xbf16, #tpu.memory_space<vmem>>, %arg12: memref<2x1x32xf32, #tpu.memory_space<vmem>>, %arg13: memref<2x1x32xf32, #tpu.memory_space<vmem>>, %arg14: memref<2x1x32xf32, #tpu.memory_space<vmem>>, %arg15: memref<32x1024xbf16, #tpu.memory_space<vmem>>, %arg16: memref<1x1024xf32, #tpu.memory_space<vmem>>, %arg17: memref<1024x128xbf16, #tpu.memory_space<vmem>>, %arg18: memref<1x128xf32, #tpu.memory_space<vmem>>, %arg19: memref<2x128xf32, #tpu.memory_space<vmem>>) attributes {dimension_semantics = [], scalar_prefetch = 0 : i64, scratch_operands = 0 : i64, tpu.core_type = #tpu.core_type<tc>} {
    %c0 = arith.constant 0 : index
    %c0_0 = arith.constant 0 : index
    %c0_1 = arith.constant 0 : index
    %0 = vector.load %arg0[%c0, %c0_0, %c0_1] : memref<2x8x32xf32, #tpu.memory_space<vmem>>, vector<2x8x32xf32>
    %1 = vector.shape_cast %0 : vector<2x8x32xf32> to vector<16x32xf32>
    %c0_2 = arith.constant 0 : index
    %c0_3 = arith.constant 0 : index
    %2 = vector.load %arg2[%c0_2, %c0_3] : memref<32x32xbf16, #tpu.memory_space<vmem>>, vector<32x32xbf16>
    %3 = arith.truncf %1 : vector<16x32xf32> to vector<16x32xbf16>
    %cst = arith.constant dense<0.000000e+00> : vector<16x32xf32>
    %4 = tpu.matmul %3, %2, %cst {dimension_numbers = #tpu.dot_dimension_numbers<[1], [0], [0], [1], [0, 0, 1, 1], [], []>} : vector<16x32xbf16>, vector<32x32xbf16>, vector<16x32xf32> -> vector<16x32xf32>
    %5 = vector.shape_cast %4 : vector<16x32xf32> to vector<2x8x32xf32>
    %c0_4 = arith.constant 0 : index
    %c0_5 = arith.constant 0 : index
    %6 = vector.load %arg1[%c0_4, %c0_5] : memref<8x32xf32, #tpu.memory_space<vmem>>, vector<8x32xf32>
    %7 = vector.shape_cast %6 : vector<8x32xf32> to vector<1x8x32xf32>
    %8 = vector.broadcast %7 : vector<1x8x32xf32> to vector<2x8x32xf32>
    %9 = arith.addf %5, %8 : vector<2x8x32xf32>
    %10 = vector.shape_cast %9 : vector<2x8x32xf32> to vector<16x32xf32>
    %c0_6 = arith.constant 0 : index
    %c0_7 = arith.constant 0 : index
    %c0_8 = arith.constant 0 : index
    %11 = vector.load %arg3[%c0_6, %c0_7, %c0_8] : memref<2x32x96xbf16, #tpu.memory_space<vmem>>, vector<1x32x96xbf16>
    %12 = vector.shape_cast %11 : vector<1x32x96xbf16> to vector<32x96xbf16>
    %13 = arith.truncf %10 : vector<16x32xf32> to vector<16x32xbf16>
    %cst_9 = arith.constant dense<0.000000e+00> : vector<16x96xf32>
    %14 = tpu.matmul %13, %12, %cst_9 {dimension_numbers = #tpu.dot_dimension_numbers<[1], [0], [0], [1], [0, 0, 1, 1], [], []>} : vector<16x32xbf16>, vector<32x96xbf16>, vector<16x96xf32> -> vector<16x96xf32>
    %c0_10 = arith.constant 0 : index
    %c0_11 = arith.constant 0 : index
    %c0_12 = arith.constant 0 : index
    %15 = vector.load %arg4[%c0_10, %c0_11, %c0_12] : memref<2x1x96xf32, #tpu.memory_space<vmem>>, vector<1x1x96xf32>
    %16 = vector.shape_cast %15 : vector<1x1x96xf32> to vector<1x96xf32>
    %17 = vector.broadcast %16 : vector<1x96xf32> to vector<16x96xf32>
    %18 = arith.addf %14, %17 : vector<16x96xf32>
    %19 = vector.shape_cast %18 : vector<16x96xf32> to vector<2x8x96xf32>
    %20 = vector.extract_strided_slice %19 {offsets = [0, 0, 0], sizes = [2, 8, 8], strides = [1, 1, 1]} : vector<2x8x96xf32> to vector<2x8x8xf32>
    %21 = vector.extract_strided_slice %19 {offsets = [0, 0, 32], sizes = [2, 8, 8], strides = [1, 1, 1]} : vector<2x8x96xf32> to vector<2x8x8xf32>
    %22 = vector.extract_strided_slice %19 {offsets = [0, 0, 64], sizes = [2, 8, 8], strides = [1, 1, 1]} : vector<2x8x96xf32> to vector<2x8x8xf32>
    "tpu.trace_start"() <{level = 10 : i32, message = "bqd,bkd->bqk"}> : () -> ()
    %cst_13 = arith.constant dense<0.000000e+00> : vector<2x8x8xf32>
    %23 = tpu.matmul %20, %21, %cst_13 {dimension_numbers = #tpu.dot_dimension_numbers<[2], [2], [1], [1], [0, 0, 0, 1, 1, 1], [0], [0]>} : vector<2x8x8xf32>, vector<2x8x8xf32>, vector<2x8x8xf32> -> vector<2x8x8xf32>
    "tpu.trace_stop"() : () -> ()
    %cst_14 = arith.constant 0.353553385 : f32
    %24 = vector.broadcast %cst_14 : f32 to vector<2x8x8xf32>
    %25 = arith.mulf %23, %24 : vector<2x8x8xf32>
    %cst_15 = arith.constant dense<0xFF800000> : vector<2x8xf32>
    %26 = vector.multi_reduction <maximumf>, %25, %cst_15 [2] : vector<2x8x8xf32> to vector<2x8xf32>
    %27 = vector.shape_cast %26 : vector<2x8xf32> to vector<2x8x1xf32>
    %28 = vector.broadcast %27 : vector<2x8x1xf32> to vector<2x8x8xf32>
    %29 = arith.subf %25, %28 : vector<2x8x8xf32>
    %30 = math.exp %29 : vector<2x8x8xf32>
    %cst_16 = arith.constant dense<0.000000e+00> : vector<2x8xf32>
    %31 = vector.multi_reduction <add>, %30, %cst_16 [2] : vector<2x8x8xf32> to vector<2x8xf32>
    %32 = vector.shape_cast %31 : vector<2x8xf32> to vector<2x8x1xf32>
    %33 = tpu.reciprocal %32 {approx = true} : vector<2x8x1xf32> -> vector<2x8x1xf32>
    %34 = vector.broadcast %33 : vector<2x8x1xf32> to vector<2x8x8xf32>
    %35 = arith.mulf %30, %34 : vector<2x8x8xf32>
    "tpu.trace_start"() <{level = 10 : i32, message = "bqk,bkd->bqd"}> : () -> ()
    %cst_17 = arith.constant dense<0.000000e+00> : vector<2x8x8xf32>
    %36 = tpu.matmul %35, %22, %cst_17 {dimension_numbers = #tpu.dot_dimension_numbers<[2], [1], [1], [2], [0, 0, 0, 1, 1, 2], [0], [0]>} : vector<2x8x8xf32>, vector<2x8x8xf32>, vector<2x8x8xf32> -> vector<2x8x8xf32>
    "tpu.trace_stop"() : () -> ()
    %37 = vector.extract_strided_slice %19 {offsets = [0, 0, 8], sizes = [2, 8, 8], strides = [1, 1, 1]} : vector<2x8x96xf32> to vector<2x8x8xf32>
    %38 = vector.extract_strided_slice %19 {offsets = [0, 0, 40], sizes = [2, 8, 8], strides = [1, 1, 1]} : vector<2x8x96xf32> to vector<2x8x8xf32>
    %39 = vector.extract_strided_slice %19 {offsets = [0, 0, 72], sizes = [2, 8, 8], strides = [1, 1, 1]} : vector<2x8x96xf32> to vector<2x8x8xf32>
    "tpu.trace_start"() <{level = 10 : i32, message = "bqd,bkd->bqk"}> : () -> ()
    %cst_18 = arith.constant dense<0.000000e+00> : vector<2x8x8xf32>
    %40 = tpu.matmul %37, %38, %cst_18 {dimension_numbers = #tpu.dot_dimension_numbers<[2], [2], [1], [1], [0, 0, 0, 1, 1, 1], [0], [0]>} : vector<2x8x8xf32>, vector<2x8x8xf32>, vector<2x8x8xf32> -> vector<2x8x8xf32>
    "tpu.trace_stop"() : () -> ()
    %cst_19 = arith.constant 0.353553385 : f32
    %41 = vector.broadcast %cst_19 : f32 to vector<2x8x8xf32>
    %42 = arith.mulf %40, %41 : vector<2x8x8xf32>
    %cst_20 = arith.constant dense<0xFF800000> : vector<2x8xf32>
    %43 = vector.multi_reduction <maximumf>, %42, %cst_20 [2] : vector<2x8x8xf32> to vector<2x8xf32>
    %44 = vector.shape_cast %43 : vector<2x8xf32> to vector<2x8x1xf32>
    %45 = vector.broadcast %44 : vector<2x8x1xf32> to vector<2x8x8xf32>
    %46 = arith.subf %42, %45 : vector<2x8x8xf32>
    %47 = math.exp %46 : vector<2x8x8xf32>
    %cst_21 = arith.constant dense<0.000000e+00> : vector<2x8xf32>
    %48 = vector.multi_reduction <add>, %47, %cst_21 [2] : vector<2x8x8xf32> to vector<2x8xf32>
    %49 = vector.shape_cast %48 : vector<2x8xf32> to vector<2x8x1xf32>
    %50 = tpu.reciprocal %49 {approx = true} : vector<2x8x1xf32> -> vector<2x8x1xf32>
    %51 = vector.broadcast %50 : vector<2x8x1xf32> to vector<2x8x8xf32>
    %52 = arith.mulf %47, %51 : vector<2x8x8xf32>
    "tpu.trace_start"() <{level = 10 : i32, message = "bqk,bkd->bqd"}> : () -> ()
    %cst_22 = arith.constant dense<0.000000e+00> : vector<2x8x8xf32>
    %53 = tpu.matmul %52, %39, %cst_22 {dimension_numbers = #tpu.dot_dimension_numbers<[2], [1], [1], [2], [0, 0, 0, 1, 1, 2], [0], [0]>} : vector<2x8x8xf32>, vector<2x8x8xf32>, vector<2x8x8xf32> -> vector<2x8x8xf32>
    "tpu.trace_stop"() : () -> ()
    %54 = vector.extract_strided_slice %19 {offsets = [0, 0, 16], sizes = [2, 8, 8], strides = [1, 1, 1]} : vector<2x8x96xf32> to vector<2x8x8xf32>
    %55 = vector.extract_strided_slice %19 {offsets = [0, 0, 48], sizes = [2, 8, 8], strides = [1, 1, 1]} : vector<2x8x96xf32> to vector<2x8x8xf32>
    %56 = vector.extract_strided_slice %19 {offsets = [0, 0, 80], sizes = [2, 8, 8], strides = [1, 1, 1]} : vector<2x8x96xf32> to vector<2x8x8xf32>
    "tpu.trace_start"() <{level = 10 : i32, message = "bqd,bkd->bqk"}> : () -> ()
    %cst_23 = arith.constant dense<0.000000e+00> : vector<2x8x8xf32>
    %57 = tpu.matmul %54, %55, %cst_23 {dimension_numbers = #tpu.dot_dimension_numbers<[2], [2], [1], [1], [0, 0, 0, 1, 1, 1], [0], [0]>} : vector<2x8x8xf32>, vector<2x8x8xf32>, vector<2x8x8xf32> -> vector<2x8x8xf32>
    "tpu.trace_stop"() : () -> ()
    %cst_24 = arith.constant 0.353553385 : f32
    %58 = vector.broadcast %cst_24 : f32 to vector<2x8x8xf32>
    %59 = arith.mulf %57, %58 : vector<2x8x8xf32>
    %cst_25 = arith.constant dense<0xFF800000> : vector<2x8xf32>
    %60 = vector.multi_reduction <maximumf>, %59, %cst_25 [2] : vector<2x8x8xf32> to vector<2x8xf32>
    %61 = vector.shape_cast %60 : vector<2x8xf32> to vector<2x8x1xf32>
    %62 = vector.broadcast %61 : vector<2x8x1xf32> to vector<2x8x8xf32>
    %63 = arith.subf %59, %62 : vector<2x8x8xf32>
    %64 = math.exp %63 : vector<2x8x8xf32>
    %cst_26 = arith.constant dense<0.000000e+00> : vector<2x8xf32>
    %65 = vector.multi_reduction <add>, %64, %cst_26 [2] : vector<2x8x8xf32> to vector<2x8xf32>
    %66 = vector.shape_cast %65 : vector<2x8xf32> to vector<2x8x1xf32>
    %67 = tpu.reciprocal %66 {approx = true} : vector<2x8x1xf32> -> vector<2x8x1xf32>
    %68 = vector.broadcast %67 : vector<2x8x1xf32> to vector<2x8x8xf32>
    %69 = arith.mulf %64, %68 : vector<2x8x8xf32>
    "tpu.trace_start"() <{level = 10 : i32, message = "bqk,bkd->bqd"}> : () -> ()
    %cst_27 = arith.constant dense<0.000000e+00> : vector<2x8x8xf32>
    %70 = tpu.matmul %69, %56, %cst_27 {dimension_numbers = #tpu.dot_dimension_numbers<[2], [1], [1], [2], [0, 0, 0, 1, 1, 2], [0], [0]>} : vector<2x8x8xf32>, vector<2x8x8xf32>, vector<2x8x8xf32> -> vector<2x8x8xf32>
    "tpu.trace_stop"() : () -> ()
    %71 = vector.extract_strided_slice %19 {offsets = [0, 0, 24], sizes = [2, 8, 8], strides = [1, 1, 1]} : vector<2x8x96xf32> to vector<2x8x8xf32>
    %72 = vector.extract_strided_slice %19 {offsets = [0, 0, 56], sizes = [2, 8, 8], strides = [1, 1, 1]} : vector<2x8x96xf32> to vector<2x8x8xf32>
    %73 = vector.extract_strided_slice %19 {offsets = [0, 0, 88], sizes = [2, 8, 8], strides = [1, 1, 1]} : vector<2x8x96xf32> to vector<2x8x8xf32>
    "tpu.trace_start"() <{level = 10 : i32, message = "bqd,bkd->bqk"}> : () -> ()
    %cst_28 = arith.constant dense<0.000000e+00> : vector<2x8x8xf32>
    %74 = tpu.matmul %71, %72, %cst_28 {dimension_numbers = #tpu.dot_dimension_numbers<[2], [2], [1], [1], [0, 0, 0, 1, 1, 1], [0], [0]>} : vector<2x8x8xf32>, vector<2x8x8xf32>, vector<2x8x8xf32> -> vector<2x8x8xf32>
    "tpu.trace_stop"() : () -> ()
    %cst_29 = arith.constant 0.353553385 : f32
    %75 = vector.broadcast %cst_29 : f32 to vector<2x8x8xf32>
    %76 = arith.mulf %74, %75 : vector<2x8x8xf32>
    %cst_30 = arith.constant dense<0xFF800000> : vector<2x8xf32>
    %77 = vector.multi_reduction <maximumf>, %76, %cst_30 [2] : vector<2x8x8xf32> to vector<2x8xf32>
    %78 = vector.shape_cast %77 : vector<2x8xf32> to vector<2x8x1xf32>
    %79 = vector.broadcast %78 : vector<2x8x1xf32> to vector<2x8x8xf32>
    %80 = arith.subf %76, %79 : vector<2x8x8xf32>
    %81 = math.exp %80 : vector<2x8x8xf32>
    %cst_31 = arith.constant dense<0.000000e+00> : vector<2x8xf32>
    %82 = vector.multi_reduction <add>, %81, %cst_31 [2] : vector<2x8x8xf32> to vector<2x8xf32>
    %83 = vector.shape_cast %82 : vector<2x8xf32> to vector<2x8x1xf32>
    %84 = tpu.reciprocal %83 {approx = true} : vector<2x8x1xf32> -> vector<2x8x1xf32>
    %85 = vector.broadcast %84 : vector<2x8x1xf32> to vector<2x8x8xf32>
    %86 = arith.mulf %81, %85 : vector<2x8x8xf32>
    "tpu.trace_start"() <{level = 10 : i32, message = "bqk,bkd->bqd"}> : () -> ()
    %cst_32 = arith.constant dense<0.000000e+00> : vector<2x8x8xf32>
    %87 = tpu.matmul %86, %73, %cst_32 {dimension_numbers = #tpu.dot_dimension_numbers<[2], [1], [1], [2], [0, 0, 0, 1, 1, 2], [0], [0]>} : vector<2x8x8xf32>, vector<2x8x8xf32>, vector<2x8x8xf32> -> vector<2x8x8xf32>
    "tpu.trace_stop"() : () -> ()
    %88 = tpu.concatenate %36, %53, %70, %87 in 2 : vector<2x8x8xf32>, vector<2x8x8xf32>, vector<2x8x8xf32>, vector<2x8x8xf32> -> vector<2x8x32xf32>
    %89 = vector.shape_cast %88 : vector<2x8x32xf32> to vector<16x32xf32>
    %c0_33 = arith.constant 0 : index
    %c0_34 = arith.constant 0 : index
    %c0_35 = arith.constant 0 : index
    %90 = vector.load %arg5[%c0_33, %c0_34, %c0_35] : memref<2x32x32xbf16, #tpu.memory_space<vmem>>, vector<1x32x32xbf16>
    %91 = vector.shape_cast %90 : vector<1x32x32xbf16> to vector<32x32xbf16>
    %92 = arith.truncf %89 : vector<16x32xf32> to vector<16x32xbf16>
    %cst_36 = arith.constant dense<0.000000e+00> : vector<16x32xf32>
    %93 = tpu.matmul %92, %91, %cst_36 {dimension_numbers = #tpu.dot_dimension_numbers<[1], [0], [0], [1], [0, 0, 1, 1], [], []>} : vector<16x32xbf16>, vector<32x32xbf16>, vector<16x32xf32> -> vector<16x32xf32>
    %c0_37 = arith.constant 0 : index
    %c0_38 = arith.constant 0 : index
    %c0_39 = arith.constant 0 : index
    %94 = vector.load %arg6[%c0_37, %c0_38, %c0_39] : memref<2x1x32xf32, #tpu.memory_space<vmem>>, vector<1x1x32xf32>
    %95 = vector.shape_cast %94 : vector<1x1x32xf32> to vector<1x32xf32>
    %96 = vector.broadcast %95 : vector<1x32xf32> to vector<16x32xf32>
    %97 = arith.addf %93, %96 : vector<16x32xf32>
    %98 = arith.addf %10, %97 : vector<16x32xf32>
    %c0_40 = arith.constant 0 : index
    %c0_41 = arith.constant 0 : index
    %c0_42 = arith.constant 0 : index
    %99 = vector.load %arg7[%c0_40, %c0_41, %c0_42] : memref<2x1x32xf32, #tpu.memory_space<vmem>>, vector<1x1x32xf32>
    %100 = vector.shape_cast %99 : vector<1x1x32xf32> to vector<1x32xf32>
    %c0_43 = arith.constant 0 : index
    %c0_44 = arith.constant 0 : index
    %c0_45 = arith.constant 0 : index
    %101 = vector.load %arg8[%c0_43, %c0_44, %c0_45] : memref<2x1x32xf32, #tpu.memory_space<vmem>>, vector<1x1x32xf32>
    %102 = vector.shape_cast %101 : vector<1x1x32xf32> to vector<1x32xf32>
    %cst_46 = arith.constant dense<0.000000e+00> : vector<16xf32>
    %103 = vector.multi_reduction <add>, %98, %cst_46 [1] : vector<16x32xf32> to vector<16xf32>
    %104 = vector.shape_cast %103 : vector<16xf32> to vector<16x1xf32>
    %cst_47 = arith.constant 3.200000e+01 : f32
    %105 = vector.broadcast %cst_47 : f32 to vector<16x1xf32>
    %106 = arith.divf %104, %105 : vector<16x1xf32>
    %107 = vector.broadcast %106 : vector<16x1xf32> to vector<16x32xf32>
    %108 = arith.subf %98, %107 : vector<16x32xf32>
    %109 = arith.mulf %108, %108 : vector<16x32xf32>
    %cst_48 = arith.constant dense<0.000000e+00> : vector<16xf32>
    %110 = vector.multi_reduction <add>, %109, %cst_48 [1] : vector<16x32xf32> to vector<16xf32>
    %111 = vector.shape_cast %110 : vector<16xf32> to vector<16x1xf32>
    %cst_49 = arith.constant 3.200000e+01 : f32
    %112 = vector.broadcast %cst_49 : f32 to vector<16x1xf32>
    %113 = arith.divf %111, %112 : vector<16x1xf32>
    %cst_50 = arith.constant 9.99999974E-6 : f32
    %114 = vector.broadcast %cst_50 : f32 to vector<16x1xf32>
    %115 = arith.addf %113, %114 : vector<16x1xf32>
    %116 = math.rsqrt %115 : vector<16x1xf32>
    %117 = vector.broadcast %116 : vector<16x1xf32> to vector<16x32xf32>
    %118 = arith.mulf %108, %117 : vector<16x32xf32>
    %119 = vector.broadcast %100 : vector<1x32xf32> to vector<16x32xf32>
    %120 = arith.mulf %118, %119 : vector<16x32xf32>
    %121 = vector.broadcast %102 : vector<1x32xf32> to vector<16x32xf32>
    %122 = arith.addf %120, %121 : vector<16x32xf32>
    %c0_51 = arith.constant 0 : index
    %c0_52 = arith.constant 0 : index
    %c0_53 = arith.constant 0 : index
    %123 = vector.load %arg9[%c0_51, %c0_52, %c0_53] : memref<2x32x64xbf16, #tpu.memory_space<vmem>>, vector<1x32x64xbf16>
    %124 = vector.shape_cast %123 : vector<1x32x64xbf16> to vector<32x64xbf16>
    %125 = arith.truncf %122 : vector<16x32xf32> to vector<16x32xbf16>
    %cst_54 = arith.constant dense<0.000000e+00> : vector<16x64xf32>
    %126 = tpu.matmul %125, %124, %cst_54 {dimension_numbers = #tpu.dot_dimension_numbers<[1], [0], [0], [1], [0, 0, 1, 1], [], []>} : vector<16x32xbf16>, vector<32x64xbf16>, vector<16x64xf32> -> vector<16x64xf32>
    %c0_55 = arith.constant 0 : index
    %c0_56 = arith.constant 0 : index
    %c0_57 = arith.constant 0 : index
    %127 = vector.load %arg10[%c0_55, %c0_56, %c0_57] : memref<2x1x64xf32, #tpu.memory_space<vmem>>, vector<1x1x64xf32>
    %128 = vector.shape_cast %127 : vector<1x1x64xf32> to vector<1x64xf32>
    %129 = vector.broadcast %128 : vector<1x64xf32> to vector<16x64xf32>
    %130 = arith.addf %126, %129 : vector<16x64xf32>
    %cst_58 = arith.constant 0.000000e+00 : f32
    %131 = vector.broadcast %cst_58 : f32 to vector<16x64xf32>
    %132 = arith.maximumf %130, %131 : vector<16x64xf32>
    %c0_59 = arith.constant 0 : index
    %c0_60 = arith.constant 0 : index
    %c0_61 = arith.constant 0 : index
    %133 = vector.load %arg11[%c0_59, %c0_60, %c0_61] : memref<2x64x32xbf16, #tpu.memory_space<vmem>>, vector<1x64x32xbf16>
    %134 = vector.shape_cast %133 : vector<1x64x32xbf16> to vector<64x32xbf16>
    %135 = arith.truncf %132 : vector<16x64xf32> to vector<16x64xbf16>
    %cst_62 = arith.constant dense<0.000000e+00> : vector<16x32xf32>
    %136 = tpu.matmul %135, %134, %cst_62 {dimension_numbers = #tpu.dot_dimension_numbers<[1], [0], [0], [1], [0, 0, 1, 1], [], []>} : vector<16x64xbf16>, vector<64x32xbf16>, vector<16x32xf32> -> vector<16x32xf32>
    %c0_63 = arith.constant 0 : index
    %c0_64 = arith.constant 0 : index
    %c0_65 = arith.constant 0 : index
    %137 = vector.load %arg12[%c0_63, %c0_64, %c0_65] : memref<2x1x32xf32, #tpu.memory_space<vmem>>, vector<1x1x32xf32>
    %138 = vector.shape_cast %137 : vector<1x1x32xf32> to vector<1x32xf32>
    %139 = vector.broadcast %138 : vector<1x32xf32> to vector<16x32xf32>
    %140 = arith.addf %136, %139 : vector<16x32xf32>
    %141 = arith.addf %122, %140 : vector<16x32xf32>
    %c0_66 = arith.constant 0 : index
    %c0_67 = arith.constant 0 : index
    %c0_68 = arith.constant 0 : index
    %142 = vector.load %arg13[%c0_66, %c0_67, %c0_68] : memref<2x1x32xf32, #tpu.memory_space<vmem>>, vector<1x1x32xf32>
    %143 = vector.shape_cast %142 : vector<1x1x32xf32> to vector<1x32xf32>
    %c0_69 = arith.constant 0 : index
    %c0_70 = arith.constant 0 : index
    %c0_71 = arith.constant 0 : index
    %144 = vector.load %arg14[%c0_69, %c0_70, %c0_71] : memref<2x1x32xf32, #tpu.memory_space<vmem>>, vector<1x1x32xf32>
    %145 = vector.shape_cast %144 : vector<1x1x32xf32> to vector<1x32xf32>
    %cst_72 = arith.constant dense<0.000000e+00> : vector<16xf32>
    %146 = vector.multi_reduction <add>, %141, %cst_72 [1] : vector<16x32xf32> to vector<16xf32>
    %147 = vector.shape_cast %146 : vector<16xf32> to vector<16x1xf32>
    %cst_73 = arith.constant 3.200000e+01 : f32
    %148 = vector.broadcast %cst_73 : f32 to vector<16x1xf32>
    %149 = arith.divf %147, %148 : vector<16x1xf32>
    %150 = vector.broadcast %149 : vector<16x1xf32> to vector<16x32xf32>
    %151 = arith.subf %141, %150 : vector<16x32xf32>
    %152 = arith.mulf %151, %151 : vector<16x32xf32>
    %cst_74 = arith.constant dense<0.000000e+00> : vector<16xf32>
    %153 = vector.multi_reduction <add>, %152, %cst_74 [1] : vector<16x32xf32> to vector<16xf32>
    %154 = vector.shape_cast %153 : vector<16xf32> to vector<16x1xf32>
    %cst_75 = arith.constant 3.200000e+01 : f32
    %155 = vector.broadcast %cst_75 : f32 to vector<16x1xf32>
    %156 = arith.divf %154, %155 : vector<16x1xf32>
    %cst_76 = arith.constant 9.99999974E-6 : f32
    %157 = vector.broadcast %cst_76 : f32 to vector<16x1xf32>
    %158 = arith.addf %156, %157 : vector<16x1xf32>
    %159 = math.rsqrt %158 : vector<16x1xf32>
    %160 = vector.broadcast %159 : vector<16x1xf32> to vector<16x32xf32>
    %161 = arith.mulf %151, %160 : vector<16x32xf32>
    %162 = vector.broadcast %143 : vector<1x32xf32> to vector<16x32xf32>
    %163 = arith.mulf %161, %162 : vector<16x32xf32>
    %164 = vector.broadcast %145 : vector<1x32xf32> to vector<16x32xf32>
    %165 = arith.addf %163, %164 : vector<16x32xf32>
    %c1 = arith.constant 1 : index
    %c0_77 = arith.constant 0 : index
    %c0_78 = arith.constant 0 : index
    %166 = vector.load %arg3[%c1, %c0_77, %c0_78] : memref<2x32x96xbf16, #tpu.memory_space<vmem>>, vector<1x32x96xbf16>
    %167 = vector.shape_cast %166 : vector<1x32x96xbf16> to vector<32x96xbf16>
    %168 = arith.truncf %165 : vector<16x32xf32> to vector<16x32xbf16>
    %cst_79 = arith.constant dense<0.000000e+00> : vector<16x96xf32>
    %169 = tpu.matmul %168, %167, %cst_79 {dimension_numbers = #tpu.dot_dimension_numbers<[1], [0], [0], [1], [0, 0, 1, 1], [], []>} : vector<16x32xbf16>, vector<32x96xbf16>, vector<16x96xf32> -> vector<16x96xf32>
    %c1_80 = arith.constant 1 : index
    %c0_81 = arith.constant 0 : index
    %c0_82 = arith.constant 0 : index
    %170 = vector.load %arg4[%c1_80, %c0_81, %c0_82] : memref<2x1x96xf32, #tpu.memory_space<vmem>>, vector<1x1x96xf32>
    %171 = vector.shape_cast %170 : vector<1x1x96xf32> to vector<1x96xf32>
    %172 = vector.broadcast %171 : vector<1x96xf32> to vector<16x96xf32>
    %173 = arith.addf %169, %172 : vector<16x96xf32>
    %174 = vector.shape_cast %173 : vector<16x96xf32> to vector<2x8x96xf32>
    %175 = vector.extract_strided_slice %174 {offsets = [0, 0, 0], sizes = [2, 8, 8], strides = [1, 1, 1]} : vector<2x8x96xf32> to vector<2x8x8xf32>
    %176 = vector.extract_strided_slice %174 {offsets = [0, 0, 32], sizes = [2, 8, 8], strides = [1, 1, 1]} : vector<2x8x96xf32> to vector<2x8x8xf32>
    %177 = vector.extract_strided_slice %174 {offsets = [0, 0, 64], sizes = [2, 8, 8], strides = [1, 1, 1]} : vector<2x8x96xf32> to vector<2x8x8xf32>
    "tpu.trace_start"() <{level = 10 : i32, message = "bqd,bkd->bqk"}> : () -> ()
    %cst_83 = arith.constant dense<0.000000e+00> : vector<2x8x8xf32>
    %178 = tpu.matmul %175, %176, %cst_83 {dimension_numbers = #tpu.dot_dimension_numbers<[2], [2], [1], [1], [0, 0, 0, 1, 1, 1], [0], [0]>} : vector<2x8x8xf32>, vector<2x8x8xf32>, vector<2x8x8xf32> -> vector<2x8x8xf32>
    "tpu.trace_stop"() : () -> ()
    %cst_84 = arith.constant 0.353553385 : f32
    %179 = vector.broadcast %cst_84 : f32 to vector<2x8x8xf32>
    %180 = arith.mulf %178, %179 : vector<2x8x8xf32>
    %cst_85 = arith.constant dense<0xFF800000> : vector<2x8xf32>
    %181 = vector.multi_reduction <maximumf>, %180, %cst_85 [2] : vector<2x8x8xf32> to vector<2x8xf32>
    %182 = vector.shape_cast %181 : vector<2x8xf32> to vector<2x8x1xf32>
    %183 = vector.broadcast %182 : vector<2x8x1xf32> to vector<2x8x8xf32>
    %184 = arith.subf %180, %183 : vector<2x8x8xf32>
    %185 = math.exp %184 : vector<2x8x8xf32>
    %cst_86 = arith.constant dense<0.000000e+00> : vector<2x8xf32>
    %186 = vector.multi_reduction <add>, %185, %cst_86 [2] : vector<2x8x8xf32> to vector<2x8xf32>
    %187 = vector.shape_cast %186 : vector<2x8xf32> to vector<2x8x1xf32>
    %188 = tpu.reciprocal %187 {approx = true} : vector<2x8x1xf32> -> vector<2x8x1xf32>
    %189 = vector.broadcast %188 : vector<2x8x1xf32> to vector<2x8x8xf32>
    %190 = arith.mulf %185, %189 : vector<2x8x8xf32>
    "tpu.trace_start"() <{level = 10 : i32, message = "bqk,bkd->bqd"}> : () -> ()
    %cst_87 = arith.constant dense<0.000000e+00> : vector<2x8x8xf32>
    %191 = tpu.matmul %190, %177, %cst_87 {dimension_numbers = #tpu.dot_dimension_numbers<[2], [1], [1], [2], [0, 0, 0, 1, 1, 2], [0], [0]>} : vector<2x8x8xf32>, vector<2x8x8xf32>, vector<2x8x8xf32> -> vector<2x8x8xf32>
    "tpu.trace_stop"() : () -> ()
    %192 = vector.extract_strided_slice %174 {offsets = [0, 0, 8], sizes = [2, 8, 8], strides = [1, 1, 1]} : vector<2x8x96xf32> to vector<2x8x8xf32>
    %193 = vector.extract_strided_slice %174 {offsets = [0, 0, 40], sizes = [2, 8, 8], strides = [1, 1, 1]} : vector<2x8x96xf32> to vector<2x8x8xf32>
    %194 = vector.extract_strided_slice %174 {offsets = [0, 0, 72], sizes = [2, 8, 8], strides = [1, 1, 1]} : vector<2x8x96xf32> to vector<2x8x8xf32>
    "tpu.trace_start"() <{level = 10 : i32, message = "bqd,bkd->bqk"}> : () -> ()
    %cst_88 = arith.constant dense<0.000000e+00> : vector<2x8x8xf32>
    %195 = tpu.matmul %192, %193, %cst_88 {dimension_numbers = #tpu.dot_dimension_numbers<[2], [2], [1], [1], [0, 0, 0, 1, 1, 1], [0], [0]>} : vector<2x8x8xf32>, vector<2x8x8xf32>, vector<2x8x8xf32> -> vector<2x8x8xf32>
    "tpu.trace_stop"() : () -> ()
    %cst_89 = arith.constant 0.353553385 : f32
    %196 = vector.broadcast %cst_89 : f32 to vector<2x8x8xf32>
    %197 = arith.mulf %195, %196 : vector<2x8x8xf32>
    %cst_90 = arith.constant dense<0xFF800000> : vector<2x8xf32>
    %198 = vector.multi_reduction <maximumf>, %197, %cst_90 [2] : vector<2x8x8xf32> to vector<2x8xf32>
    %199 = vector.shape_cast %198 : vector<2x8xf32> to vector<2x8x1xf32>
    %200 = vector.broadcast %199 : vector<2x8x1xf32> to vector<2x8x8xf32>
    %201 = arith.subf %197, %200 : vector<2x8x8xf32>
    %202 = math.exp %201 : vector<2x8x8xf32>
    %cst_91 = arith.constant dense<0.000000e+00> : vector<2x8xf32>
    %203 = vector.multi_reduction <add>, %202, %cst_91 [2] : vector<2x8x8xf32> to vector<2x8xf32>
    %204 = vector.shape_cast %203 : vector<2x8xf32> to vector<2x8x1xf32>
    %205 = tpu.reciprocal %204 {approx = true} : vector<2x8x1xf32> -> vector<2x8x1xf32>
    %206 = vector.broadcast %205 : vector<2x8x1xf32> to vector<2x8x8xf32>
    %207 = arith.mulf %202, %206 : vector<2x8x8xf32>
    "tpu.trace_start"() <{level = 10 : i32, message = "bqk,bkd->bqd"}> : () -> ()
    %cst_92 = arith.constant dense<0.000000e+00> : vector<2x8x8xf32>
    %208 = tpu.matmul %207, %194, %cst_92 {dimension_numbers = #tpu.dot_dimension_numbers<[2], [1], [1], [2], [0, 0, 0, 1, 1, 2], [0], [0]>} : vector<2x8x8xf32>, vector<2x8x8xf32>, vector<2x8x8xf32> -> vector<2x8x8xf32>
    "tpu.trace_stop"() : () -> ()
    %209 = vector.extract_strided_slice %174 {offsets = [0, 0, 16], sizes = [2, 8, 8], strides = [1, 1, 1]} : vector<2x8x96xf32> to vector<2x8x8xf32>
    %210 = vector.extract_strided_slice %174 {offsets = [0, 0, 48], sizes = [2, 8, 8], strides = [1, 1, 1]} : vector<2x8x96xf32> to vector<2x8x8xf32>
    %211 = vector.extract_strided_slice %174 {offsets = [0, 0, 80], sizes = [2, 8, 8], strides = [1, 1, 1]} : vector<2x8x96xf32> to vector<2x8x8xf32>
    "tpu.trace_start"() <{level = 10 : i32, message = "bqd,bkd->bqk"}> : () -> ()
    %cst_93 = arith.constant dense<0.000000e+00> : vector<2x8x8xf32>
    %212 = tpu.matmul %209, %210, %cst_93 {dimension_numbers = #tpu.dot_dimension_numbers<[2], [2], [1], [1], [0, 0, 0, 1, 1, 1], [0], [0]>} : vector<2x8x8xf32>, vector<2x8x8xf32>, vector<2x8x8xf32> -> vector<2x8x8xf32>
    "tpu.trace_stop"() : () -> ()
    %cst_94 = arith.constant 0.353553385 : f32
    %213 = vector.broadcast %cst_94 : f32 to vector<2x8x8xf32>
    %214 = arith.mulf %212, %213 : vector<2x8x8xf32>
    %cst_95 = arith.constant dense<0xFF800000> : vector<2x8xf32>
    %215 = vector.multi_reduction <maximumf>, %214, %cst_95 [2] : vector<2x8x8xf32> to vector<2x8xf32>
    %216 = vector.shape_cast %215 : vector<2x8xf32> to vector<2x8x1xf32>
    %217 = vector.broadcast %216 : vector<2x8x1xf32> to vector<2x8x8xf32>
    %218 = arith.subf %214, %217 : vector<2x8x8xf32>
    %219 = math.exp %218 : vector<2x8x8xf32>
    %cst_96 = arith.constant dense<0.000000e+00> : vector<2x8xf32>
    %220 = vector.multi_reduction <add>, %219, %cst_96 [2] : vector<2x8x8xf32> to vector<2x8xf32>
    %221 = vector.shape_cast %220 : vector<2x8xf32> to vector<2x8x1xf32>
    %222 = tpu.reciprocal %221 {approx = true} : vector<2x8x1xf32> -> vector<2x8x1xf32>
    %223 = vector.broadcast %222 : vector<2x8x1xf32> to vector<2x8x8xf32>
    %224 = arith.mulf %219, %223 : vector<2x8x8xf32>
    "tpu.trace_start"() <{level = 10 : i32, message = "bqk,bkd->bqd"}> : () -> ()
    %cst_97 = arith.constant dense<0.000000e+00> : vector<2x8x8xf32>
    %225 = tpu.matmul %224, %211, %cst_97 {dimension_numbers = #tpu.dot_dimension_numbers<[2], [1], [1], [2], [0, 0, 0, 1, 1, 2], [0], [0]>} : vector<2x8x8xf32>, vector<2x8x8xf32>, vector<2x8x8xf32> -> vector<2x8x8xf32>
    "tpu.trace_stop"() : () -> ()
    %226 = vector.extract_strided_slice %174 {offsets = [0, 0, 24], sizes = [2, 8, 8], strides = [1, 1, 1]} : vector<2x8x96xf32> to vector<2x8x8xf32>
    %227 = vector.extract_strided_slice %174 {offsets = [0, 0, 56], sizes = [2, 8, 8], strides = [1, 1, 1]} : vector<2x8x96xf32> to vector<2x8x8xf32>
    %228 = vector.extract_strided_slice %174 {offsets = [0, 0, 88], sizes = [2, 8, 8], strides = [1, 1, 1]} : vector<2x8x96xf32> to vector<2x8x8xf32>
    "tpu.trace_start"() <{level = 10 : i32, message = "bqd,bkd->bqk"}> : () -> ()
    %cst_98 = arith.constant dense<0.000000e+00> : vector<2x8x8xf32>
    %229 = tpu.matmul %226, %227, %cst_98 {dimension_numbers = #tpu.dot_dimension_numbers<[2], [2], [1], [1], [0, 0, 0, 1, 1, 1], [0], [0]>} : vector<2x8x8xf32>, vector<2x8x8xf32>, vector<2x8x8xf32> -> vector<2x8x8xf32>
    "tpu.trace_stop"() : () -> ()
    %cst_99 = arith.constant 0.353553385 : f32
    %230 = vector.broadcast %cst_99 : f32 to vector<2x8x8xf32>
    %231 = arith.mulf %229, %230 : vector<2x8x8xf32>
    %cst_100 = arith.constant dense<0xFF800000> : vector<2x8xf32>
    %232 = vector.multi_reduction <maximumf>, %231, %cst_100 [2] : vector<2x8x8xf32> to vector<2x8xf32>
    %233 = vector.shape_cast %232 : vector<2x8xf32> to vector<2x8x1xf32>
    %234 = vector.broadcast %233 : vector<2x8x1xf32> to vector<2x8x8xf32>
    %235 = arith.subf %231, %234 : vector<2x8x8xf32>
    %236 = math.exp %235 : vector<2x8x8xf32>
    %cst_101 = arith.constant dense<0.000000e+00> : vector<2x8xf32>
    %237 = vector.multi_reduction <add>, %236, %cst_101 [2] : vector<2x8x8xf32> to vector<2x8xf32>
    %238 = vector.shape_cast %237 : vector<2x8xf32> to vector<2x8x1xf32>
    %239 = tpu.reciprocal %238 {approx = true} : vector<2x8x1xf32> -> vector<2x8x1xf32>
    %240 = vector.broadcast %239 : vector<2x8x1xf32> to vector<2x8x8xf32>
    %241 = arith.mulf %236, %240 : vector<2x8x8xf32>
    "tpu.trace_start"() <{level = 10 : i32, message = "bqk,bkd->bqd"}> : () -> ()
    %cst_102 = arith.constant dense<0.000000e+00> : vector<2x8x8xf32>
    %242 = tpu.matmul %241, %228, %cst_102 {dimension_numbers = #tpu.dot_dimension_numbers<[2], [1], [1], [2], [0, 0, 0, 1, 1, 2], [0], [0]>} : vector<2x8x8xf32>, vector<2x8x8xf32>, vector<2x8x8xf32> -> vector<2x8x8xf32>
    "tpu.trace_stop"() : () -> ()
    %243 = tpu.concatenate %191, %208, %225, %242 in 2 : vector<2x8x8xf32>, vector<2x8x8xf32>, vector<2x8x8xf32>, vector<2x8x8xf32> -> vector<2x8x32xf32>
    %244 = vector.shape_cast %243 : vector<2x8x32xf32> to vector<16x32xf32>
    %c1_103 = arith.constant 1 : index
    %c0_104 = arith.constant 0 : index
    %c0_105 = arith.constant 0 : index
    %245 = vector.load %arg5[%c1_103, %c0_104, %c0_105] : memref<2x32x32xbf16, #tpu.memory_space<vmem>>, vector<1x32x32xbf16>
    %246 = vector.shape_cast %245 : vector<1x32x32xbf16> to vector<32x32xbf16>
    %247 = arith.truncf %244 : vector<16x32xf32> to vector<16x32xbf16>
    %cst_106 = arith.constant dense<0.000000e+00> : vector<16x32xf32>
    %248 = tpu.matmul %247, %246, %cst_106 {dimension_numbers = #tpu.dot_dimension_numbers<[1], [0], [0], [1], [0, 0, 1, 1], [], []>} : vector<16x32xbf16>, vector<32x32xbf16>, vector<16x32xf32> -> vector<16x32xf32>
    %c1_107 = arith.constant 1 : index
    %c0_108 = arith.constant 0 : index
    %c0_109 = arith.constant 0 : index
    %249 = vector.load %arg6[%c1_107, %c0_108, %c0_109] : memref<2x1x32xf32, #tpu.memory_space<vmem>>, vector<1x1x32xf32>
    %250 = vector.shape_cast %249 : vector<1x1x32xf32> to vector<1x32xf32>
    %251 = vector.broadcast %250 : vector<1x32xf32> to vector<16x32xf32>
    %252 = arith.addf %248, %251 : vector<16x32xf32>
    %253 = arith.addf %165, %252 : vector<16x32xf32>
    %c1_110 = arith.constant 1 : index
    %c0_111 = arith.constant 0 : index
    %c0_112 = arith.constant 0 : index
    %254 = vector.load %arg7[%c1_110, %c0_111, %c0_112] : memref<2x1x32xf32, #tpu.memory_space<vmem>>, vector<1x1x32xf32>
    %255 = vector.shape_cast %254 : vector<1x1x32xf32> to vector<1x32xf32>
    %c1_113 = arith.constant 1 : index
    %c0_114 = arith.constant 0 : index
    %c0_115 = arith.constant 0 : index
    %256 = vector.load %arg8[%c1_113, %c0_114, %c0_115] : memref<2x1x32xf32, #tpu.memory_space<vmem>>, vector<1x1x32xf32>
    %257 = vector.shape_cast %256 : vector<1x1x32xf32> to vector<1x32xf32>
    %cst_116 = arith.constant dense<0.000000e+00> : vector<16xf32>
    %258 = vector.multi_reduction <add>, %253, %cst_116 [1] : vector<16x32xf32> to vector<16xf32>
    %259 = vector.shape_cast %258 : vector<16xf32> to vector<16x1xf32>
    %cst_117 = arith.constant 3.200000e+01 : f32
    %260 = vector.broadcast %cst_117 : f32 to vector<16x1xf32>
    %261 = arith.divf %259, %260 : vector<16x1xf32>
    %262 = vector.broadcast %261 : vector<16x1xf32> to vector<16x32xf32>
    %263 = arith.subf %253, %262 : vector<16x32xf32>
    %264 = arith.mulf %263, %263 : vector<16x32xf32>
    %cst_118 = arith.constant dense<0.000000e+00> : vector<16xf32>
    %265 = vector.multi_reduction <add>, %264, %cst_118 [1] : vector<16x32xf32> to vector<16xf32>
    %266 = vector.shape_cast %265 : vector<16xf32> to vector<16x1xf32>
    %cst_119 = arith.constant 3.200000e+01 : f32
    %267 = vector.broadcast %cst_119 : f32 to vector<16x1xf32>
    %268 = arith.divf %266, %267 : vector<16x1xf32>
    %cst_120 = arith.constant 9.99999974E-6 : f32
    %269 = vector.broadcast %cst_120 : f32 to vector<16x1xf32>
    %270 = arith.addf %268, %269 : vector<16x1xf32>
    %271 = math.rsqrt %270 : vector<16x1xf32>
    %272 = vector.broadcast %271 : vector<16x1xf32> to vector<16x32xf32>
    %273 = arith.mulf %263, %272 : vector<16x32xf32>
    %274 = vector.broadcast %255 : vector<1x32xf32> to vector<16x32xf32>
    %275 = arith.mulf %273, %274 : vector<16x32xf32>
    %276 = vector.broadcast %257 : vector<1x32xf32> to vector<16x32xf32>
    %277 = arith.addf %275, %276 : vector<16x32xf32>
    %c1_121 = arith.constant 1 : index
    %c0_122 = arith.constant 0 : index
    %c0_123 = arith.constant 0 : index
    %278 = vector.load %arg9[%c1_121, %c0_122, %c0_123] : memref<2x32x64xbf16, #tpu.memory_space<vmem>>, vector<1x32x64xbf16>
    %279 = vector.shape_cast %278 : vector<1x32x64xbf16> to vector<32x64xbf16>
    %280 = arith.truncf %277 : vector<16x32xf32> to vector<16x32xbf16>
    %cst_124 = arith.constant dense<0.000000e+00> : vector<16x64xf32>
    %281 = tpu.matmul %280, %279, %cst_124 {dimension_numbers = #tpu.dot_dimension_numbers<[1], [0], [0], [1], [0, 0, 1, 1], [], []>} : vector<16x32xbf16>, vector<32x64xbf16>, vector<16x64xf32> -> vector<16x64xf32>
    %c1_125 = arith.constant 1 : index
    %c0_126 = arith.constant 0 : index
    %c0_127 = arith.constant 0 : index
    %282 = vector.load %arg10[%c1_125, %c0_126, %c0_127] : memref<2x1x64xf32, #tpu.memory_space<vmem>>, vector<1x1x64xf32>
    %283 = vector.shape_cast %282 : vector<1x1x64xf32> to vector<1x64xf32>
    %284 = vector.broadcast %283 : vector<1x64xf32> to vector<16x64xf32>
    %285 = arith.addf %281, %284 : vector<16x64xf32>
    %cst_128 = arith.constant 0.000000e+00 : f32
    %286 = vector.broadcast %cst_128 : f32 to vector<16x64xf32>
    %287 = arith.maximumf %285, %286 : vector<16x64xf32>
    %c1_129 = arith.constant 1 : index
    %c0_130 = arith.constant 0 : index
    %c0_131 = arith.constant 0 : index
    %288 = vector.load %arg11[%c1_129, %c0_130, %c0_131] : memref<2x64x32xbf16, #tpu.memory_space<vmem>>, vector<1x64x32xbf16>
    %289 = vector.shape_cast %288 : vector<1x64x32xbf16> to vector<64x32xbf16>
    %290 = arith.truncf %287 : vector<16x64xf32> to vector<16x64xbf16>
    %cst_132 = arith.constant dense<0.000000e+00> : vector<16x32xf32>
    %291 = tpu.matmul %290, %289, %cst_132 {dimension_numbers = #tpu.dot_dimension_numbers<[1], [0], [0], [1], [0, 0, 1, 1], [], []>} : vector<16x64xbf16>, vector<64x32xbf16>, vector<16x32xf32> -> vector<16x32xf32>
    %c1_133 = arith.constant 1 : index
    %c0_134 = arith.constant 0 : index
    %c0_135 = arith.constant 0 : index
    %292 = vector.load %arg12[%c1_133, %c0_134, %c0_135] : memref<2x1x32xf32, #tpu.memory_space<vmem>>, vector<1x1x32xf32>
    %293 = vector.shape_cast %292 : vector<1x1x32xf32> to vector<1x32xf32>
    %294 = vector.broadcast %293 : vector<1x32xf32> to vector<16x32xf32>
    %295 = arith.addf %291, %294 : vector<16x32xf32>
    %296 = arith.addf %277, %295 : vector<16x32xf32>
    %c1_136 = arith.constant 1 : index
    %c0_137 = arith.constant 0 : index
    %c0_138 = arith.constant 0 : index
    %297 = vector.load %arg13[%c1_136, %c0_137, %c0_138] : memref<2x1x32xf32, #tpu.memory_space<vmem>>, vector<1x1x32xf32>
    %298 = vector.shape_cast %297 : vector<1x1x32xf32> to vector<1x32xf32>
    %c1_139 = arith.constant 1 : index
    %c0_140 = arith.constant 0 : index
    %c0_141 = arith.constant 0 : index
    %299 = vector.load %arg14[%c1_139, %c0_140, %c0_141] : memref<2x1x32xf32, #tpu.memory_space<vmem>>, vector<1x1x32xf32>
    %300 = vector.shape_cast %299 : vector<1x1x32xf32> to vector<1x32xf32>
    %cst_142 = arith.constant dense<0.000000e+00> : vector<16xf32>
    %301 = vector.multi_reduction <add>, %296, %cst_142 [1] : vector<16x32xf32> to vector<16xf32>
    %302 = vector.shape_cast %301 : vector<16xf32> to vector<16x1xf32>
    %cst_143 = arith.constant 3.200000e+01 : f32
    %303 = vector.broadcast %cst_143 : f32 to vector<16x1xf32>
    %304 = arith.divf %302, %303 : vector<16x1xf32>
    %305 = vector.broadcast %304 : vector<16x1xf32> to vector<16x32xf32>
    %306 = arith.subf %296, %305 : vector<16x32xf32>
    %307 = arith.mulf %306, %306 : vector<16x32xf32>
    %cst_144 = arith.constant dense<0.000000e+00> : vector<16xf32>
    %308 = vector.multi_reduction <add>, %307, %cst_144 [1] : vector<16x32xf32> to vector<16xf32>
    %309 = vector.shape_cast %308 : vector<16xf32> to vector<16x1xf32>
    %cst_145 = arith.constant 3.200000e+01 : f32
    %310 = vector.broadcast %cst_145 : f32 to vector<16x1xf32>
    %311 = arith.divf %309, %310 : vector<16x1xf32>
    %cst_146 = arith.constant 9.99999974E-6 : f32
    %312 = vector.broadcast %cst_146 : f32 to vector<16x1xf32>
    %313 = arith.addf %311, %312 : vector<16x1xf32>
    %314 = math.rsqrt %313 : vector<16x1xf32>
    %315 = vector.broadcast %314 : vector<16x1xf32> to vector<16x32xf32>
    %316 = arith.mulf %306, %315 : vector<16x32xf32>
    %317 = vector.broadcast %298 : vector<1x32xf32> to vector<16x32xf32>
    %318 = arith.mulf %316, %317 : vector<16x32xf32>
    %319 = vector.broadcast %300 : vector<1x32xf32> to vector<16x32xf32>
    %320 = arith.addf %318, %319 : vector<16x32xf32>
    %321 = vector.shape_cast %320 : vector<16x32xf32> to vector<2x8x32xf32>
    %cst_147 = arith.constant dense<0.000000e+00> : vector<2x32xf32>
    %322 = vector.multi_reduction <add>, %321, %cst_147 [1] : vector<2x8x32xf32> to vector<2x32xf32>
    %cst_148 = arith.constant 8.000000e+00 : f32
    %323 = vector.broadcast %cst_148 : f32 to vector<2x32xf32>
    %324 = arith.divf %322, %323 : vector<2x32xf32>
    %c0_149 = arith.constant 0 : index
    %c0_150 = arith.constant 0 : index
    %325 = vector.load %arg15[%c0_149, %c0_150] : memref<32x1024xbf16, #tpu.memory_space<vmem>>, vector<32x1024xbf16>
    %326 = arith.truncf %324 : vector<2x32xf32> to vector<2x32xbf16>
    %cst_151 = arith.constant dense<0.000000e+00> : vector<2x1024xf32>
    %327 = tpu.matmul %326, %325, %cst_151 {dimension_numbers = #tpu.dot_dimension_numbers<[1], [0], [0], [1], [0, 0, 1, 1], [], []>} : vector<2x32xbf16>, vector<32x1024xbf16>, vector<2x1024xf32> -> vector<2x1024xf32>
    %c0_152 = arith.constant 0 : index
    %c0_153 = arith.constant 0 : index
    %328 = vector.load %arg16[%c0_152, %c0_153] : memref<1x1024xf32, #tpu.memory_space<vmem>>, vector<1x1024xf32>
    %329 = vector.broadcast %328 : vector<1x1024xf32> to vector<2x1024xf32>
    %330 = arith.addf %327, %329 : vector<2x1024xf32>
    %cst_154 = arith.constant 0.000000e+00 : f32
    %331 = vector.broadcast %cst_154 : f32 to vector<2x1024xf32>
    %332 = arith.maximumf %330, %331 : vector<2x1024xf32>
    %c0_155 = arith.constant 0 : index
    %c0_156 = arith.constant 0 : index
    %333 = vector.load %arg17[%c0_155, %c0_156] : memref<1024x128xbf16, #tpu.memory_space<vmem>>, vector<1024x128xbf16>
    %334 = arith.truncf %332 : vector<2x1024xf32> to vector<2x1024xbf16>
    %cst_157 = arith.constant dense<0.000000e+00> : vector<2x128xf32>
    %335 = tpu.matmul %334, %333, %cst_157 {dimension_numbers = #tpu.dot_dimension_numbers<[1], [0], [0], [1], [0, 0, 1, 1], [], []>} : vector<2x1024xbf16>, vector<1024x128xbf16>, vector<2x128xf32> -> vector<2x128xf32>
    %c0_158 = arith.constant 0 : index
    %c0_159 = arith.constant 0 : index
    %336 = vector.load %arg18[%c0_158, %c0_159] : memref<1x128xf32, #tpu.memory_space<vmem>>, vector<1x128xf32>
    %337 = vector.broadcast %336 : vector<1x128xf32> to vector<2x128xf32>
    %338 = arith.addf %335, %337 : vector<2x128xf32>
    %339 = math.absf %338 : vector<2x128xf32>
    %cst_160 = arith.constant 0.000000e+00 : f32
    %340 = vector.broadcast %cst_160 : f32 to vector<2x128xf32>
    %341 = arith.subf %340, %339 : vector<2x128xf32>
    %342 = math.exp %341 : vector<2x128xf32>
    %cst_161 = arith.constant 1.000000e+00 : f32
    %343 = vector.broadcast %cst_161 : f32 to vector<2x128xf32>
    %344 = arith.addf %343, %342 : vector<2x128xf32>
    %cst_162 = arith.constant 0.000000e+00 : f32
    %345 = vector.broadcast %cst_162 : f32 to vector<2x128xf32>
    %346 = arith.cmpf oge, %338, %345 : vector<2x128xf32>
    %cst_163 = arith.constant 1.000000e+00 : f32
    %347 = vector.broadcast %cst_163 : f32 to vector<2x128xf32>
    %348 = arith.divf %347, %344 : vector<2x128xf32>
    %349 = arith.divf %342, %344 : vector<2x128xf32>
    %350 = arith.select %346, %348, %349 : vector<2x128xi1>, vector<2x128xf32>
    %c0_164 = arith.constant 0 : index
    %c0_165 = arith.constant 0 : index
    %351 = vector.load %arg19[%c0_164, %c0_165] : memref<2x128xf32, #tpu.memory_space<vmem>>, vector<2x128xf32>
    tpu.vector_store %arg19[%c0_164, %c0_165], %350 {strides = array<i32>} : memref<2x128xf32, #tpu.memory_space<vmem>>, vector<2x128xf32>,
    return
  }
}

</mosaic_0001>

<bundles_post_ra>
// kernel: _lambda_.1
= control target key start
LH: loop header
LB: loop body
LE: loop exit
PB: predicated region body
PF: predicated region fallthrough
CT: control target
= control target key end

     0   :  { %s6915_s0 = inlined_call_operand.vmem [shape: f32[2,8,32], index: 0, kind: input, shape index: {}]   ;;  %s6916_s1 = inlined_call_operand.hbm [shape: f32[8,32], index: 1, kind: input, shape index: {}]   ;;  %s6917_s2 = inlined_call_operand.vmem [shape: bf16[32,32], index: 2, kind: input, shape index: {}]   ;;  %s6918_s3 = inlined_call_operand.hbm [shape: bf16[2,32,96], index: 3, kind: input, shape index: {}]   ;;  %s6919_s4 = inlined_call_operand.hbm [shape: f32[2,1,96], index: 4, kind: input, shape index: {}]   ;;  %s6920_s5 = inlined_call_operand.hbm [shape: bf16[2,32,32], index: 5, kind: input, shape index: {}]   ;;  %s6921_s6 = inlined_call_operand.hbm [shape: f32[2,1,32], index: 6, kind: input, shape index: {}]   ;;  %s6922_s7 = inlined_call_operand.hbm [shape: f32[2,1,32], index: 7, kind: input, shape index: {}]   ;;  %s6923_s8 = inlined_call_operand.hbm [shape: f32[2,1,32], index: 8, kind: input, shape index: {}]   ;;  %s6924_s9 = inlined_call_operand.hbm [shape: bf16[2,32,64], index: 9, kind: input, shape index: {}]   ;;  %s6925_s10 = inlined_call_operand.hbm [shape: f32[2,1,64], index: 10, kind: input, shape index: {}]   ;;  %s6926_s11 = inlined_call_operand.vmem [shape: bf16[2,64,32], index: 11, kind: input, shape index: {}]   ;;  %s6927_s12 = inlined_call_operand.hbm [shape: f32[2,1,32], index: 12, kind: input, shape index: {}]   ;;  %s6928_s13 = inlined_call_operand.hbm [shape: f32[2,1,32], index: 13, kind: input, shape index: {}]   ;;  %s6929_s14 = inlined_call_operand.hbm [shape: f32[2,1,32], index: 14, kind: input, shape index: {}]   ;;  %s6930_s15 = inlined_call_operand.hbm [shape: bf16[32,1024], index: 15, kind: input, shape index: {}]   ;;  %s6931_s16 = inlined_call_operand.hbm [shape: f32[1,1024], index: 16, kind: input, shape index: {}]   ;;  %s6932_s17 = inlined_call_operand.vmem [shape: bf16[1024,128], index: 17, kind: input, shape index: {}]   ;;  %s6933_s18 = inlined_call_operand.hbm [shape: f32[1,128], index: 18, kind: input, shape index: {}]   ;;  %s6934_s19 = inlined_call_operand.vmem [shape: f32[2,128], index: 19, kind: output, shape index: {}]  }
   0x1   :  { %6937 = sst [smem:[#allocation33_spill]] %s6915_s0 }
   0x2   :  { %6938 = sst [smem:[#allocation34_spill]] %s6916_s1 }
   0x3   :  { %6939 = sst [smem:[#allocation35_spill]] %s6917_s2 }
   0x4   :  { %6940 = sst [smem:[#allocation36_spill]] %s6918_s3 }
   0x5   :  { %24 = vsyncpa [#allocation3], 0 }
   0x6   :  { %25 = vsyncpa [#allocation5], 0 }
   0x7   :  { %26 = vsyncpa [#allocation8], 0 }
   0x8   :  { %27 = vsyncpa [#allocation11], 0 }
   0x9   :  { %28 = vsyncpa [#allocation14], 0 }
   0xa   :  { %29 = vsyncpa [#allocation17], 0 }
   0xb   :  { %30 = vsyncpa [#allocation20], 0 }
   0xc   :  { %31 = vsyncpa [#allocation23], 0  ;;  %s6032_s0 = smov [#allocation4]  }
   0xd   :  { %s51_s30 = sshll.u32 %s6032_s0, 4  ;;  %s52_s30 = int_to_ptr.vmem [resolvable:$true] %s51_s30 }
   0xe   :  { %s5724_s20 = scalar_lea.vmem %s52_s30, 512  ;;  %p5729_p1 = scmp.lt.s32.totalorder %s52_s30, %s52_s30 }
   0xf   :  { %p5725_p0 = scmp.ne.s32.totalorder %s52_s30, %s5724_s20  ;;  %p5730_p2 = scmp.lt.s32.totalorder %s5724_s20, %s5724_s20 }
  0x11   :  { %p5731_p3 = por %p5730_p2, %p5729_p1 }
  0x13   :  { %p5732_p4 = pnand %p5731_p3, %p5725_p0 }
  0x15   :  { %5735 = shalt.err (!%p5732_p4)
}
  0x16   :  { %s6033_s21 = smov 64   ;;  %s6034_s1 = smov 4  }
  0x17   :  { %s6941_s23 = sld [smem:[#allocation36_spill]]  ;;  %s6035_s24 = smov [#allocation7]  }
  0x18   :  { %s75_s25 = sshll.u32 %s6035_s24, 4  ;;  %s76_s25 = int_to_ptr.vmem [resolvable:$true] %s75_s25 }
  0x19   :  { %s5744_s3 = scalar_lea.vmem %s76_s25, 512  ;;  %p5749_p6 = scmp.lt.s32.totalorder %s76_s25, %s76_s25 }
  0x1a   :  { %p5745_p5 = scmp.ne.s32.totalorder %s76_s25, %s5744_s3  ;;  %p5750_p7 = scmp.lt.s32.totalorder %s5744_s3, %s5744_s3 }
  0x1c   :  { %p5751_p8 = por %p5750_p7, %p5749_p6 }
  0x1d   :  { %57 = dma.hbm_to_vmem [thread:$0]  %s6941_s23, 512, %s52_s30, [#allocation5], %s6033_s21, %s6033_s21, %s6034_s1  }
  0x1e   :  { %p5752_p9 = pnand %p5751_p8, %p5745_p5 }
  0x20   :  { %5755 = shalt.err (!%p5752_p9)
}
  0x21   :  { %81 = dma.hbm_to_vmem [thread:$0]  %s6920_s5, 512, %s76_s25, [#allocation8], %s6033_s21, %s6033_s21, %s6034_s1  }
  0x22   :  { %s6036_s28 = smov [#allocation10]   ;;  %s6037_s0 = smov [#allocation13]  }
  0x23   :  { %s99_s29 = sshll.u32 %s6036_s28, 4  ;;  %s123_s30 = sshll.u32 %s6037_s0, 4  ;;  %s100_s29 = int_to_ptr.vmem [resolvable:$true] %s99_s29  ;;  %s124_s30 = int_to_ptr.vmem [resolvable:$true] %s123_s30 }
  0x24   :  { %s5764_s20 = scalar_lea.vmem %s100_s29, 32  ;;  %p5769_p11 = scmp.lt.s32.totalorder %s100_s29, %s100_s29 }
  0x25   :  { %p5765_p10 = scmp.ne.s32.totalorder %s100_s29, %s5764_s20  ;;  %p5770_p12 = scmp.lt.s32.totalorder %s5764_s20, %s5764_s20 }
  0x27   :  { %p5771_p13 = por %p5770_p12, %p5769_p11 }
  0x29   :  { %p5772_p0 = pnand %p5771_p13, %p5765_p10 }
  0x2b   :  { %5775 = shalt.err (!%p5772_p0)
}
  0x2c   :  { %s6038_s22 = smov 16   ;;  %s6039_s2 = smov 1  }
  0x2d   :  { %105 = dma.hbm_to_vmem [thread:$0]  %s6922_s7, 32, %s100_s29, [#allocation11], %s6038_s22, %s6038_s22, %s6039_s2  }
  0x2e   :  { %s5784_s24 = scalar_lea.vmem %s124_s30, 512  ;;  %p5789_p2 = scmp.lt.s32.totalorder %s124_s30, %s124_s30 }
  0x2f   :  { %p5785_p1 = scmp.ne.s32.totalorder %s124_s30, %s5784_s24  ;;  %p5790_p3 = scmp.lt.s32.totalorder %s5784_s24, %s5784_s24 }
  0x31   :  { %p5791_p4 = por %p5790_p3, %p5789_p2 }
  0x33   :  { %p5792_p5 = pnand %p5791_p4, %p5785_p1 }
  0x35   :  { %5795 = shalt.err (!%p5792_p5)
}
  0x36   :  { %129 = dma.hbm_to_vmem [thread:$0]  %s6924_s9, 512, %s124_s30, [#allocation14], %s6033_s21, %s6033_s21, %s6034_s1  }
  0x37   :  { %s6040_s26 = smov [#allocation16]   ;;  %s6041_s28 = smov [#allocation19]  }
  0x38   :  { %s149_s27 = sshll.u32 %s6040_s26, 4  ;;  %s173_s0 = sshll.u32 %s6041_s28, 4  ;;  %s150_s27 = int_to_ptr.vmem [resolvable:$true] %s149_s27  ;;  %s174_s0 = int_to_ptr.vmem [resolvable:$true] %s173_s0 }
  0x39   :  { %s5804_s7 = scalar_lea.vmem %s150_s27, 32  ;;  %p5809_p7 = scmp.lt.s32.totalorder %s150_s27, %s150_s27 }
  0x3a   :  { %p5805_p6 = scmp.ne.s32.totalorder %s150_s27, %s5804_s7  ;;  %p5810_p8 = scmp.lt.s32.totalorder %s5804_s7, %s5804_s7 }
  0x3c   :  { %p5811_p9 = por %p5810_p8, %p5809_p7 }
  0x3e   :  { %p5812_p10 = pnand %p5811_p9, %p5805_p6 }
  0x40   :  { %5815 = shalt.err (!%p5812_p10)
}
  0x41   :  { %155 = dma.hbm_to_vmem [thread:$0]  %s6927_s12, 32, %s150_s27, [#allocation17], %s6038_s22, %s6038_s22, %s6039_s2  }
  0x42   :  { %s5824_s9 = scalar_lea.vmem %s174_s0, 32  ;;  %p5829_p12 = scmp.lt.s32.totalorder %s174_s0, %s174_s0 }
  0x43   :  { %p5825_p11 = scmp.ne.s32.totalorder %s174_s0, %s5824_s9  ;;  %p5830_p13 = scmp.lt.s32.totalorder %s5824_s9, %s5824_s9 }
  0x45   :  { %p5831_p0 = por %p5830_p13, %p5829_p12 }
  0x47   :  { %p5832_p1 = pnand %p5831_p0, %p5825_p11 }
  0x49   :  { %5835 = shalt.err (!%p5832_p1)
}
  0x4a   :  { %179 = dma.hbm_to_vmem [thread:$0]  %s6929_s14, 32, %s174_s0, [#allocation20], %s6038_s22, %s6038_s22, %s6039_s2  }
  0x4b   :  { %s6042_s23 = smov [#allocation22]   ;;  %s6043_s24 = smov [#allocation2]  }
  0x4c   :  { %s198_s5 = sshll.u32 %s6042_s23, 4  ;;  %s40_s25 = sshll.u32 %s6043_s24, 4  ;;  %s199_s5 = int_to_ptr.vmem [resolvable:$true] %s198_s5  ;;  %s41_s25 = int_to_ptr.vmem [resolvable:$true] %s40_s25 }
  0x4d   :  { %s5844_s12 = scalar_lea.vmem %s199_s5, 128  ;;  %p5849_p3 = scmp.lt.s32.totalorder %s199_s5, %s199_s5 }
  0x4e   :  { %p5845_p2 = scmp.ne.s32.totalorder %s199_s5, %s5844_s12  ;;  %p5850_p4 = scmp.lt.s32.totalorder %s5844_s12, %s5844_s12 }
  0x50   :  { %p5851_p5 = por %p5850_p4, %p5849_p3 }
  0x52   :  { %p5852_p6 = pnand %p5851_p5, %p5845_p2 }
  0x54   :  { %5855 = shalt.err (!%p5852_p6)
}
  0x55   :  { %201 = dma.hbm_to_vmem [thread:$0]  %s6931_s16, 128, %s199_s5, [#allocation23]  }
  0x56   :  { %s5864_s27 = scalar_lea.vmem %s41_s25, 128  ;;  %p5869_p8 = scmp.lt.s32.totalorder %s41_s25, %s41_s25 }
  0x57   :  { %p5865_p7 = scmp.ne.s32.totalorder %s41_s25, %s5864_s27  ;;  %p5870_p9 = scmp.lt.s32.totalorder %s5864_s27, %s5864_s27 }
  0x59   :  { %p5871_p10 = por %p5870_p9, %p5869_p8 }
  0x5b   :  { %p5872_p11 = pnand %p5871_p10, %p5865_p7 }
  0x5d   :  { %5875 = shalt.err (!%p5872_p11)
}
  0x5e   :  { %s6942_s0 = sld [smem:[#allocation34_spill]]  ;;  %s6044_s7 = smov [#allocation6]  }
  0x5f   :  { %s63_s29 = sshll.u32 %s6044_s7, 4  ;;  %s6045_s20 = smov [#allocation9]   ;;  %s64_s29 = int_to_ptr.vmem [resolvable:$true] %s63_s29 }
  0x60   :  { %s87_s9 = sshll.u32 %s6045_s20, 4  ;;  %s5884_s1 = scalar_lea.vmem %s64_s29, 32  ;;  %s88_s9 = int_to_ptr.vmem [resolvable:$true] %s87_s9 }
  0x61   :  { %p5885_p12 = scmp.ne.s32.totalorder %s64_s29, %s5884_s1  ;;  %p5889_p13 = scmp.lt.s32.totalorder %s64_s29, %s64_s29 }
  0x62   :  { %p5890_p0 = scmp.lt.s32.totalorder %s5884_s1, %s5884_s1 }
  0x64   :  { %43 = dma.hbm_to_vmem [thread:$0]  %s6942_s0, 128, %s41_s25, [#allocation3]  }
  0x65   :  { %p5891_p1 = por %p5890_p0, %p5889_p13 }
  0x67   :  { %p5892_p2 = pnand %p5891_p1, %p5885_p12 }
  0x69   :  { %5895 = shalt.err (!%p5892_p2)
}
  0x6a   :  { %69 = dma.hbm_to_vmem [thread:$0]  %s6919_s4, 32, %s64_s29, [#allocation5], %s6038_s22, %s6038_s22, %s6039_s2  }
  0x6b   :  { %s5904_s23 = scalar_lea.vmem %s88_s9, 32  ;;  %p5909_p4 = scmp.lt.s32.totalorder %s88_s9, %s88_s9 }
  0x6c   :  { %p5905_p3 = scmp.ne.s32.totalorder %s88_s9, %s5904_s23  ;;  %p5910_p5 = scmp.lt.s32.totalorder %s5904_s23, %s5904_s23 }
  0x6e   :  { %p5911_p6 = por %p5910_p5, %p5909_p4 }
  0x70   :  { %p5912_p7 = pnand %p5911_p6, %p5905_p3 }
  0x72   :  { %5915 = shalt.err (!%p5912_p7)
}
  0x73   :  { %93 = dma.hbm_to_vmem [thread:$0]  %s6921_s6, 32, %s88_s9, [#allocation8], %s6038_s22, %s6038_s22, %s6039_s2  }
  0x74   :  { %s6046_s25 = smov [#allocation12]   ;;  %s6047_s3 = smov [#allocation15]  }
  0x75   :  { %s111_s12 = sshll.u32 %s6046_s25, 4  ;;  %s135_s26 = sshll.u32 %s6047_s3, 4  ;;  %s112_s12 = int_to_ptr.vmem [resolvable:$true] %s111_s12  ;;  %s136_s26 = int_to_ptr.vmem [resolvable:$true] %s135_s26 }
  0x76   :  { %s5924_s4 = scalar_lea.vmem %s112_s12, 32  ;;  %p5929_p9 = scmp.lt.s32.totalorder %s112_s12, %s112_s12 }
  0x77   :  { %p5925_p8 = scmp.ne.s32.totalorder %s112_s12, %s5924_s4  ;;  %p5930_p10 = scmp.lt.s32.totalorder %s5924_s4, %s5924_s4 }
  0x79   :  { %p5931_p11 = por %p5930_p10, %p5929_p9 }
  0x7b   :  { %p5932_p12 = pnand %p5931_p11, %p5925_p8 }
  0x7d   :  { %5935 = shalt.err (!%p5932_p12)
}
  0x7e   :  { %117 = dma.hbm_to_vmem [thread:$0]  %s6923_s8, 32, %s112_s12, [#allocation11], %s6038_s22, %s6038_s22, %s6039_s2  }
  0x7f   :  { %s5944_s6 = scalar_lea.vmem %s136_s26, 32  ;;  %p5949_p0 = scmp.lt.s32.totalorder %s136_s26, %s136_s26 }
  0x80   :  { %p5945_p13 = scmp.ne.s32.totalorder %s136_s26, %s5944_s6  ;;  %p5950_p1 = scmp.lt.s32.totalorder %s5944_s6, %s5944_s6 }
  0x82   :  { %p5951_p2 = por %p5950_p1, %p5949_p0 }
  0x84   :  { %p5952_p3 = pnand %p5951_p2, %p5945_p13 }
  0x86   :  { %5955 = shalt.err (!%p5952_p3)
}
  0x87   :  { %141 = dma.hbm_to_vmem [thread:$0]  %s6925_s10, 32, %s136_s26, [#allocation14], %s6038_s22, %s6038_s22, %s6039_s2  }
  0x88   :  { %s6048_s7 = smov [#allocation18]   ;;  %s6049_s20 = smov [#allocation21]  }
  0x89   :  { %s161_s29 = sshll.u32 %s6048_s7, 4  ;;  %s185_s9 = sshll.u32 %s6049_s20, 4  ;;  %s162_s29 = int_to_ptr.vmem [resolvable:$true] %s161_s29  ;;  %s186_s9 = int_to_ptr.vmem [resolvable:$true] %s185_s9 }
  0x8a   :  { %s5964_s8 = scalar_lea.vmem %s162_s29, 32  ;;  %p5969_p5 = scmp.lt.s32.totalorder %s162_s29, %s162_s29 }
  0x8b   :  { %p5965_p4 = scmp.ne.s32.totalorder %s162_s29, %s5964_s8  ;;  %p5970_p6 = scmp.lt.s32.totalorder %s5964_s8, %s5964_s8 }
  0x8d   :  { %p5971_p7 = por %p5970_p6, %p5969_p5 }
  0x8f   :  { %p5972_p8 = pnand %p5971_p7, %p5965_p4 }
  0x91   :  { %5975 = shalt.err (!%p5972_p8)
}
  0x92   :  { %167 = dma.hbm_to_vmem [thread:$0]  %s6928_s13, 32, %s162_s29, [#allocation17], %s6038_s22, %s6038_s22, %s6039_s2  }
  0x93   :  { %s5984_s10 = scalar_lea.vmem %s186_s9, 2048  ;;  %p5989_p10 = scmp.lt.s32.totalorder %s186_s9, %s186_s9 }
  0x94   :  { %p5985_p9 = scmp.ne.s32.totalorder %s186_s9, %s5984_s10  ;;  %p5990_p11 = scmp.lt.s32.totalorder %s5984_s10, %s5984_s10 }
  0x96   :  { %p5991_p12 = por %p5990_p11, %p5989_p10 }
  0x98   :  { %p5992_p13 = pnand %p5991_p12, %p5985_p9 }
  0x9a   :  { %5995 = shalt.err (!%p5992_p13)
}
  0x9b   :  { %s6050_s30 = smov 512   ;;  %s6051_s23 = smov 32  }
  0x9c   :  { %191 = dma.hbm_to_vmem [thread:$0]  %s6930_s15, 2048, %s186_s9, [#allocation20], %s6050_s30, %s6050_s30, %s6051_s23  }
  0x9d   :  { %s6052_s25 = smov [#allocation24]  }
  0x9e   :  { %s210_s12 = sshll.u32 %s6052_s25, 4  ;;  %s211_s12 = int_to_ptr.vmem [resolvable:$true] %s210_s12 }
  0x9f   :  { %s6004_s3 = scalar_lea.vmem %s211_s12, 16  ;;  %s6008_s26 = scalar_lea.vmem %s211_s12, 32 }
  0xa0   :  { %p6005_p0 = scmp.ne.s32.totalorder %s211_s12, %s6004_s3  ;;  %p6009_p1 = scmp.lt.s32.totalorder %s211_s12, %s211_s12 }
  0xa1   :  { %p6010_p2 = scmp.lt.s32.totalorder %s6008_s26, %s6004_s3 }
  0xa3   :  { %p6011_p3 = por %p6010_p2, %p6009_p1 }
  0xa5   :  { %p6012_p4 = pnand %p6011_p3, %p6005_p0 }
  0xa7   :  { %6015 = shalt.err (!%p6012_p4)
}
  0xa8   :  { %213 = dma.hbm_to_vmem [thread:$0]  %s6933_s18, 16, %s211_s12, [#allocation23]  }
  0xa9   :  { %6016 = dma.done.wait [#allocation3], 128  }
  0xaa   :  { %6017 = vsyncadd [#allocation3], 4294967168 }
  0xab   :  { %6018 = dma.done.wait [#allocation5], 544  }
  0xac   :  { %6019 = vsyncadd [#allocation5], 4294966752 }
  0xad   :  { %6020 = dma.done.wait [#allocation8], 544  }
  0xae   :  { %6021 = vsyncadd [#allocation8], 4294966752 }
  0xaf   :  { %6022 = dma.done.wait [#allocation11], 64  }
  0xb0   :  { %6023 = vsyncadd [#allocation11], 4294967232 }
  0xb1   :  { %6024 = dma.done.wait [#allocation14], 544  }
  0xb2   :  { %6025 = vsyncadd [#allocation14], 4294966752 }
  0xb3   :  { %6026 = dma.done.wait [#allocation17], 64  }
  0xb4   :  { %6027 = vsyncadd [#allocation17], 4294967232 }
  0xb5   :  { %6028 = dma.done.wait [#allocation20], 2080  }
  0xb6   :  { %6029 = vsyncadd [#allocation20], 4294965216 }
  0xb7   :  { %6030 = dma.done.wait [#allocation23], 144  }
  0xb8   :  { %6031 = vsyncadd [#allocation23], 4294967152  ;;  %v6053_v0 = vmov 0.0   ;;  %vm6054_vm0 = vmmov 0   ;;  %s6943_s4 = sld [smem:[#allocation35_spill]]  ;;  %vm279_vm1 = vcmask 261120  }
  0xb9   :  { %5240 = vmatprep.subr.bf16.mxu0 %v6053_v0  ;;  %5244 = vmatprep.mubr.msk.bf16.mxu0 %vm6054_vm0, %v6053_v0  ;;  %s6944_s0 = sld [smem:[#allocation33_spill]]  ;;  %v5548_v6 = vld [vmem:[#allocation4 + $0x8] sm:$0xff]   ;;  %v5549_v7 = vld [vmem:[#allocation4] sm:$0xff]   ;;  %v324_v9 = vld [vmem:[#allocation2] sm:$0xff]  ;;  %s6055_s20 = smov 96   ;;  %vm398_vm2 = vcmask 64512  }
  0xba   :  { %5248 = vmatprep.subr.bf16.mxu1 %v6053_v0  ;;  %5252 = vmatprep.mubr.msk.bf16.mxu1 %vm6054_vm0, %v6053_v0  ;;  %v4872_v16 = vld [vmem:[#allocation6] ss:$0 sm:$0xff]  ;;  %s6056_s9 = smov 88   ;;  %s6057_s8 = smov 120   ;;  %vm1748_vm3 = vcmask 130048   ;;  %vm1751_vm4 = vcmask 195584  }
  0xbb   :  { %5249 = vmatpush3.bf16.msra.mxu1 %v5548_v6  ;;  %s6058_s1 = smov 56   ;;  %s6059_s16 = smov 80   ;;  %vm1979_vm5 = vcmask 523264   ;;  %vm3901_vm6 = vcmask 1041409  }
  0xbc   :  { %5250 = vmatprep.subr.bf16.mxu1 %v6053_v0  ;;  %s6060_s10 = smov 112   ;;  %s6061_s30 = smov 48  }
  0xbd   :  { %s6062_s23 = smov 72   ;;  %s6063_s5 = smov 104  }
  0xbe   :  { %v5546_v1 = vld [vmem:[%s6943_s4 + $0x8] sm:$0xff]   ;;  %v5547_v2 = vld [vmem:[%s6943_s4] sm:$0xff]   ;;  %s6064_s24 = smov 40   ;;  %s6065_s25 = smov 8  }
  0xbf   :  { %5241 = vmatpush3.bf16.msra.mxu0 %v5546_v1  ;;  %v260_v3 = vld [vmem:[%s6944_s0] sm:$0xff]  ;;  %v261_v4 = vld [vmem:[%s6944_s0 + $0x8] sm:$0xff]  ;;  %5251 = vmatpush3.bf16.msra.mxu1 %v5549_v7  ;;  %s6066_s12 = smov 24  }
  0xc0   :  { %5242 = vmatprep.subr.bf16.mxu0 %v6053_v0  ;;  %v266_v5 = vpack.c.bf16 %v261_v4, %v260_v3  ;;  %5261 = vmatprep.subr.mxu1 %v6053_v0 }
  0xc3   :  { %5243 = vmatpush3.bf16.msra.mxu0 %v5547_v2 }
  0xc4   :  { %5256 = vmatprep.subr.mxu0 %v6053_v0 }
  0xc6   :  { %5245 = vmatmul.mubr.msk.bf16.vlgmr.msra.gmra.mxu0 %vm279_vm1, %v266_v5 }
  0xc7   :  { %5258 = vmatprep.mubr.msk.f32.mxu0 %vm6054_vm0, %v6053_v0 }
 0x186   :  { %v317_v8 = vpop.f32.mrf.mxu0 }
 0x187   :  { %v6271_v12 = vadd.f32 %v324_v9, %v317_v8 }
 0x188   :  { %v5246_v10 = vpop.f32.mrf.mxu0 }
 0x18a   :  { %v320_v11 = vpop.f32.mrf.mxu0 }
 0x18b   :  { %v6273_v13 = vadd.f32 %v324_v9, %v320_v11 }
 0x18c   :  { %v5247_v14 = vpop.f32.mrf.mxu0 }
 0x18d   :  { %v331_v15 = vpack.c.bf16 %v6273_v13, %v6271_v12 }
 0x18f   :  { %5253 = vmatmul.mubr.msk.bf16.vlgmr.msra.gmra.mxu1 %vm279_vm1, %v331_v15 }
 0x190   :  { %5263 = vmatprep.mubr.msk.f32.mxu1 %vm6054_vm0, %v6053_v0 }
 0x24f   :  { %v388_v17 = vpop.f32.mrf.mxu1 }
 0x250   :  { %v6280_v18 = vadd.f32 %v4872_v16, %v388_v17 }
 0x251   :  { %v5254_v19 = vpop.f32.mrf.mxu1 }
 0x252   :  { %396 = vrot.lane.b32.xlu0 %v6280_v18, %s6055_s20 }
 0x253   :  { %v391_v20 = vpop.f32.mrf.mxu1 }
 0x254   :  { %v6284_v21 = vadd.f32 %v4872_v16, %v391_v20 }
 0x255   :  { %v5255_v22 = vpop.f32.mrf.mxu1 }
 0x256   :  { %474 = vrot.lane.b32.xlu0 %v6284_v21, %s6055_s20 }
 0x2c4   :  { %v397_v23 = vpop.permute.xlu0 %396 }
 0x2c5   :  { %5257 = vmatpush3.xpose.msk.msra.mxu0 %vm398_vm2, %v397_v23 }
 0x2c6   :  { %5266 = vmatprep.subr.mxu0 %v6053_v0 }
 0x2c8   :  { %5259 = vmatmul.mubr.msk.f32.vlgmr.msra.gmra.mxu0 %vm398_vm2, %v6280_v18  ;;  %v475_v24 = vpop.permute.xlu0 %474 }
 0x2c9   :  { %5262 = vmatpush3.xpose.msk.msra.mxu1 %vm398_vm2, %v475_v24  ;;  %5268 = vmatprep.mubr.msk.f32.mxu0 %vm6054_vm0, %v6053_v0 }
 0x2ca   :  { %5271 = vmatprep.subr.mxu1 %v6053_v0 }
 0x2cc   :  { %5264 = vmatmul.mubr.msk.f32.vlgmr.msra.gmra.mxu1 %vm398_vm2, %v6284_v21 }
 0x2cd   :  { %5273 = vmatprep.mubr.msk.f32.mxu1 %vm6054_vm0, %v6053_v0 }
 0x388   :  { %v469_v25 = vpop.f32.mrf.mxu0 }
 0x389   :  { %v550_v26 = vmul.f32 0.35355338, %v469_v25 }
 0x38a   :  { %v5260_v27 = vpop.f32.mrf.mxu0 }
 0x38b   :  { %v552_v28 = vsel %vm398_vm2, %v550_v26, -inf }
 0x38c   :  { %v546_v29 = vpop.f32.mrf.mxu1  ;;  %553 = vmax.xlane.f32.xlu1 %v552_v28 }
 0x38d   :  { %v551_v30 = vmul.f32 0.35355338, %v546_v29 }
 0x38e   :  { %v5265_v31 = vpop.f32.mrf.mxu1 }
 0x38f   :  { %v555_v32 = vsel %vm398_vm2, %v551_v30, -inf }
 0x390   :  { %556 = vmax.xlane.f32.xlu1 %v555_v32 }
 0x3a1   :  { %574 = vrot.lane.b32.xlu1 %v6280_v18, %s6033_s21 }
 0x3a5   :  { %650 = vrot.lane.b32.xlu1 %v6284_v21, %s6033_s21 }
 0x3a9   :  { %728 = vrot.lane.b32.xlu1 %v6280_v18, %s6056_s9 }
 0x3ad   :  { %806 = vrot.lane.b32.xlu1 %v6284_v21, %s6056_s9 }
 0x415   :  { %v554_v33 = vpop.xlane.xlu1 %553 }
 0x416   :  { %v558_v34 = vsub.f32 %v550_v26, %v554_v33 }
 0x418   :  { %v560_v35 = vmul.f32 1.442695, %v558_v34 }
 0x419   :  { %v557_v36 = vpop.xlane.xlu1 %556 }
 0x41a   :  { %5632 = vpow2.f32 %v560_v35  ;;  %v559_v37 = vsub.f32 %v551_v30, %v557_v36 }
 0x41c   :  { %v562_v38 = vmul.f32 1.442695, %v559_v37 }
 0x41d   :  { %v575_v39 = vpop.permute.xlu1 %574 }
 0x41e   :  { %5634 = vpow2.f32 %v562_v38  ;;  %5267 = vmatpush3.msra.mxu0 %v575_v39 }
 0x41f   :  { %5276 = vmatprep.subr.mxu0 %v6053_v0 }
 0x421   :  { %v651_v40 = vpop.permute.xlu1 %650 }
 0x422   :  { %5272 = vmatpush3.msra.mxu1 %v651_v40 }
 0x423   :  { %5281 = vmatprep.subr.mxu1 %v6053_v0 }
 0x425   :  { %v729_v45 = vpop.permute.xlu1 %728 }
 0x427   :  { %v5633_v41 = vpop.eup %5632 }
 0x428   :  { %v564_v42 = vsel %vm398_vm2, %v5633_v41, 0.0 }
 0x429   :  { %565 = vadd.xlane.f32.xlu0 %v564_v42  ;;  %v807_v46 = vpop.permute.xlu1 %806 }
 0x42b   :  { %v5635_v43 = vpop.eup %5634 }
 0x42c   :  { %v567_v44 = vsel %vm398_vm2, %v5635_v43, 0.0 }
 0x42d   :  { %568 = vadd.xlane.f32.xlu1 %v567_v44 }
 0x43e   :  { %804 = vrot.lane.b32.xlu1 %v6284_v21, %s6057_s8 }
 0x43f   :  { %726 = vrot.lane.b32.xlu0 %v6280_v18, %s6057_s8 }
 0x4b2   :  { %v566_v47 = vpop.xlane.xlu0 %565 }
 0x4b3   :  { %5636 = vrcp.f32 %v566_v47 }
 0x4b6   :  { %v569_v48 = vpop.xlane.xlu1 %568  ;;  %v727_v53 = vpop.permute.xlu0 %726 }
 0x4b7   :  { %5638 = vrcp.f32 %v569_v48 }
 0x4ba   :  { %v805_v54 = vpop.permute.xlu1 %804 }
 0x4c0   :  { %v5637_v49 = vpop.eup %5636 }
 0x4c1   :  { %v572_v50 = vmul.f32 %v5637_v49, %v5633_v41 }
 0x4c3   :  { %5269 = vmatmul.mubr.msk.f32.vlgmr.msra.gmra.mxu0 %vm398_vm2, %v572_v50 }
 0x4c4   :  { %v5639_v51 = vpop.eup %5638  ;;  %5277 = vmatpush3.xpose.msk.msra.mxu0 %vm398_vm2, %v729_v45  ;;  %5278 = vmatprep.mubr.msk.f32.mxu0 %vm6054_vm0, %v6053_v0 }
 0x4c5   :  { %v573_v52 = vmul.f32 %v5639_v51, %v5635_v43  ;;  %5286 = vmatprep.subr.mxu0 %v6053_v0 }
 0x4c7   :  { %5274 = vmatmul.mubr.msk.f32.vlgmr.msra.gmra.mxu1 %vm398_vm2, %v573_v52  ;;  %5279 = vmatmul.mubr.msk.f32.vlgmr.msra.gmra.mxu0 %vm398_vm2, %v727_v53 }
 0x4c8   :  { %5282 = vmatpush3.xpose.msk.msra.mxu1 %vm398_vm2, %v807_v46  ;;  %5283 = vmatprep.mubr.msk.f32.mxu1 %vm6054_vm0, %v6053_v0 }
 0x4c9   :  { %5291 = vmatprep.subr.mxu1 %v6053_v0  ;;  %5288 = vmatprep.mubr.msk.f32.mxu0 %vm6054_vm0, %v6053_v0 }
 0x4cb   :  { %5284 = vmatmul.mubr.msk.f32.vlgmr.msra.gmra.mxu1 %vm398_vm2, %v805_v54 }
 0x4cc   :  { %5293 = vmatprep.mubr.msk.f32.mxu1 %vm6054_vm0, %v6053_v0 }
 0x583   :  { %v6334_v55 = vpop.f32.mrf.mxu0 }
 0x585   :  { %v5270_v56 = vpop.f32.mrf.mxu0 }
 0x587   :  { %v6336_v57 = vpop.f32.mrf.mxu1  ;;  %v800_v58 = vpop.f32.mrf.mxu0 }
 0x588   :  { %v882_v59 = vmul.f32 0.35355338, %v800_v58 }
 0x589   :  { %v5275_v60 = vpop.f32.mrf.mxu1  ;;  %v5280_v61 = vpop.f32.mrf.mxu0 }
 0x58a   :  { %v884_v62 = vsel %vm398_vm2, %v882_v59, -inf }
 0x58b   :  { %v878_v63 = vpop.f32.mrf.mxu1  ;;  %885 = vmax.xlane.f32.xlu1 %v884_v62 }
 0x58c   :  { %v883_v1 = vmul.f32 0.35355338, %v878_v63 }
 0x58d   :  { %v5285_v2 = vpop.f32.mrf.mxu1 }
 0x58e   :  { %v887_v3 = vsel %vm398_vm2, %v883_v1, -inf }
 0x58f   :  { %888 = vmax.xlane.f32.xlu0 %v887_v3 }
 0x59c   :  { %906 = vrot.lane.b32.xlu1 %v6280_v18, %s6058_s1 }
 0x5a0   :  { %1060 = vrot.lane.b32.xlu1 %v6280_v18, %s6059_s16 }
 0x5a4   :  { %1138 = vrot.lane.b32.xlu1 %v6284_v21, %s6059_s16 }
 0x5a5   :  { %982 = vrot.lane.b32.xlu0 %v6284_v21, %s6058_s1 }
 0x5a9   :  { %1058 = vrot.lane.b32.xlu0 %v6280_v18, %s6060_s10 }
 0x614   :  { %v886_v4 = vpop.xlane.xlu1 %885 }
 0x615   :  { %v890_v5 = vsub.f32 %v882_v59, %v886_v4 }
 0x617   :  { %v892_v6 = vmul.f32 1.442695, %v890_v5 }
 0x618   :  { %v889_v7 = vpop.xlane.xlu0 %888  ;;  %v907_v8 = vpop.permute.xlu1 %906 }
 0x619   :  { %5640 = vpow2.f32 %v892_v6  ;;  %v891_v9 = vsub.f32 %v883_v1, %v889_v7  ;;  %5287 = vmatpush3.msra.mxu0 %v907_v8 }
 0x61a   :  { %5296 = vmatprep.subr.mxu0 %v6053_v0 }
 0x61b   :  { %v894_v10 = vmul.f32 1.442695, %v891_v9 }
 0x61c   :  { %v983_v11 = vpop.permute.xlu0 %982  ;;  %v1061_v19 = vpop.permute.xlu1 %1060 }
 0x61d   :  { %5642 = vpow2.f32 %v894_v10  ;;  %5292 = vmatpush3.msra.mxu1 %v983_v11 }
 0x61e   :  { %5301 = vmatprep.subr.mxu1 %v6053_v0 }
 0x620   :  { %v1139_v20 = vpop.permute.xlu1 %1138  ;;  %v1059_v28 = vpop.permute.xlu0 %1058 }
 0x626   :  { %v5641_v14 = vpop.eup %5640 }
 0x627   :  { %v896_v15 = vsel %vm398_vm2, %v5641_v14, 0.0 }
 0x628   :  { %897 = vadd.xlane.f32.xlu1 %v896_v15 }
 0x62a   :  { %v5643_v16 = vpop.eup %5642 }
 0x62b   :  { %v899_v17 = vsel %vm398_vm2, %v5643_v16, 0.0 }
 0x62c   :  { %900 = vadd.xlane.f32.xlu1 %v899_v17 }
 0x63d   :  { %1136 = vrot.lane.b32.xlu1 %v6284_v21, %s6060_s10 }
 0x6b1   :  { %v898_v22 = vpop.xlane.xlu1 %897 }
 0x6b2   :  { %5644 = vrcp.f32 %v898_v22 }
 0x6b5   :  { %v901_v23 = vpop.xlane.xlu1 %900 }
 0x6b6   :  { %5646 = vrcp.f32 %v901_v23 }
 0x6b9   :  { %v1137_v29 = vpop.permute.xlu1 %1136 }
 0x6bf   :  { %v5645_v24 = vpop.eup %5644 }
 0x6c0   :  { %v904_v25 = vmul.f32 %v5645_v24, %v5641_v14 }
 0x6c2   :  { %5289 = vmatmul.mubr.msk.f32.vlgmr.msra.gmra.mxu0 %vm398_vm2, %v904_v25 }
 0x6c3   :  { %v5647_v26 = vpop.eup %5646  ;;  %5297 = vmatpush3.xpose.msk.msra.mxu0 %vm398_vm2, %v1061_v19  ;;  %5298 = vmatprep.mubr.msk.f32.mxu0 %vm6054_vm0, %v6053_v0 }
 0x6c4   :  { %v905_v27 = vmul.f32 %v5647_v26, %v5643_v16  ;;  %5306 = vmatprep.subr.mxu0 %v6053_v0 }
 0x6c6   :  { %5294 = vmatmul.mubr.msk.f32.vlgmr.msra.gmra.mxu1 %vm398_vm2, %v905_v27  ;;  %5299 = vmatmul.mubr.msk.f32.vlgmr.msra.gmra.mxu0 %vm398_vm2, %v1059_v28 }
 0x6c7   :  { %5302 = vmatpush3.xpose.msk.msra.mxu1 %vm398_vm2, %v1139_v20  ;;  %5303 = vmatprep.mubr.msk.f32.mxu1 %vm6054_vm0, %v6053_v0 }
 0x6c8   :  { %5311 = vmatprep.subr.mxu1 %v6053_v0  ;;  %5308 = vmatprep.mubr.msk.f32.mxu0 %vm6054_vm0, %v6053_v0 }
 0x6ca   :  { %5304 = vmatmul.mubr.msk.f32.vlgmr.msra.gmra.mxu1 %vm398_vm2, %v1137_v29 }
 0x6cb   :  { %5313 = vmatprep.mubr.msk.f32.mxu1 %vm6054_vm0, %v6053_v0 }
 0x782   :  { %v6372_v30 = vpop.f32.mrf.mxu0 }
 0x784   :  { %v5290_v31 = vpop.f32.mrf.mxu0 }
 0x786   :  { %v6374_v32 = vpop.f32.mrf.mxu1  ;;  %v1132_v33 = vpop.f32.mrf.mxu0 }
 0x787   :  { %v5516_v34 = vpack.i.bf16 %v6374_v32, %v6372_v30  ;;  %v1214_v35 = vmul.f32 0.35355338, %v1132_v33 }
 0x788   :  { %v5295_v36 = vpop.f32.mrf.mxu1  ;;  %v5300_v37 = vpop.f32.mrf.mxu0 }
 0x789   :  { %v1216_v38 = vsel %vm398_vm2, %v1214_v35, -inf }
 0x78a   :  { %v1210_v39 = vpop.f32.mrf.mxu1  ;;  %1217 = vmax.xlane.f32.xlu0 %v1216_v38  ;;  %v5551_v38 = vld [vmem:[#allocation7] sm:$0xff]  }
 0x78b   :  { %v1215_v40 = vmul.f32 0.35355338, %v1210_v39 }
 0x78c   :  { %v5305_v41 = vpop.f32.mrf.mxu1 }
 0x78d   :  { %v1219_v42 = vsel %vm398_vm2, %v1215_v40, -inf }
 0x78e   :  { %1220 = vmax.xlane.f32.xlu1 %v1219_v42 }
 0x79f   :  { %1238 = vrot.lane.b32.xlu1 %v6280_v18, %s6061_s30 }
 0x7a3   :  { %1392 = vrot.lane.b32.xlu1 %v6280_v18, %s6062_s23 }
 0x7a7   :  { %1470 = vrot.lane.b32.xlu1 %v6284_v21, %s6062_s23 }
 0x7ab   :  { %1468 = vrot.lane.b32.xlu1 %v6284_v21, %s6063_s5 }
 0x813   :  { %v1218_v43 = vpop.xlane.xlu0 %1217 }
 0x814   :  { %v1222_v44 = vsub.f32 %v1214_v35, %v1218_v43 }
 0x816   :  { %v1224_v45 = vmul.f32 1.442695, %v1222_v44 }
 0x817   :  { %v1221_v46 = vpop.xlane.xlu1 %1220 }
 0x818   :  { %5648 = vpow2.f32 %v1224_v45  ;;  %v1223_v47 = vsub.f32 %v1215_v40, %v1221_v46 }
 0x81a   :  { %v1226_v48 = vmul.f32 1.442695, %v1223_v47 }
 0x81b   :  { %v1239_v49 = vpop.permute.xlu1 %1238 }
 0x81c   :  { %5650 = vpow2.f32 %v1226_v48  ;;  %5307 = vmatpush3.msra.mxu0 %v1239_v49 }
 0x81d   :  { %5316 = vmatprep.subr.mxu0 %v6053_v0 }
 0x81f   :  { %v1393_v59 = vpop.permute.xlu1 %1392 }
 0x823   :  { %v1471_v63 = vpop.permute.xlu1 %1470 }
 0x825   :  { %v5649_v50 = vpop.eup %5648 }
 0x826   :  { %v1228_v51 = vsel %vm398_vm2, %v5649_v50, 0.0 }
 0x827   :  { %1229 = vadd.xlane.f32.xlu0 %v1228_v51  ;;  %v1469_v3 = vpop.permute.xlu1 %1468 }
 0x829   :  { %v5651_v52 = vpop.eup %5650 }
 0x82a   :  { %v1231_v53 = vsel %vm398_vm2, %v5651_v52, 0.0 }
 0x82b   :  { %1232 = vadd.xlane.f32.xlu0 %v1231_v53 }
 0x841   :  { %1314 = vrot.lane.b32.xlu0 %v6284_v21, %s6061_s30 }
 0x845   :  { %1390 = vrot.lane.b32.xlu0 %v6280_v18, %s6063_s5 }
 0x8b0   :  { %v1230_v54 = vpop.xlane.xlu0 %1229 }
 0x8b1   :  { %5652 = vrcp.f32 %v1230_v54 }
 0x8b4   :  { %v1233_v56 = vpop.xlane.xlu0 %1232 }
 0x8b5   :  { %5654 = vrcp.f32 %v1233_v56 }
 0x8b8   :  { %v1315_v58 = vpop.permute.xlu0 %1314 }
 0x8b9   :  { %5312 = vmatpush3.msra.mxu1 %v1315_v58 }
 0x8ba   :  { %5321 = vmatprep.subr.mxu1 %v6053_v0 }
 0x8bc   :  { %v1391_v2 = vpop.permute.xlu0 %1390 }
 0x8be   :  { %v5653_v60 = vpop.eup %5652 }
 0x8bf   :  { %v1236_v61 = vmul.f32 %v5653_v60, %v5649_v50 }
 0x8c1   :  { %5309 = vmatmul.mubr.msk.f32.vlgmr.msra.gmra.mxu0 %vm398_vm2, %v1236_v61 }
 0x8c2   :  { %v5655_v62 = vpop.eup %5654  ;;  %5317 = vmatpush3.xpose.msk.msra.mxu0 %vm398_vm2, %v1393_v59  ;;  %5318 = vmatprep.mubr.msk.f32.mxu0 %vm6054_vm0, %v6053_v0 }
 0x8c3   :  { %v1237_v1 = vmul.f32 %v5655_v62, %v5651_v52  ;;  %5326 = vmatprep.subr.mxu0 %v6053_v0 }
 0x8c5   :  { %5314 = vmatmul.mubr.msk.f32.vlgmr.msra.gmra.mxu1 %vm398_vm2, %v1237_v1  ;;  %5319 = vmatmul.mubr.msk.f32.vlgmr.msra.gmra.mxu0 %vm398_vm2, %v1391_v2 }
 0x8c6   :  { %5322 = vmatpush3.xpose.msk.msra.mxu1 %vm398_vm2, %v1471_v63  ;;  %5323 = vmatprep.mubr.msk.f32.mxu1 %vm6054_vm0, %v6053_v0 }
 0x8c7   :  { %5331 = vmatprep.subr.mxu1 %v6053_v0  ;;  %5328 = vmatprep.mubr.msk.f32.mxu0 %vm6054_vm0, %v6053_v0 }
 0x8c9   :  { %5324 = vmatmul.mubr.msk.f32.vlgmr.msra.gmra.mxu1 %vm398_vm2, %v1469_v3 }
 0x8ca   :  { %5333 = vmatprep.mubr.msk.f32.mxu1 %vm6054_vm0, %v6053_v0 }
 0x981   :  { %v1310_v4 = vpop.f32.mrf.mxu0 }
 0x983   :  { %v5310_v5 = vpop.f32.mrf.mxu0 }
 0x985   :  { %v1386_v6 = vpop.f32.mrf.mxu1  ;;  %v1464_v7 = vpop.f32.mrf.mxu0 }
 0x986   :  { %v1546_v8 = vmul.f32 0.35355338, %v1464_v7  ;;  %v5521_v19 = vpack.i.bf16 %v1386_v6, %v1310_v4 }
 0x987   :  { %v5315_v9 = vpop.f32.mrf.mxu1  ;;  %v5320_v10 = vpop.f32.mrf.mxu0 }
 0x988   :  { %v1548_v11 = vsel %vm398_vm2, %v1546_v8, -inf }
 0x989   :  { %v1542_v14 = vpop.f32.mrf.mxu1  ;;  %1549 = vmax.xlane.f32.xlu0 %v1548_v11 }
 0x98a   :  { %v1547_v15 = vmul.f32 0.35355338, %v1542_v14 }
 0x98b   :  { %v5325_v16 = vpop.f32.mrf.mxu1 }
 0x98c   :  { %v1551_v17 = vsel %vm398_vm2, %v1547_v15, -inf }
 0x98d   :  { %1552 = vmax.xlane.f32.xlu1 %v1551_v17 }
 0x99e   :  { %1570 = vrot.lane.b32.xlu1 %v6280_v18, %s6064_s24 }
 0x9a2   :  { %5517 = vrot.lane.b32.xlu1 %v5516_v34, %s6065_s25 }
 0x9a6   :  { %5522 = vrot.lane.b32.xlu1 %v5521_v19, %s6038_s22 }
 0xa12   :  { %v1550_v20 = vpop.xlane.xlu0 %1549 }
 0xa13   :  { %v1554_v22 = vsub.f32 %v1546_v8, %v1550_v20  ;;  %v5552_v20 = vld [vmem:[#allocation13 + $0x8] sm:$0xff]  }
 0xa15   :  { %v1556_v23 = vmul.f32 1.442695, %v1554_v22  ;;  %v5554_v22 = vld [vmem:[%s6926_s11 + $0x18] sm:$0xff]  }
 0xa16   :  { %v1553_v24 = vpop.xlane.xlu1 %1552 }
 0xa17   :  { %5656 = vpow2.f32 %v1556_v23  ;;  %v1555_v25 = vsub.f32 %v1547_v15, %v1553_v24 }
 0xa19   :  { %v1558_v26 = vmul.f32 1.442695, %v1555_v25 }
 0xa1a   :  { %v1571_v27 = vpop.permute.xlu1 %1570 }
 0xa1b   :  { %5658 = vpow2.f32 %v1558_v26  ;;  %5327 = vmatpush3.msra.mxu0 %v1571_v27 }
 0xa1c   :  { %5336 = vmatprep.subr.bf16.mxu0 %v6053_v0 }
 0xa1e   :  { %v5518_v44 = vpop.permute.xlu1 %5517 }
 0xa1f   :  { %v5520_v46 = vunpack.i.h.bf16 %v5518_v44  ;;  %v5519_v47 = vunpack.i.l.bf16 %v5518_v44 }
 0xa21   :  { %v1747_v51 = vsel %vm398_vm2, %v6336_v57, %v5520_v46  ;;  %v1746_v52 = vsel %vm398_vm2, %v6334_v55, %v5519_v47  ;;  %v4900_v57 = vld [vmem:[#allocation9] ss:$0 sm:$0xff] }
 0xa22   :  { %v5523_v45 = vpop.permute.xlu1 %5522 }
 0xa23   :  { %v5525_v48 = vunpack.i.h.bf16 %v5523_v45  ;;  %v5524_v49 = vunpack.i.l.bf16 %v5523_v45 }
 0xa24   :  { %v5657_v18 = vpop.eup %5656 }
 0xa25   :  { %v1560_v28 = vsel %vm398_vm2, %v5657_v18, 0.0  ;;  %v1750_v56 = vsel %vm1748_vm3, %v1747_v51, %v5525_v48  ;;  %v1749_v58 = vsel %vm1748_vm3, %v1746_v52, %v5524_v49  ;;  %v4910_v51 = vld [vmem:[#allocation16] ss:$0 sm:$0xff] }
 0xa26   :  { %1561 = vadd.xlane.f32.xlu0 %v1560_v28 }
 0xa28   :  { %v5659_v29 = vpop.eup %5658 }
 0xa29   :  { %v1563_v30 = vsel %vm398_vm2, %v5659_v29, 0.0 }
 0xa2a   :  { %1564 = vadd.xlane.f32.xlu0 %v1563_v30  ;;  %v4904_v30 = vld [vmem:[#allocation10] ss:$0 sm:$0xff] }
 0xa40   :  { %1646 = vrot.lane.b32.xlu0 %v6284_v21, %s6064_s24  ;;  %v5550_v21 = vld [vmem:[#allocation7 + $0x8] sm:$0xff]  }
 0xaaf   :  { %v1562_v31 = vpop.xlane.xlu0 %1561 }
 0xab0   :  { %5660 = vrcp.f32 %v1562_v31 }
 0xab3   :  { %v1565_v32 = vpop.xlane.xlu0 %1564 }
 0xab4   :  { %5662 = vrcp.f32 %v1565_v32 }
 0xab7   :  { %v1647_v33 = vpop.permute.xlu0 %1646 }
 0xab8   :  { %5332 = vmatpush3.msra.mxu1 %v1647_v33 }
 0xab9   :  { %5344 = vmatprep.subr.bf16.mxu1 %v6053_v0 }
 0xabd   :  { %v5661_v34 = vpop.eup %5660 }
 0xabe   :  { %v1568_v35 = vmul.f32 %v5661_v34, %v5657_v18  ;;  %v4905_v34 = vld [vmem:[#allocation12] ss:$0 sm:$0xff] }
 0xac0   :  { %5329 = vmatmul.mubr.msk.f32.vlgmr.msra.gmra.mxu0 %vm398_vm2, %v1568_v35 }
 0xac1   :  { %v5663_v36 = vpop.eup %5662  ;;  %5340 = vmatprep.mubr.msk.bf16.mxu0 %vm6054_vm0, %v6053_v0  ;;  %5337 = vmatpush3.bf16.msra.mxu0 %v5550_v21 }
 0xac2   :  { %v1569_v37 = vmul.f32 %v5663_v36, %v5659_v29  ;;  %5338 = vmatprep.subr.bf16.mxu0 %v6053_v0 }
 0xac4   :  { %5334 = vmatmul.mubr.msk.f32.vlgmr.msra.gmra.mxu1 %vm398_vm2, %v1569_v37 }
 0xac5   :  { %5348 = vmatprep.mubr.msk.bf16.mxu1 %vm6054_vm0, %v6053_v0  ;;  %5339 = vmatpush3.bf16.msra.mxu0 %v5551_v38  ;;  %v5555_v38 = vld [vmem:[%s6926_s11 + $0x10] sm:$0xff]  }
 0xac6   :  { %5352 = vmatprep.subr.bf16.mxu0 %v6053_v0  ;;  %5345 = vmatpush3.bf16.msra.mxu1 %v5552_v20 }
 0xac7   :  { %5346 = vmatprep.subr.bf16.mxu1 %v6053_v0 }
 0xb80   :  { %v1642_v39 = vpop.f32.mrf.mxu0 }
 0xb82   :  { %v5330_v40 = vpop.f32.mrf.mxu0 }
 0xb83   :  { %v5557_v40 = vld [vmem:[%s6926_s11] sm:$0xff]  }
 0xb84   :  { %v1718_v41 = vpop.f32.mrf.mxu1 }
 0xb85   :  { %v5526_v42 = vpack.i.bf16 %v1718_v41, %v1642_v39  ;;  %v5556_v39 = vld [vmem:[%s6926_s11 + $0x8] sm:$0xff]   ;;  %v4906_v41 = vld [vmem:[#allocation15] ss:$0 sm:$0xff] }
 0xb86   :  { %v5335_v43 = vpop.f32.mrf.mxu1 }
 0xb87   :  { %5527 = vrot.lane.b32.xlu0 %v5526_v42, %s6066_s12 }
 0xbf9   :  { %v5528_v50 = vpop.permute.xlu0 %5527 }
 0xbfa   :  { %v5530_v53 = vunpack.i.h.bf16 %v5528_v50  ;;  %v5529_v54 = vunpack.i.l.bf16 %v5528_v50 }
 0xbfc   :  { %v1753_v59 = vsel %vm1751_vm4, %v1750_v56, %v5530_v53  ;;  %v1752_v60 = vsel %vm1751_vm4, %v1749_v58, %v5529_v54 }
 0xbfd   :  { %v1758_v61 = vpack.c.bf16 %v1753_v59, %v1752_v60 }
 0xbff   :  { %5341 = vmatmul.mubr.msk.bf16.vlgmr.msra.gmra.mxu0 %vm279_vm1, %v1758_v61 }
 0xc00   :  { %5360 = vmatprep.mubr.msk.bf16.mxu0 %vm6054_vm0, %v6053_v0  ;;  %5353 = vmatpush3.bf16.msra.mxu0 %v5554_v22 }
 0xc01   :  { %5354 = vmatprep.subr.bf16.mxu0 %v6053_v0 }
 0xc04   :  { %5355 = vmatpush3.bf16.msra.mxu0 %v5555_v38 }
 0xc05   :  { %5356 = vmatprep.subr.bf16.mxu0 %v6053_v0 }
 0xc08   :  { %5357 = vmatpush3.bf16.msra.mxu0 %v5556_v39 }
 0xc09   :  { %5358 = vmatprep.subr.bf16.mxu0 %v6053_v0 }
 0xc0c   :  { %5359 = vmatpush3.bf16.msra.mxu0 %v5557_v40 }
 0xc0d   :  { %5382 = vmatprep.subr.mxu0 %v6053_v0 }
 0xcbf   :  { %v1815_v62 = vpop.f32.mrf.mxu0 }
 0xcc0   :  { %v1816_v63 = vadd.f32 %v4900_v57, %v1815_v62 }
 0xcc1   :  { %v5342_v55 = vpop.f32.mrf.mxu0 }
 0xcc2   :  { %v1822_v1 = vadd.f32 %v1816_v63, %v6271_v12 }
 0xcc3   :  { %v1818_v2 = vpop.f32.mrf.mxu0 }
 0xcc4   :  { %v1819_v3 = vadd.f32 %v4900_v57, %v1818_v2  ;;  %v1826_v4 = vsel %vm279_vm1, %v1822_v1, 0.0 }
 0xcc5   :  { %1827 = vadd.xlane.f32.xlu1 %v1826_v4  ;;  %v5343_v5 = vpop.f32.mrf.mxu0 }
 0xcc6   :  { %v1823_v6 = vadd.f32 %v1819_v3, %v6273_v13  ;;  %v5553_v13 = vld [vmem:[#allocation13] sm:$0xff]  }
 0xcc7   :  { %5347 = vmatpush3.bf16.msra.mxu1 %v5553_v13  ;;  %v4916_v13 = vld [vmem:[#allocation18] ss:$0 sm:$0xff] }
 0xcc8   :  { %v1829_v7 = vsel %vm279_vm1, %v1823_v6, 0.0  ;;  %5364 = vmatprep.subr.bf16.mxu1 %v6053_v0 }
 0xcc9   :  { %1830 = vadd.xlane.f32.xlu0 %v1829_v7 }
 0xd4e   :  { %v1828_v8 = vpop.xlane.xlu1 %1827 }
 0xd4f   :  { %v1833_v9 = vmul.f32 0.03125, %v1828_v8 }
 0xd51   :  { %v1835_v10 = vsub.f32 %v1822_v1, %v1833_v9  ;;  %v5558_v9 = vld [vmem:[#allocation4 + $0x18] sm:$0xff]  }
 0xd52   :  { %v1831_v11 = vpop.xlane.xlu0 %1830 }
 0xd53   :  { %v1834_v14 = vmul.f32 0.03125, %v1831_v11  ;;  %v1837_v15 = vmul.f32 %v1835_v10, %v1835_v10 }
 0xd55   :  { %v1836_v16 = vsub.f32 %v1823_v6, %v1834_v14  ;;  %v1839_v12 = vsel %vm279_vm1, %v1837_v15, 0.0 }
 0xd56   :  { %1840 = vadd.xlane.f32.xlu0 %v1839_v12 }
 0xd57   :  { %v1838_v17 = vmul.f32 %v1836_v16, %v1836_v16 }
 0xd59   :  { %v1842_v19 = vsel %vm279_vm1, %v1838_v17, 0.0 }
 0xd5a   :  { %1843 = vadd.xlane.f32.xlu1 %v1842_v19 }
 0xddf   :  { %v1841_v23 = vpop.xlane.xlu0 %1840 }
 0xde0   :  { %v1845_v24 = vmul.f32 0.03125, %v1841_v23 }
 0xde2   :  { %v1847_v25 = vadd.f32 1e-05, %v1845_v24 }
 0xde3   :  { %v1844_v26 = vpop.xlane.xlu1 %1843 }
 0xde4   :  { %5664 = vrsqrt.f32 %v1847_v25  ;;  %v1846_v27 = vmul.f32 0.03125, %v1844_v26  ;;  %v4917_v25 = vld [vmem:[#allocation19] ss:$0 sm:$0xff] }
 0xde6   :  { %v1848_v18 = vadd.f32 1e-05, %v1846_v27 }
 0xde8   :  { %5666 = vrsqrt.f32 %v1848_v18 }
 0xdf1   :  { %v5665_v28 = vpop.eup %5664 }
 0xdf2   :  { %v1851_v29 = vmul.f32 %v5665_v28, %v1835_v10  ;;  %v5559_v10 = vld [vmem:[#allocation4 + $0x10] sm:$0xff]  }
 0xdf4   :  { %v1859_v33 = vmul.f32 %v4904_v30, %v1851_v29  ;;  %v4918_v29 = vld [vmem:[#allocation6 + $0x1] ss:$0 sm:$0xff] }
 0xdf5   :  { %v5667_v31 = vpop.eup %5666 }
 0xdf6   :  { %v1852_v32 = vmul.f32 %v5667_v31, %v1836_v16  ;;  %v1867_v36 = vadd.f32 %v4905_v34, %v1859_v33 }
 0xdf8   :  { %v1860_v35 = vmul.f32 %v4904_v30, %v1852_v32 }
 0xdfa   :  { %v1868_v37 = vadd.f32 %v4905_v34, %v1860_v35 }
 0xdfc   :  { %v1873_v21 = vpack.c.bf16 %v1868_v37, %v1867_v36 }
 0xdfe   :  { %5349 = vmatmul.mubr.msk.bf16.vlgmr.msra.gmra.mxu1 %vm279_vm1, %v1873_v21 }
 0xdff   :  { %5368 = vmatprep.mubr.msk.bf16.mxu1 %vm6054_vm0, %v6053_v0  ;;  %5365 = vmatpush3.bf16.msra.mxu1 %v5558_v9 }
 0xe00   :  { %5366 = vmatprep.subr.bf16.mxu1 %v6053_v0 }
 0xe03   :  { %5367 = vmatpush3.bf16.msra.mxu1 %v5559_v10 }
 0xe04   :  { %5372 = vmatprep.subr.mxu1 %v6053_v0 }
 0xebe   :  { %v1930_v42 = vpop.f32.mrf.mxu1 }
 0xebf   :  { %v1931_v44 = vadd.f32 %v4906_v41, %v1930_v42 }
 0xec0   :  { %v5350_v43 = vpop.f32.mrf.mxu1 }
 0xec1   :  { %v1937_v48 = vmax.f32 %v1931_v44, 0.0 }
 0xec2   :  { %v1933_v45 = vpop.f32.mrf.mxu1 }
 0xec3   :  { %v1934_v46 = vadd.f32 %v4906_v41, %v1933_v45 }
 0xec4   :  { %v5351_v47 = vpop.f32.mrf.mxu1 }
 0xec5   :  { %v1938_v49 = vmax.f32 %v1934_v46, 0.0 }
 0xec7   :  { %v1947_v50 = vpack.c.bf16 %v1938_v49, %v1937_v48 }
 0xec9   :  { %5361 = vmatmul.mubr.msk.bf16.vlgmr.msra.gmra.mxu0 %vm1979_vm5, %v1947_v50 }
 0xeca   :  { %5384 = vmatprep.mubr.msk.f32.mxu0 %vm6054_vm0, %v6053_v0 }
 0xf89   :  { %v2017_v52 = vpop.f32.mrf.mxu0 }
 0xf8a   :  { %v2018_v53 = vadd.f32 %v4910_v51, %v2017_v52 }
 0xf8b   :  { %v5362_v54 = vpop.f32.mrf.mxu0 }
 0xf8c   :  { %v2024_v56 = vadd.f32 %v2018_v53, %v1867_v36 }
 0xf8d   :  { %v2020_v58 = vpop.f32.mrf.mxu0 }
 0xf8e   :  { %v2021_v59 = vadd.f32 %v4910_v51, %v2020_v58  ;;  %v2028_v60 = vsel %vm279_vm1, %v2024_v56, 0.0 }
 0xf8f   :  { %2029 = vadd.xlane.f32.xlu0 %v2028_v60  ;;  %v5363_v61 = vpop.f32.mrf.mxu0 }
 0xf90   :  { %v2025_v57 = vadd.f32 %v2021_v59, %v1868_v37 }
 0xf92   :  { %v2031_v62 = vsel %vm279_vm1, %v2025_v57, 0.0 }
 0xf93   :  { %2032 = vadd.xlane.f32.xlu1 %v2031_v62 }
0x1018   :  { %v2030_v63 = vpop.xlane.xlu0 %2029 }
0x1019   :  { %v2034_v55 = vmul.f32 0.03125, %v2030_v63 }
0x101b   :  { %v2036_v1 = vsub.f32 %v2024_v56, %v2034_v55 }
0x101c   :  { %v2033_v2 = vpop.xlane.xlu1 %2032 }
0x101d   :  { %v2035_v3 = vmul.f32 0.03125, %v2033_v2  ;;  %v2038_v4 = vmul.f32 %v2036_v1, %v2036_v1 }
0x101f   :  { %v2037_v5 = vsub.f32 %v2025_v57, %v2035_v3  ;;  %v2040_v6 = vsel %vm279_vm1, %v2038_v4, 0.0 }
0x1020   :  { %2041 = vadd.xlane.f32.xlu0 %v2040_v6 }
0x1021   :  { %v2039_v7 = vmul.f32 %v2037_v5, %v2037_v5 }
0x1023   :  { %v2043_v8 = vsel %vm279_vm1, %v2039_v7, 0.0 }
0x1024   :  { %2044 = vadd.xlane.f32.xlu1 %v2043_v8 }
0x10a9   :  { %v2042_v11 = vpop.xlane.xlu0 %2041 }
0x10aa   :  { %v2046_v14 = vmul.f32 0.03125, %v2042_v11 }
0x10ac   :  { %v2048_v15 = vadd.f32 1e-05, %v2046_v14 }
0x10ad   :  { %v2045_v16 = vpop.xlane.xlu1 %2044 }
0x10ae   :  { %5668 = vrsqrt.f32 %v2048_v15  ;;  %v2047_v12 = vmul.f32 0.03125, %v2045_v16 }
0x10b0   :  { %v2049_v17 = vadd.f32 1e-05, %v2047_v12 }
0x10b2   :  { %5670 = vrsqrt.f32 %v2049_v17 }
0x10bb   :  { %v5669_v19 = vpop.eup %5668 }
0x10bc   :  { %v2052_v20 = vmul.f32 %v5669_v19, %v2036_v1 }
0x10be   :  { %v2060_v24 = vmul.f32 %v4916_v13, %v2052_v20 }
0x10bf   :  { %v5671_v22 = vpop.eup %5670 }
0x10c0   :  { %v2053_v23 = vmul.f32 %v5671_v22, %v2037_v5  ;;  %v6483_v27 = vadd.f32 %v4917_v25, %v2060_v24 }
0x10c2   :  { %v2061_v26 = vmul.f32 %v4916_v13, %v2053_v23 }
0x10c4   :  { %v6485_v18 = vadd.f32 %v4917_v25, %v2061_v26 }
0x10c6   :  { %v2075_v28 = vpack.c.bf16 %v6485_v18, %v6483_v27 }
0x10c8   :  { %5369 = vmatmul.mubr.msk.bf16.vlgmr.msra.gmra.mxu1 %vm279_vm1, %v2075_v28 }
0x10c9   :  { %5374 = vmatprep.mubr.msk.f32.mxu1 %vm6054_vm0, %v6053_v0 }
0x1188   :  { %v2133_v30 = vpop.f32.mrf.mxu1 }
0x1189   :  { %v6492_v31 = vadd.f32 %v4918_v29, %v2133_v30 }
0x118a   :  { %v5370_v32 = vpop.f32.mrf.mxu1 }
0x118b   :  { %2141 = vrot.lane.b32.xlu0 %v6492_v31, %s6055_s20 }
0x118c   :  { %v2136_v33 = vpop.f32.mrf.mxu1 }
0x118d   :  { %v6496_v34 = vadd.f32 %v4918_v29, %v2136_v33 }
0x118e   :  { %v5371_v35 = vpop.f32.mrf.mxu1 }
0x118f   :  { %2218 = vrot.lane.b32.xlu1 %v6496_v34, %s6055_s20 }
0x11fd   :  { %v2142_v36 = vpop.permute.xlu0 %2141 }
0x11fe   :  { %5373 = vmatpush3.xpose.msk.msra.mxu1 %vm398_vm2, %v2142_v36 }
0x11ff   :  { %5377 = vmatprep.subr.mxu1 %v6053_v0 }
0x1201   :  { %5375 = vmatmul.mubr.msk.f32.vlgmr.msra.gmra.mxu1 %vm398_vm2, %v6492_v31  ;;  %v2219_v37 = vpop.permute.xlu1 %2218 }
0x1202   :  { %5378 = vmatpush3.xpose.msk.msra.mxu1 %vm398_vm2, %v2219_v37  ;;  %5379 = vmatprep.mubr.msk.f32.mxu1 %vm6054_vm0, %v6053_v0 }
0x1203   :  { %5387 = vmatprep.subr.mxu1 %v6053_v0 }
0x1205   :  { %5380 = vmatmul.mubr.msk.f32.vlgmr.msra.gmra.mxu1 %vm398_vm2, %v6496_v34 }
0x1206   :  { %5389 = vmatprep.mubr.msk.f32.mxu1 %vm6054_vm0, %v6053_v0 }
0x12c1   :  { %v2213_v21 = vpop.f32.mrf.mxu1 }
0x12c2   :  { %v2294_v38 = vmul.f32 0.35355338, %v2213_v21 }
0x12c3   :  { %v5376_v39 = vpop.f32.mrf.mxu1 }
0x12c4   :  { %v2296_v40 = vsel %vm398_vm2, %v2294_v38, -inf }
0x12c5   :  { %2297 = vmax.xlane.f32.xlu1 %v2296_v40  ;;  %v2290_v41 = vpop.f32.mrf.mxu1 }
0x12c6   :  { %v2295_v42 = vmul.f32 0.35355338, %v2290_v41 }
0x12c7   :  { %v5381_v43 = vpop.f32.mrf.mxu1 }
0x12c8   :  { %v2299_v44 = vsel %vm398_vm2, %v2295_v42, -inf }
0x12c9   :  { %2300 = vmax.xlane.f32.xlu0 %v2299_v44 }
0x12d6   :  { %2394 = vrot.lane.b32.xlu1 %v6496_v34, %s6033_s21 }
0x12da   :  { %2472 = vrot.lane.b32.xlu1 %v6492_v31, %s6056_s9 }
0x12df   :  { %2318 = vrot.lane.b32.xlu0 %v6492_v31, %s6033_s21 }
0x134e   :  { %v2298_v45 = vpop.xlane.xlu1 %2297 }
0x134f   :  { %v2302_v46 = vsub.f32 %v2294_v38, %v2298_v45 }
0x1351   :  { %v2304_v47 = vmul.f32 1.442695, %v2302_v46 }
0x1352   :  { %v2395_v48 = vpop.permute.xlu1 %2394  ;;  %v2301_v49 = vpop.xlane.xlu0 %2300 }
0x1353   :  { %5672 = vpow2.f32 %v2304_v47  ;;  %v2303_v50 = vsub.f32 %v2295_v42, %v2301_v49  ;;  %5388 = vmatpush3.msra.mxu1 %v2395_v48 }
0x1354   :  { %5397 = vmatprep.subr.mxu1 %v6053_v0 }
0x1355   :  { %v2306_v51 = vmul.f32 1.442695, %v2303_v50 }
0x1356   :  { %v2319_v52 = vpop.permute.xlu0 %2318  ;;  %v2473_v59 = vpop.permute.xlu1 %2472 }
0x1357   :  { %5674 = vpow2.f32 %v2306_v51  ;;  %5383 = vmatpush3.msra.mxu0 %v2319_v52 }
0x1358   :  { %5392 = vmatprep.subr.mxu0 %v6053_v0 }
0x1360   :  { %v5673_v53 = vpop.eup %5672 }
0x1361   :  { %v2308_v54 = vsel %vm398_vm2, %v5673_v53, 0.0 }
0x1362   :  { %2309 = vadd.xlane.f32.xlu0 %v2308_v54 }
0x1364   :  { %v5675_v56 = vpop.eup %5674 }
0x1365   :  { %v2311_v58 = vsel %vm398_vm2, %v5675_v56, 0.0 }
0x1366   :  { %2312 = vadd.xlane.f32.xlu1 %v2311_v58 }
0x1377   :  { %2470 = vrot.lane.b32.xlu1 %v6492_v31, %s6057_s8 }
0x1378   :  { %2550 = vrot.lane.b32.xlu0 %v6496_v34, %s6056_s9 }
0x137c   :  { %2548 = vrot.lane.b32.xlu0 %v6496_v34, %s6057_s8 }
0x13eb   :  { %v2310_v60 = vpop.xlane.xlu0 %2309 }
0x13ec   :  { %5676 = vrcp.f32 %v2310_v60 }
0x13ef   :  { %v2313_v61 = vpop.xlane.xlu1 %2312  ;;  %v2551_v55 = vpop.permute.xlu0 %2550 }
0x13f0   :  { %5678 = vrcp.f32 %v2313_v61 }
0x13f3   :  { %v2471_v2 = vpop.permute.xlu1 %2470  ;;  %v2549_v3 = vpop.permute.xlu0 %2548 }
0x13f9   :  { %v5677_v57 = vpop.eup %5676 }
0x13fa   :  { %v2316_v62 = vmul.f32 %v5677_v57, %v5673_v53 }
0x13fc   :  { %5385 = vmatmul.mubr.msk.f32.vlgmr.msra.gmra.mxu0 %vm398_vm2, %v2316_v62 }
0x13fd   :  { %v5679_v63 = vpop.eup %5678  ;;  %5393 = vmatpush3.xpose.msk.msra.mxu0 %vm398_vm2, %v2473_v59  ;;  %5394 = vmatprep.mubr.msk.f32.mxu0 %vm6054_vm0, %v6053_v0 }
0x13fe   :  { %v2317_v1 = vmul.f32 %v5679_v63, %v5675_v56  ;;  %5402 = vmatprep.subr.mxu0 %v6053_v0 }
0x1400   :  { %5390 = vmatmul.mubr.msk.f32.vlgmr.msra.gmra.mxu1 %vm398_vm2, %v2317_v1  ;;  %5395 = vmatmul.mubr.msk.f32.vlgmr.msra.gmra.mxu0 %vm398_vm2, %v2471_v2 }
0x1401   :  { %5398 = vmatpush3.xpose.msk.msra.mxu1 %vm398_vm2, %v2551_v55  ;;  %5399 = vmatprep.mubr.msk.f32.mxu1 %vm6054_vm0, %v6053_v0 }
0x1402   :  { %5407 = vmatprep.subr.mxu1 %v6053_v0  ;;  %5404 = vmatprep.mubr.msk.f32.mxu0 %vm6054_vm0, %v6053_v0 }
0x1404   :  { %5400 = vmatmul.mubr.msk.f32.vlgmr.msra.gmra.mxu1 %vm398_vm2, %v2549_v3 }
0x1405   :  { %5409 = vmatprep.mubr.msk.f32.mxu1 %vm6054_vm0, %v6053_v0 }
0x14bc   :  { %v6546_v4 = vpop.f32.mrf.mxu0 }
0x14be   :  { %v5386_v5 = vpop.f32.mrf.mxu0 }
0x14c0   :  { %v6548_v6 = vpop.f32.mrf.mxu1  ;;  %v2544_v7 = vpop.f32.mrf.mxu0 }
0x14c1   :  { %v2626_v8 = vmul.f32 0.35355338, %v2544_v7 }
0x14c2   :  { %v5391_v9 = vpop.f32.mrf.mxu1  ;;  %v5396_v10 = vpop.f32.mrf.mxu0 }
0x14c3   :  { %v2628_v11 = vsel %vm398_vm2, %v2626_v8, -inf }
0x14c4   :  { %v2622_v14 = vpop.f32.mrf.mxu1  ;;  %2629 = vmax.xlane.f32.xlu1 %v2628_v11 }
0x14c5   :  { %v2627_v15 = vmul.f32 0.35355338, %v2622_v14 }
0x14c6   :  { %v5401_v16 = vpop.f32.mrf.mxu1 }
0x14c7   :  { %v2631_v12 = vsel %vm398_vm2, %v2627_v15, -inf }
0x14c8   :  { %2632 = vmax.xlane.f32.xlu0 %v2631_v12 }
0x14d5   :  { %2726 = vrot.lane.b32.xlu1 %v6496_v34, %s6058_s1 }
0x14d9   :  { %2804 = vrot.lane.b32.xlu1 %v6492_v31, %s6059_s16 }
0x14de   :  { %2650 = vrot.lane.b32.xlu0 %v6492_v31, %s6058_s1 }
0x154d   :  { %v2630_v17 = vpop.xlane.xlu1 %2629 }
0x154e   :  { %v2634_v19 = vsub.f32 %v2626_v8, %v2630_v17 }
0x1550   :  { %v2636_v20 = vmul.f32 1.442695, %v2634_v19 }
0x1551   :  { %v2633_v13 = vpop.xlane.xlu0 %2632  ;;  %v2727_v22 = vpop.permute.xlu1 %2726 }
0x1552   :  { %5680 = vpow2.f32 %v2636_v20  ;;  %v2635_v23 = vsub.f32 %v2627_v15, %v2633_v13  ;;  %5408 = vmatpush3.msra.mxu1 %v2727_v22 }
0x1553   :  { %5417 = vmatprep.subr.mxu1 %v6053_v0 }
0x1554   :  { %v2638_v24 = vmul.f32 1.442695, %v2635_v23 }
0x1555   :  { %v2651_v25 = vpop.permute.xlu0 %2650  ;;  %v2805_v32 = vpop.permute.xlu1 %2804 }
0x1556   :  { %5682 = vpow2.f32 %v2638_v24  ;;  %5403 = vmatpush3.msra.mxu0 %v2651_v25 }
0x1557   :  { %5412 = vmatprep.subr.mxu0 %v6053_v0 }
0x155f   :  { %v5681_v26 = vpop.eup %5680 }
0x1560   :  { %v2640_v28 = vsel %vm398_vm2, %v5681_v26, 0.0 }
0x1561   :  { %2641 = vadd.xlane.f32.xlu0 %v2640_v28 }
0x1563   :  { %v5683_v29 = vpop.eup %5682 }
0x1564   :  { %v2643_v30 = vsel %vm398_vm2, %v5683_v29, 0.0 }
0x1565   :  { %2644 = vadd.xlane.f32.xlu1 %v2643_v30 }
0x1576   :  { %2802 = vrot.lane.b32.xlu1 %v6492_v31, %s6060_s10 }
0x1577   :  { %2882 = vrot.lane.b32.xlu0 %v6496_v34, %s6059_s16 }
0x157b   :  { %2880 = vrot.lane.b32.xlu0 %v6496_v34, %s6060_s10 }
0x15ea   :  { %v2642_v33 = vpop.xlane.xlu0 %2641 }
0x15eb   :  { %5684 = vrcp.f32 %v2642_v33 }
0x15ee   :  { %v2645_v35 = vpop.xlane.xlu1 %2644  ;;  %v2883_v38 = vpop.permute.xlu0 %2882 }
0x15ef   :  { %5686 = vrcp.f32 %v2645_v35 }
0x15f2   :  { %v2803_v40 = vpop.permute.xlu1 %2802  ;;  %v2881_v41 = vpop.permute.xlu0 %2880 }
0x15f8   :  { %v5685_v36 = vpop.eup %5684 }
0x15f9   :  { %v2648_v37 = vmul.f32 %v5685_v36, %v5681_v26 }
0x15fb   :  { %5405 = vmatmul.mubr.msk.f32.vlgmr.msra.gmra.mxu0 %vm398_vm2, %v2648_v37 }
0x15fc   :  { %v5687_v21 = vpop.eup %5686  ;;  %5413 = vmatpush3.xpose.msk.msra.mxu0 %vm398_vm2, %v2805_v32  ;;  %5414 = vmatprep.mubr.msk.f32.mxu0 %vm6054_vm0, %v6053_v0 }
0x15fd   :  { %v2649_v39 = vmul.f32 %v5687_v21, %v5683_v29  ;;  %5422 = vmatprep.subr.mxu0 %v6053_v0 }
0x15ff   :  { %5410 = vmatmul.mubr.msk.f32.vlgmr.msra.gmra.mxu1 %vm398_vm2, %v2649_v39  ;;  %5415 = vmatmul.mubr.msk.f32.vlgmr.msra.gmra.mxu0 %vm398_vm2, %v2803_v40 }
0x1600   :  { %5418 = vmatpush3.xpose.msk.msra.mxu1 %vm398_vm2, %v2883_v38  ;;  %5419 = vmatprep.mubr.msk.f32.mxu1 %vm6054_vm0, %v6053_v0 }
0x1601   :  { %5427 = vmatprep.subr.mxu1 %v6053_v0  ;;  %5424 = vmatprep.mubr.msk.f32.mxu0 %vm6054_vm0, %v6053_v0 }
0x1603   :  { %5420 = vmatmul.mubr.msk.f32.vlgmr.msra.gmra.mxu1 %vm398_vm2, %v2881_v41 }
0x1604   :  { %5429 = vmatprep.mubr.msk.f32.mxu1 %vm6054_vm0, %v6053_v0 }
0x16bb   :  { %v6584_v42 = vpop.f32.mrf.mxu0 }
0x16bd   :  { %v5406_v43 = vpop.f32.mrf.mxu0 }
0x16bf   :  { %v6586_v44 = vpop.f32.mrf.mxu1  ;;  %v2876_v45 = vpop.f32.mrf.mxu0 }
0x16c0   :  { %v5531_v46 = vpack.i.bf16 %v6586_v44, %v6584_v42  ;;  %v2958_v47 = vmul.f32 0.35355338, %v2876_v45 }
0x16c1   :  { %v5411_v48 = vpop.f32.mrf.mxu1  ;;  %v5416_v49 = vpop.f32.mrf.mxu0 }
0x16c2   :  { %v2960_v50 = vsel %vm398_vm2, %v2958_v47, -inf }
0x16c3   :  { %v2954_v51 = vpop.f32.mrf.mxu1  ;;  %2961 = vmax.xlane.f32.xlu1 %v2960_v50  ;;  %v5561_v50 = vld [vmem:[#allocation7 + $0x10] sm:$0xff]  }
0x16c4   :  { %v2959_v52 = vmul.f32 0.35355338, %v2954_v51 }
0x16c5   :  { %v5421_v53 = vpop.f32.mrf.mxu1 }
0x16c6   :  { %v2963_v54 = vsel %vm398_vm2, %v2959_v52, -inf }
0x16c7   :  { %2964 = vmax.xlane.f32.xlu0 %v2963_v54 }
0x16d4   :  { %3058 = vrot.lane.b32.xlu1 %v6496_v34, %s6061_s30 }
0x16d8   :  { %3136 = vrot.lane.b32.xlu1 %v6492_v31, %s6062_s23 }
0x16dd   :  { %2982 = vrot.lane.b32.xlu0 %v6492_v31, %s6061_s30 }
0x174c   :  { %v2962_v56 = vpop.xlane.xlu1 %2961 }
0x174d   :  { %v2966_v58 = vsub.f32 %v2958_v47, %v2962_v56 }
0x174f   :  { %v2968_v59 = vmul.f32 1.442695, %v2966_v58 }
0x1750   :  { %v2965_v60 = vpop.xlane.xlu0 %2964  ;;  %v3059_v61 = vpop.permute.xlu1 %3058 }
0x1751   :  { %5688 = vpow2.f32 %v2968_v59  ;;  %v2967_v57 = vsub.f32 %v2959_v52, %v2965_v60  ;;  %5428 = vmatpush3.msra.mxu1 %v3059_v61 }
0x1752   :  { %5437 = vmatprep.subr.mxu1 %v6053_v0 }
0x1753   :  { %v2970_v62 = vmul.f32 1.442695, %v2967_v57 }
0x1754   :  { %v2983_v63 = vpop.permute.xlu0 %2982  ;;  %v3137_v5 = vpop.permute.xlu1 %3136 }
0x1755   :  { %5690 = vpow2.f32 %v2970_v62  ;;  %5423 = vmatpush3.msra.mxu0 %v2983_v63 }
0x1756   :  { %5432 = vmatprep.subr.mxu0 %v6053_v0 }
0x175e   :  { %v5689_v55 = vpop.eup %5688 }
0x175f   :  { %v2972_v1 = vsel %vm398_vm2, %v5689_v55, 0.0 }
0x1760   :  { %2973 = vadd.xlane.f32.xlu0 %v2972_v1 }
0x1762   :  { %v5691_v2 = vpop.eup %5690 }
0x1763   :  { %v2975_v3 = vsel %vm398_vm2, %v5691_v2, 0.0 }
0x1764   :  { %2976 = vadd.xlane.f32.xlu1 %v2975_v3 }
0x1775   :  { %3134 = vrot.lane.b32.xlu1 %v6492_v31, %s6063_s5 }
0x1776   :  { %3214 = vrot.lane.b32.xlu0 %v6496_v34, %s6062_s23 }
0x177a   :  { %3212 = vrot.lane.b32.xlu0 %v6496_v34, %s6063_s5 }
0x17e9   :  { %v2974_v7 = vpop.xlane.xlu0 %2973 }
0x17ea   :  { %5692 = vrcp.f32 %v2974_v7 }
0x17ed   :  { %v2977_v8 = vpop.xlane.xlu1 %2976  ;;  %v3215_v14 = vpop.permute.xlu0 %3214 }
0x17ee   :  { %5694 = vrcp.f32 %v2977_v8 }
0x17f1   :  { %v3135_v16 = vpop.permute.xlu1 %3134  ;;  %v3213_v12 = vpop.permute.xlu0 %3212 }
0x17f7   :  { %v5693_v9 = vpop.eup %5692 }
0x17f8   :  { %v2980_v10 = vmul.f32 %v5693_v9, %v5689_v55 }
0x17fa   :  { %5425 = vmatmul.mubr.msk.f32.vlgmr.msra.gmra.mxu0 %vm398_vm2, %v2980_v10 }
0x17fb   :  { %v5695_v11 = vpop.eup %5694  ;;  %5433 = vmatpush3.xpose.msk.msra.mxu0 %vm398_vm2, %v3137_v5  ;;  %5434 = vmatprep.mubr.msk.f32.mxu0 %vm6054_vm0, %v6053_v0 }
0x17fc   :  { %v2981_v15 = vmul.f32 %v5695_v11, %v5691_v2  ;;  %5442 = vmatprep.subr.mxu0 %v6053_v0 }
0x17fe   :  { %5430 = vmatmul.mubr.msk.f32.vlgmr.msra.gmra.mxu1 %vm398_vm2, %v2981_v15  ;;  %5435 = vmatmul.mubr.msk.f32.vlgmr.msra.gmra.mxu0 %vm398_vm2, %v3135_v16 }
0x17ff   :  { %5438 = vmatpush3.xpose.msk.msra.mxu1 %vm398_vm2, %v3215_v14  ;;  %5439 = vmatprep.mubr.msk.f32.mxu1 %vm6054_vm0, %v6053_v0 }
0x1800   :  { %5447 = vmatprep.subr.mxu1 %v6053_v0  ;;  %5444 = vmatprep.mubr.msk.f32.mxu0 %vm6054_vm0, %v6053_v0 }
0x1802   :  { %5440 = vmatmul.mubr.msk.f32.vlgmr.msra.gmra.mxu1 %vm398_vm2, %v3213_v12 }
0x1803   :  { %5449 = vmatprep.mubr.msk.f32.mxu1 %vm6054_vm0, %v6053_v0 }
0x18ba   :  { %v3054_v17 = vpop.f32.mrf.mxu0 }
0x18bc   :  { %v5426_v19 = vpop.f32.mrf.mxu0 }
0x18be   :  { %v3130_v20 = vpop.f32.mrf.mxu1  ;;  %v3208_v13 = vpop.f32.mrf.mxu0 }
0x18bf   :  { %v5536_v22 = vpack.i.bf16 %v3130_v20, %v3054_v17  ;;  %v3290_v23 = vmul.f32 0.35355338, %v3208_v13 }
0x18c0   :  { %v5431_v24 = vpop.f32.mrf.mxu1  ;;  %v5436_v25 = vpop.f32.mrf.mxu0 }
0x18c1   :  { %v3292_v26 = vsel %vm398_vm2, %v3290_v23, -inf }
0x18c2   :  { %v3286_v28 = vpop.f32.mrf.mxu1  ;;  %3293 = vmax.xlane.f32.xlu1 %v3292_v26 }
0x18c3   :  { %v3291_v29 = vmul.f32 0.35355338, %v3286_v28 }
0x18c4   :  { %v5441_v30 = vpop.f32.mrf.mxu1 }
0x18c5   :  { %v3295_v32 = vsel %vm398_vm2, %v3291_v29, -inf }
0x18c6   :  { %3296 = vmax.xlane.f32.xlu0 %v3295_v32 }
0x194b   :  { %v3294_v33 = vpop.xlane.xlu1 %3293 }
0x194c   :  { %v3298_v35 = vsub.f32 %v3290_v23, %v3294_v33  ;;  %v5562_v33 = vld [vmem:[#allocation13 + $0x18] sm:$0xff]  }
0x194e   :  { %v3300_v36 = vmul.f32 1.442695, %v3298_v35  ;;  %v5564_v35 = vld [vmem:[%s6926_s11 + $0x38] sm:$0xff]  }
0x194f   :  { %v3297_v37 = vpop.xlane.xlu0 %3296 }
0x1950   :  { %5696 = vpow2.f32 %v3300_v36  ;;  %v3299_v21 = vsub.f32 %v3291_v29, %v3297_v37 }
0x1952   :  { %v3302_v38 = vmul.f32 1.442695, %v3299_v21 }
0x1954   :  { %5698 = vpow2.f32 %v3302_v38 }
0x195d   :  { %v5697_v39 = vpop.eup %5696 }
0x195e   :  { %v3304_v40 = vsel %vm398_vm2, %v5697_v39, 0.0 }
0x195f   :  { %3305 = vadd.xlane.f32.xlu0 %v3304_v40 }
0x1961   :  { %v5699_v41 = vpop.eup %5698 }
0x1962   :  { %v3307_v43 = vsel %vm398_vm2, %v5699_v41, 0.0 }
0x1963   :  { %3308 = vadd.xlane.f32.xlu1 %v3307_v43 }
0x1974   :  { %3390 = vrot.lane.b32.xlu1 %v6496_v34, %s6064_s24 }
0x1975   :  { %3314 = vrot.lane.b32.xlu0 %v6492_v31, %s6064_s24 }
0x1978   :  { %5532 = vrot.lane.b32.xlu1 %v5531_v46, %s6065_s25  ;;  %v5560_v46 = vld [vmem:[#allocation7 + $0x18] sm:$0xff]  }
0x1979   :  { %5537 = vrot.lane.b32.xlu0 %v5536_v22, %s6038_s22 }
0x19e8   :  { %v3306_v45 = vpop.xlane.xlu0 %3305 }
0x19e9   :  { %5700 = vrcp.f32 %v3306_v45  ;;  %v4950_v45 = vld [vmem:[#allocation10 + $0x1] ss:$0 sm:$0xff] }
0x19ec   :  { %v3315_v47 = vpop.permute.xlu0 %3314  ;;  %v3309_v48 = vpop.xlane.xlu1 %3308 }
0x19ed   :  { %5702 = vrcp.f32 %v3309_v48  ;;  %5443 = vmatpush3.msra.mxu0 %v3315_v47 }
0x19ee   :  { %5452 = vmatprep.subr.bf16.mxu0 %v6053_v0 }
0x19f0   :  { %v3391_v49 = vpop.permute.xlu1 %3390  ;;  %v5538_v61 = vpop.permute.xlu0 %5537 }
0x19f1   :  { %5448 = vmatpush3.msra.mxu1 %v3391_v49  ;;  %v5540_v63 = vunpack.i.h.bf16 %v5538_v61  ;;  %v5539_v55 = vunpack.i.l.bf16 %v5538_v61 }
0x19f2   :  { %5460 = vmatprep.subr.bf16.mxu1 %v6053_v0 }
0x19f4   :  { %v5533_v58 = vpop.permute.xlu1 %5532 }
0x19f5   :  { %v5535_v59 = vunpack.i.h.bf16 %v5533_v58  ;;  %v5534_v60 = vunpack.i.l.bf16 %v5533_v58 }
0x19f6   :  { %v5701_v31 = vpop.eup %5700 }
0x19f7   :  { %v3312_v34 = vmul.f32 %v5701_v31, %v5697_v39  ;;  %v3491_v57 = vsel %vm398_vm2, %v6548_v6, %v5535_v59  ;;  %v3490_v62 = vsel %vm398_vm2, %v6546_v4, %v5534_v60  ;;  %v4946_v4 = vld [vmem:[#allocation9 + $0x1] ss:$0 sm:$0xff]  ;;  %v4951_v31 = vld [vmem:[#allocation12 + $0x1] ss:$0 sm:$0xff] }
0x19f8   :  { %v3492_v5 = vsel %vm1748_vm3, %v3490_v62, %v5539_v55  ;;  %v3493_v7 = vsel %vm1748_vm3, %v3491_v57, %v5540_v63  ;;  %v4964_v55 = vld [vmem:[#allocation16 + $0x1] ss:$0 sm:$0xff] }
0x19f9   :  { %5445 = vmatmul.mubr.msk.f32.vlgmr.msra.gmra.mxu0 %vm398_vm2, %v3312_v34 }
0x19fa   :  { %v5703_v42 = vpop.eup %5702  ;;  %5456 = vmatprep.mubr.msk.bf16.mxu0 %vm6054_vm0, %v6053_v0  ;;  %5453 = vmatpush3.bf16.msra.mxu0 %v5560_v46 }
0x19fb   :  { %v3313_v44 = vmul.f32 %v5703_v42, %v5699_v41  ;;  %5454 = vmatprep.subr.bf16.mxu0 %v6053_v0 }
0x19fd   :  { %5450 = vmatmul.mubr.msk.f32.vlgmr.msra.gmra.mxu1 %vm398_vm2, %v3313_v44 }
0x19fe   :  { %5464 = vmatprep.mubr.msk.bf16.mxu1 %vm6054_vm0, %v6053_v0  ;;  %5455 = vmatpush3.bf16.msra.mxu0 %v5561_v50  ;;  %v5565_v50 = vld [vmem:[%s6926_s11 + $0x30] sm:$0xff]  }
0x19ff   :  { %5468 = vmatprep.subr.bf16.mxu0 %v6053_v0  ;;  %5461 = vmatpush3.bf16.msra.mxu1 %v5562_v33 }
0x1a00   :  { %5462 = vmatprep.subr.bf16.mxu1 %v6053_v0 }
0x1ab9   :  { %v3386_v51 = vpop.f32.mrf.mxu0 }
0x1abb   :  { %v5446_v52 = vpop.f32.mrf.mxu0 }
0x1abc   :  { %v5567_v52 = vld [vmem:[%s6926_s11 + $0x20] sm:$0xff]  }
0x1abd   :  { %v3462_v53 = vpop.f32.mrf.mxu1 }
0x1abe   :  { %v5541_v54 = vpack.i.bf16 %v3462_v53, %v3386_v51  ;;  %v5566_v51 = vld [vmem:[%s6926_s11 + $0x28] sm:$0xff]   ;;  %v4952_v53 = vld [vmem:[#allocation15 + $0x1] ss:$0 sm:$0xff] }
0x1abf   :  { %v5451_v56 = vpop.f32.mrf.mxu1 }
0x1ac0   :  { %5542 = vrot.lane.b32.xlu1 %v5541_v54, %s6066_s12 }
0x1b32   :  { %v5543_v1 = vpop.permute.xlu1 %5542 }
0x1b33   :  { %v5545_v2 = vunpack.i.h.bf16 %v5543_v1  ;;  %v5544_v3 = vunpack.i.l.bf16 %v5543_v1 }
0x1b35   :  { %v3495_v8 = vsel %vm1751_vm4, %v3493_v7, %v5545_v2  ;;  %v3494_v9 = vsel %vm1751_vm4, %v3492_v5, %v5544_v3 }
0x1b36   :  { %v3501_v10 = vpack.c.bf16 %v3495_v8, %v3494_v9 }
0x1b38   :  { %5457 = vmatmul.mubr.msk.bf16.vlgmr.msra.gmra.mxu0 %vm279_vm1, %v3501_v10 }
0x1b39   :  { %5476 = vmatprep.mubr.msk.bf16.mxu0 %vm6054_vm0, %v6053_v0  ;;  %5469 = vmatpush3.bf16.msra.mxu0 %v5564_v35  ;;  %v3839_v35 = vld [vmem:[#allocation21 + $0x10] sm:$0xff] }
0x1b3a   :  { %5470 = vmatprep.subr.bf16.mxu0 %v6053_v0 }
0x1b3d   :  { %5471 = vmatpush3.bf16.msra.mxu0 %v5565_v50 }
0x1b3e   :  { %5472 = vmatprep.subr.bf16.mxu0 %v6053_v0 }
0x1b41   :  { %5473 = vmatpush3.bf16.msra.mxu0 %v5566_v51  ;;  %v4971_v51 = vld [vmem:[#allocation19 + $0x1] ss:$0 sm:$0xff] }
0x1b42   :  { %5474 = vmatprep.subr.bf16.mxu0 %v6053_v0 }
0x1b45   :  { %5475 = vmatpush3.bf16.msra.mxu0 %v5567_v52 }
0x1bf8   :  { %v3559_v6 = vpop.f32.mrf.mxu0 }
0x1bf9   :  { %v3560_v11 = vadd.f32 %v4946_v4, %v3559_v6 }
0x1bfa   :  { %v5458_v14 = vpop.f32.mrf.mxu0 }
0x1bfb   :  { %v3566_v15 = vadd.f32 %v3560_v11, %v6483_v27 }
0x1bfc   :  { %v3562_v16 = vpop.f32.mrf.mxu0 }
0x1bfd   :  { %v3563_v12 = vadd.f32 %v4946_v4, %v3562_v16  ;;  %v3572_v17 = vsel %vm279_vm1, %v3566_v15, 0.0 }
0x1bfe   :  { %3573 = vadd.xlane.f32.xlu0 %v3572_v17  ;;  %v5459_v19 = vpop.f32.mrf.mxu0 }
0x1bff   :  { %v3567_v20 = vadd.f32 %v3563_v12, %v6485_v18  ;;  %v5563_v18 = vld [vmem:[#allocation13 + $0x10] sm:$0xff]  }
0x1c00   :  { %5463 = vmatpush3.bf16.msra.mxu1 %v5563_v18 }
0x1c01   :  { %v3575_v13 = vsel %vm279_vm1, %v3567_v20, 0.0 }
0x1c02   :  { %3576 = vadd.xlane.f32.xlu1 %v3575_v13 }
0x1c87   :  { %v3574_v22 = vpop.xlane.xlu0 %3573 }
0x1c88   :  { %v3578_v23 = vmul.f32 0.03125, %v3574_v22  ;;  %v3845_v22 = vld [vmem:[#allocation21 + $0x40] sm:$0xff] }
0x1c8a   :  { %v3580_v24 = vsub.f32 %v3566_v15, %v3578_v23  ;;  %v3849_v23 = vld [vmem:[#allocation21 + $0x60] sm:$0xff] }
0x1c8b   :  { %v3577_v25 = vpop.xlane.xlu1 %3576 }
0x1c8c   :  { %v3579_v26 = vmul.f32 0.03125, %v3577_v25  ;;  %v3582_v28 = vmul.f32 %v3580_v24, %v3580_v24  ;;  %v4980_v25 = vcombine.low %v3845_v22, %v3849_v23 }
0x1c8e   :  { %v3581_v29 = vsub.f32 %v3567_v20, %v3579_v26  ;;  %v3584_v27 = vsel %vm279_vm1, %v3582_v28, 0.0  ;;  %v4981_v26 = vcombine.high %v3845_v22, %v3849_v23  ;;  %v3851_v28 = vld [vmem:[#allocation21 + $0x70] sm:$0xff]  ;;  %v3848_v22 = vld [vmem:[#allocation21 + $0x58] sm:$0xff] }
0x1c8f   :  { %3585 = vadd.xlane.f32.xlu0 %v3584_v27  ;;  %v3841_v27 = vld [vmem:[#allocation21 + $0x20] sm:$0xff]  ;;  %v3852_v23 = vld [vmem:[#allocation21 + $0x78] sm:$0xff] }
0x1c90   :  { %v3583_v30 = vmul.f32 %v3581_v29, %v3581_v29  ;;  %3999 = vmatprep.subr.bf16.mxu1 %v4981_v26  ;;  %v4987_v26 = vcombine.high %v3848_v22, %v3852_v23 }
0x1c92   :  { %v3587_v32 = vsel %vm279_vm1, %v3583_v30, 0.0  ;;  %v6067_v30 = vmov 0  }
0x1c93   :  { %3588 = vadd.xlane.f32.xlu0 %v3587_v32 }
0x1d18   :  { %v3586_v36 = vpop.xlane.xlu0 %3585 }
0x1d19   :  { %v3590_v37 = vmul.f32 0.03125, %v3586_v36  ;;  %v3843_v36 = vld [vmem:[#allocation21 + $0x30] sm:$0xff] }
0x1d1b   :  { %v3592_v21 = vadd.f32 1e-05, %v3590_v37  ;;  %v4977_v37 = vcombine.high %v3839_v35, %v3843_v36 }
0x1d1c   :  { %v3589_v38 = vpop.xlane.xlu0 %3588 }
0x1d1d   :  { %5704 = vrsqrt.f32 %v3592_v21  ;;  %v3591_v39 = vmul.f32 0.03125, %v3589_v38  ;;  %v4976_v38 = vcombine.low %v3839_v35, %v3843_v36  ;;  %v5574_v35 = vld [vmem:[%s6932_s17 + $0x28] sm:$0xff]   ;;  %v5576_v36 = vld [vmem:[%s6932_s17 + $0x60] sm:$0xff]  }
0x1d1f   :  { %v3593_v40 = vadd.f32 1e-05, %v3591_v39  ;;  %v3846_v39 = vld [vmem:[#allocation21 + $0x48] sm:$0xff] }
0x1d21   :  { %5706 = vrsqrt.f32 %v3593_v40  ;;  %v3850_v40 = vld [vmem:[#allocation21 + $0x68] sm:$0xff] }
0x1d2a   :  { %v5705_v41 = vpop.eup %5704 }
0x1d2b   :  { %v3596_v43 = vmul.f32 %v5705_v41, %v3580_v24  ;;  %v3847_v24 = vld [vmem:[#allocation21 + $0x50] sm:$0xff]  ;;  %v4983_v41 = vcombine.high %v3846_v39, %v3850_v40 }
0x1d2c   :  { %v4984_v32 = vcombine.low %v3847_v24, %v3851_v28  ;;  %v4985_v33 = vcombine.high %v3847_v24, %v3851_v28  ;;  %v5570_v24 = vld [vmem:[%s6932_s17 + $0x70] sm:$0xff]  }
0x1d2d   :  { %v3604_v49 = vmul.f32 %v4950_v45, %v3596_v43  ;;  %v4982_v43 = vcombine.low %v3846_v39, %v3850_v40  ;;  %v5571_v28 = vld [vmem:[%s6932_s17 + $0x30] sm:$0xff]   ;;  %v5580_v39 = vld [vmem:[%s6932_s17 + $0x58] sm:$0xff]  }
0x1d2e   :  { %v5707_v47 = vpop.eup %5706  ;;  %4081 = vmatprep.subr.bf16.mxu0 %v4985_v33  ;;  %v4986_v33 = vcombine.low %v3848_v22, %v3852_v23  ;;  %v5577_v40 = vld [vmem:[%s6932_s17 + $0xf0] sm:$0xff]  }
0x1d2f   :  { %v3597_v48 = vmul.f32 %v5707_v47, %v3581_v29  ;;  %v3612_v42 = vadd.f32 %v4951_v31, %v3604_v49  ;;  %v3837_v29 = vld [vmem:[#allocation21] sm:$0xff] }
0x1d30   :  { %v4973_v18 = vcombine.high %v3837_v29, %v3841_v27  ;;  %v4972_v21 = vcombine.low %v3837_v29, %v3841_v27  ;;  %v3840_v29 = vld [vmem:[#allocation21 + $0x18] sm:$0xff] }
0x1d31   :  { %v3605_v34 = vmul.f32 %v4950_v45, %v3597_v48  ;;  %v5568_v45 = vld [vmem:[%s6932_s17 + $0x78] sm:$0xff]   ;;  %v3844_v27 = vld [vmem:[#allocation21 + $0x38] sm:$0xff] }
0x1d33   :  { %v3613_v44 = vadd.f32 %v4951_v31, %v3605_v34 }
0x1d35   :  { %v3619_v46 = vpack.c.bf16 %v3613_v44, %v3612_v42 }
0x1d37   :  { %5465 = vmatmul.mubr.msk.bf16.vlgmr.msra.gmra.mxu1 %vm279_vm1, %v3619_v46  ;;  %v4970_v46 = vld [vmem:[#allocation18 + $0x1] ss:$0 sm:$0xff] }
0x1d38   :  { %4019 = vmatprep.mubr.bf16.mxu1 %v6067_v30  ;;  %4000 = vmatpush1.bf16.msra.mxu1 %v4980_v25 }
0x1d39   :  { %4001 = vmatprep.subr.bf16.mxu1 %v4973_v18  ;;  %v4979_v18 = vcombine.high %v3840_v29, %v3844_v27 }
0x1d3c   :  { %4002 = vmatpush1.bf16.msra.mxu1 %v4972_v21  ;;  %v5573_v21 = vld [vmem:[%s6932_s17 + $0xf8] sm:$0xff]  }
0x1d3d   :  { %4040 = vmatprep.subr.bf16.mxu1 %v4983_v41  ;;  %v5582_v41 = vld [vmem:[%s6932_s17 + $0x18] sm:$0xff]  }
0x1df7   :  { %v3677_v54 = vpop.f32.mrf.mxu1 }
0x1df8   :  { %v3678_v58 = vadd.f32 %v4952_v53, %v3677_v54 }
0x1df9   :  { %v5466_v56 = vpop.f32.mrf.mxu1 }
0x1dfa   :  { %v3684_v57 = vmax.f32 %v3678_v58, 0.0 }
0x1dfb   :  { %v3680_v59 = vpop.f32.mrf.mxu1 }
0x1dfc   :  { %v3681_v60 = vadd.f32 %v4952_v53, %v3680_v59 }
0x1dfd   :  { %v5467_v61 = vpop.f32.mrf.mxu1 }
0x1dfe   :  { %v3685_v62 = vmax.f32 %v3681_v60, 0.0 }
0x1e00   :  { %v3695_v63 = vpack.c.bf16 %v3685_v62, %v3684_v57 }
0x1e02   :  { %5477 = vmatmul.mubr.msk.bf16.vlgmr.msra.gmra.mxu0 %vm1979_vm5, %v3695_v63 }
0x1e03   :  { %4101 = vmatprep.mubr.bf16.mxu0 %v6067_v30  ;;  %4082 = vmatpush1.bf16.msra.mxu0 %v4984_v32  ;;  %v5572_v32 = vld [vmem:[%s6932_s17 + $0x68] sm:$0xff]  }
0x1e04   :  { %4083 = vmatprep.subr.bf16.mxu0 %v4977_v37  ;;  %v4978_v37 = vcombine.low %v3840_v29, %v3844_v27 }
0x1e07   :  { %4084 = vmatpush1.bf16.msra.mxu0 %v4976_v38  ;;  %v5578_v38 = vld [vmem:[%s6932_s17 + $0x20] sm:$0xff]  }
0x1e08   :  { %5152 = vmatprep.subr.bf16.mxu0 %v5568_v45  ;;  %v5579_v45 = vld [vmem:[%s6932_s17 + $0xb0] sm:$0xff]  }
0x1ec2   :  { %v3765_v1 = vpop.f32.mrf.mxu0 }
0x1ec3   :  { %v3766_v0 = vadd.f32 %v4964_v55, %v3765_v1 }
0x1ec4   :  { %v5478_v2 = vpop.f32.mrf.mxu0 }
0x1ec5   :  { %v3772_v3 = vadd.f32 %v3766_v0, %v3612_v42 }
0x1ec6   :  { %v3768_v5 = vpop.f32.mrf.mxu0 }
0x1ec7   :  { %v3769_v7 = vadd.f32 %v4964_v55, %v3768_v5  ;;  %v3778_v8 = vsel %vm279_vm1, %v3772_v3, 0.0 }
0x1ec8   :  { %3779 = vadd.xlane.f32.xlu1 %v3778_v8  ;;  %v5479_v9 = vpop.f32.mrf.mxu0 }
0x1ec9   :  { %v3773_v10 = vadd.f32 %v3769_v7, %v3613_v44 }
0x1ecb   :  { %v3781_v4 = vsel %vm279_vm1, %v3773_v10, 0.0 }
0x1ecc   :  { %3782 = vadd.xlane.f32.xlu0 %v3781_v4 }
0x1f51   :  { %v3780_v6 = vpop.xlane.xlu1 %3779 }
0x1f52   :  { %v3784_v11 = vmul.f32 0.03125, %v3780_v6 }
0x1f54   :  { %v3786_v14 = vsub.f32 %v3772_v3, %v3784_v11 }
0x1f55   :  { %v3783_v15 = vpop.xlane.xlu0 %3782 }
0x1f56   :  { %v3785_v16 = vmul.f32 0.03125, %v3783_v15  ;;  %v3788_v12 = vmul.f32 %v3786_v14, %v3786_v14 }
0x1f58   :  { %v3787_v17 = vsub.f32 %v3773_v10, %v3785_v16  ;;  %v3790_v19 = vsel %vm279_vm1, %v3788_v12, 0.0  ;;  %v3838_v16 = vld [vmem:[#allocation21 + $0x8] sm:$0xff] }
0x1f59   :  { %3791 = vadd.xlane.f32.xlu1 %v3790_v19  ;;  %v3842_v12 = vld [vmem:[#allocation21 + $0x28] sm:$0xff] }
0x1f5a   :  { %v3789_v20 = vmul.f32 %v3787_v17, %v3787_v17  ;;  %v4974_v25 = vcombine.low %v3838_v16, %v3842_v12 }
0x1f5c   :  { %v3793_v13 = vsel %vm279_vm1, %v3789_v20, 0.0  ;;  %v4975_v20 = vcombine.high %v3838_v16, %v3842_v12 }
0x1f5d   :  { %3794 = vadd.xlane.f32.xlu0 %v3793_v13  ;;  %v5569_v13 = vld [vmem:[%s6932_s17 + $0x38] sm:$0xff]  }
0x1fe2   :  { %v3792_v47 = vpop.xlane.xlu1 %3791 }
0x1fe3   :  { %v3796_v48 = vmul.f32 0.03125, %v3792_v47  ;;  %v5581_v47 = vld [vmem:[%s6932_s17 + $0xe8] sm:$0xff]  }
0x1fe5   :  { %v3798_v49 = vadd.f32 1e-05, %v3796_v48  ;;  %v5586_v48 = vld [vmem:[%s6932_s17 + $0x10] sm:$0xff]  }
0x1fe6   :  { %v3795_v31 = vpop.xlane.xlu0 %3794 }
0x1fe7   :  { %5708 = vrsqrt.f32 %v3798_v49  ;;  %v3797_v34 = vmul.f32 0.03125, %v3795_v31  ;;  %v5583_v49 = vld [vmem:[%s6932_s17 + $0xa8] sm:$0xff]   ;;  %v5585_v31 = vld [vmem:[%s6932_s17 + $0xe0] sm:$0xff]  }
0x1fe9   :  { %v3799_v42 = vadd.f32 1e-05, %v3797_v34  ;;  %v5587_v34 = vld [vmem:[%s6932_s17 + $0xa0] sm:$0xff]  }
0x1feb   :  { %5710 = vrsqrt.f32 %v3799_v42  ;;  %v5588_v42 = vld [vmem:[%s6932_s17 + $0x48] sm:$0xff]  }
0x1ff4   :  { %v5709_v44 = vpop.eup %5708 }
0x1ff5   :  { %v3802_v50 = vmul.f32 %v5709_v44, %v3786_v14  ;;  %v5589_v44 = vld [vmem:[%s6932_s17 + $0xd8] sm:$0xff]  }
0x1ff7   :  { %v3810_v52 = vmul.f32 %v4970_v46, %v3802_v50  ;;  %v5591_v50 = vld [vmem:[%s6932_s17 + $0x98] sm:$0xff]  }
0x1ff8   :  { %v5711_v53 = vpop.eup %5710 }
0x1ff9   :  { %v3818_v54 = vadd.f32 %v4971_v51, %v3810_v52  ;;  %v3803_v56 = vmul.f32 %v5711_v53, %v3787_v17  ;;  %v5593_v52 = vld [vmem:[%s6932_s17 + $0xd0] sm:$0xff]   ;;  %v5594_v53 = vld [vmem:[%s6932_s17] sm:$0xff]  }
0x1ffb   :  { %v3820_v58 = vsel %vm279_vm1, %v3818_v54, 0.0  ;;  %v3811_v59 = vmul.f32 %v4970_v46, %v3803_v56  ;;  %v5590_v46 = vld [vmem:[%s6932_s17 + $0x8] sm:$0xff]   ;;  %v5595_v54 = vld [vmem:[%s6932_s17 + $0x90] sm:$0xff]  }
0x1ffc   :  { %v3821_v60 = vrot.slane %v3820_v58, 4  ;;  %v5596_v56 = vld [vmem:[%s6932_s17 + $0xc8] sm:$0xff]  }
0x1ffd   :  { %v3819_v61 = vadd.f32 %v4971_v51, %v3811_v59  ;;  %v5592_v51 = vld [vmem:[%s6932_s17 + $0x40] sm:$0xff]   ;;  %v5598_v59 = vld [vmem:[%s6932_s17 + $0x88] sm:$0xff]  }
0x1ffe   :  { %v3822_v57 = vadd.f32 %v3821_v60, %v3820_v58  ;;  %v5597_v58 = vld [vmem:[%s6932_s17 + $0x178] sm:$0xff]   ;;  %v5600_v60 = vld [vmem:[%s6932_s17 + $0xc0] sm:$0xff]  }
0x1fff   :  { %v3827_v62 = vsel %vm279_vm1, %v3819_v61, 0.0  ;;  %v5602_v61 = vld [vmem:[%s6932_s17 + $0x80] sm:$0xff]  }
0x2000   :  { %v3828_v63 = vrot.slane %v3827_v62, 4  ;;  %v3823_v55 = vrot.slane %v3822_v57, 2 }
0x2002   :  { %v3829_v1 = vadd.f32 %v3828_v63, %v3827_v62  ;;  %v3824_v0 = vadd.f32 %v3823_v55, %v3822_v57  ;;  %v5605_v57 = vld [vmem:[%s6932_s17 + $0x1f8] sm:$0xff]   ;;  %v3857_v62 = vlaneseq }
0x2004   :  { %v3825_v2 = vrot.slane %v3824_v0, 1  ;;  %v3830_v3 = vrot.slane %v3829_v1, 2  ;;  %v6799_v63 = vshrl.u32 %v3857_v62, 7  ;;  %v5616_v62 = vld [vmem:[%s6932_s17 + $0x150] sm:$0xff]  }
0x2006   :  { %v3826_v5 = vadd.f32 %v3825_v2, %v3824_v0  ;;  %v3831_v7 = vadd.f32 %v3830_v3, %v3829_v1  ;;  %v3859_v55 = vsub.s32 0, %v6799_v63  ;;  %v6802_v1 = vld [vmem:[#allocation22] sm:$0xff]  ;;  %v3863_v0 = vsub.s32 1, %v6799_v63 }
0x2007   :  { %v3879_v2 = vsub.s32 5, %v6799_v63  ;;  %v3871_v16 = vsub.s32 3, %v6799_v63 }
0x2008   :  { %v3832_v8 = vrot.slane %v3831_v7, 1  ;;  %v3835_v9 = vmul.f32 0.125, %v3826_v5  ;;  %v3860_v3 = vrot.slane %v6802_v1, %v3859_v55  ;;  %v3864_v5 = vrot.slane %v6802_v1, %v3863_v0  ;;  %v5617_v55 = vld [vmem:[%s6932_s17 + $0x1e0] sm:$0xff]   ;;  %v5618_v0 = vld [vmem:[%s6932_s17 + $0x110] sm:$0xff]  }
0x200a   :  { %v3833_v10 = vadd.f32 %v3832_v8, %v3831_v7  ;;  %v3853_v6 = vpack.c.bf16 %v3835_v9, %v3835_v9  ;;  %v3880_v7 = vrot.slane %v6802_v1, %v3879_v2  ;;  %v5619_v2 = vld [vmem:[%s6932_s17 + $0x1a0] sm:$0xff]  }
0x200c   :  { %v3836_v4 = vmul.f32 0.125, %v3833_v10  ;;  %v3899_v14 = vunpack.c.l.b16 %v3853_v6 }
0x200e   :  { %v3854_v11 = vpack.c.bf16 %v3836_v4, %v3836_v4  ;;  %v3867_v4 = vsub.s32 2, %v6799_v63 }
0x2010   :  { %v3900_v15 = vunpack.c.l.b16 %v3854_v11  ;;  %v3868_v22 = vrot.slane %v6802_v1, %v3867_v4 }
0x2012   :  { %v3902_v17 = vsel %vm3901_vm6, %v3900_v15, %v3899_v14 }
0x2013   :  { %v3903_v19 = vpack.c.b16 %v3902_v17, %v3902_v17 }
0x2015   :  { %4988 = vmatmul.mubr.msk.bf16.vlgmr.msra.gmra.mxu1 %vm279_vm1, %v3903_v19  ;;  %4990 = vmatmul.mubr.msk.bf16.vlgmr.msra.gmra.mxu0 %vm279_vm1, %v3903_v19 }
0x2016   :  { %4041 = vmatpush1.bf16.msra.mxu1 %v4982_v43  ;;  %4060 = vmatprep.mubr.bf16.mxu1 %v6067_v30  ;;  %v5584_v43 = vld [vmem:[%s6932_s17 + $0x50] sm:$0xff]  }
0x2017   :  { %4042 = vmatprep.subr.bf16.mxu1 %v4975_v20  ;;  %5153 = vmatpush3.bf16.msra.mxu0 %v5569_v13 }
0x2018   :  { %5154 = vmatprep.subr.bf16.mxu0 %v5570_v24 }
0x201a   :  { %4043 = vmatpush1.bf16.msra.mxu1 %v4974_v25 }
0x201b   :  { %4122 = vmatprep.subr.bf16.mxu1 %v4987_v26  ;;  %5155 = vmatpush3.bf16.msra.mxu0 %v5571_v28  ;;  %v3872_v26 = vrot.slane %v6802_v1, %v3871_v16  ;;  %v5599_v28 = vld [vmem:[%s6932_s17 + $0x138] sm:$0xff]  }
0x201c   :  { %5156 = vmatprep.subr.bf16.mxu0 %v5572_v32  ;;  %v5601_v32 = vld [vmem:[%s6932_s17 + $0x170] sm:$0xff]  }
0x201d   :  { %4989 = vmatmul.mubr.msk.bf16.vlgmr.msra.gmra.mxu1 %vm279_vm1, %v3903_v19 }
0x201e   :  { %4123 = vmatpush1.bf16.msra.mxu1 %v4986_v33  ;;  %4142 = vmatprep.mubr.bf16.mxu1 %v6067_v30  ;;  %v5575_v30 = vld [vmem:[%s6932_s17 + $0xb8] sm:$0xff]  }
0x201f   :  { %4124 = vmatprep.subr.bf16.mxu1 %v4979_v18  ;;  %5157 = vmatpush3.bf16.msra.mxu0 %v5574_v35 }
0x2020   :  { %5158 = vmatprep.subr.bf16.mxu0 %v5576_v36 }
0x2022   :  { %4125 = vmatpush1.bf16.msra.mxu1 %v4978_v37  ;;  %v5603_v37 = vld [vmem:[%s6932_s17 + $0x130] sm:$0xff]  }
0x2023   :  { %5174 = vmatprep.subr.bf16.mxu1 %v5573_v21  ;;  %5159 = vmatpush3.bf16.msra.mxu0 %v5578_v38  ;;  %v3887_v21 = vsub.s32 7, %v6799_v63 }
0x2024   :  { %5160 = vmatprep.subr.bf16.mxu0 %v5580_v39 }
0x2025   :  { %4991 = vmatmul.mubr.msk.bf16.vlgmr.msra.gmra.mxu1 %vm279_vm1, %v3903_v19 }
0x2026   :  { %5175 = vmatpush3.bf16.msra.mxu1 %v5575_v30  ;;  %v5604_v30 = vld [vmem:[%s6932_s17 + $0x168] sm:$0xff]  }
0x2027   :  { %5176 = vmatprep.subr.bf16.mxu1 %v5577_v40  ;;  %5161 = vmatpush3.bf16.msra.mxu0 %v5582_v41 }
0x2028   :  { %5162 = vmatprep.subr.bf16.mxu0 %v5584_v43 }
0x202a   :  { %5177 = vmatpush3.bf16.msra.mxu1 %v5579_v45  ;;  %v3888_v45 = vrot.slane %v6802_v1, %v3887_v21 }
0x202b   :  { %5178 = vmatprep.subr.bf16.mxu1 %v5581_v47  ;;  %5163 = vmatpush3.bf16.msra.mxu0 %v5586_v48  ;;  %v5606_v47 = vld [vmem:[%s6932_s17 + $0x128] sm:$0xff]   ;;  %v5607_v48 = vld [vmem:[%s6932_s17 + $0x1b8] sm:$0xff]  }
0x202c   :  { %5164 = vmatprep.subr.bf16.mxu0 %v5588_v42  ;;  %v5609_v42 = vld [vmem:[%s6932_s17 + $0x1f0] sm:$0xff]  }
0x202e   :  { %5179 = vmatpush3.bf16.msra.mxu1 %v5583_v49 }
0x202f   :  { %5180 = vmatprep.subr.bf16.mxu1 %v5585_v31  ;;  %5165 = vmatpush3.bf16.msra.mxu0 %v5590_v46 }
0x2030   :  { %5166 = vmatprep.subr.bf16.mxu0 %v5592_v51  ;;  %v5611_v51 = vld [vmem:[%s6932_s17 + $0x1b0] sm:$0xff]  }
0x2032   :  { %5181 = vmatpush3.bf16.msra.mxu1 %v5587_v34  ;;  %v5608_v34 = vld [vmem:[%s6932_s17 + $0x160] sm:$0xff]  }
0x2033   :  { %5182 = vmatprep.subr.bf16.mxu1 %v5589_v44  ;;  %5167 = vmatpush3.bf16.msra.mxu0 %v5594_v53  ;;  %v5612_v53 = vld [vmem:[%s6932_s17 + $0x158] sm:$0xff]  }
0x2034   :  { %5196 = vmatprep.subr.bf16.mxu0 %v5597_v58 }
0x2036   :  { %5183 = vmatpush3.bf16.msra.mxu1 %v5591_v50  ;;  %v5610_v50 = vld [vmem:[%s6932_s17 + $0x120] sm:$0xff]  }
0x2037   :  { %5184 = vmatprep.subr.bf16.mxu1 %v5593_v52 }
0x203a   :  { %5185 = vmatpush3.bf16.msra.mxu1 %v5595_v54  ;;  %v5613_v54 = vld [vmem:[%s6932_s17 + $0x1e8] sm:$0xff]  }
0x203b   :  { %5186 = vmatprep.subr.bf16.mxu1 %v5596_v56 }
0x203e   :  { %5187 = vmatpush3.bf16.msra.mxu1 %v5598_v59 }
0x203f   :  { %5188 = vmatprep.subr.bf16.mxu1 %v5600_v60  ;;  %v5614_v60 = vld [vmem:[%s6932_s17 + $0x118] sm:$0xff]  }
0x2042   :  { %5189 = vmatpush3.bf16.msra.mxu1 %v5602_v61  ;;  %v5615_v61 = vld [vmem:[%s6932_s17 + $0x1a8] sm:$0xff]  }
0x2043   :  { %5218 = vmatprep.subr.bf16.mxu1 %v5605_v57  ;;  %v3875_v57 = vsub.s32 4, %v6799_v63 }
0x20d5   :  { %v4021_v8 = vpop.f32.mrf.mxu1  ;;  %v6809_v9 = vpop.f32.mrf.mxu0 }
0x20d6   :  { %v4022_v10 = vadd.f32 %v4021_v8, %v3860_v3  ;;  %v3876_v3 = vrot.slane %v6802_v1, %v3875_v57  ;;  %v5622_v8 = vld [vmem:[%s6932_s17 + $0x108] sm:$0xff]  }
0x20d7   :  { %v4023_v6 = vpop.f32.mrf.mxu1  ;;  %v4105_v11 = vpop.f32.mrf.mxu0 }
0x20d8   :  { %v4024_v14 = vadd.f32 %v4023_v6, %v3864_v5  ;;  %v4106_v15 = vadd.f32 %v4105_v11, %v3880_v7  ;;  %v4151_v12 = vmax.f32 %v4022_v10, 0.0  ;;  %v5620_v5 = vld [vmem:[%s6932_s17 + $0x148] sm:$0xff]   ;;  %v5621_v7 = vld [vmem:[%s6932_s17 + $0x1d8] sm:$0xff]   ;;  %v4104_v4 = vadd.f32 %v6809_v9, %v3876_v3  ;;  %v5624_v11 = vld [vmem:[%s6932_s17 + $0x140] sm:$0xff]  }
0x20d9   :  { %v4025_v17 = vpop.f32.mrf.mxu1  ;;  %v4107_v19 = vpop.f32.mrf.mxu0  ;;  %v5623_v10 = vld [vmem:[%s6932_s17 + $0x198] sm:$0xff]   ;;  %v3883_v6 = vsub.s32 6, %v6799_v63  ;;  %v5627_v63 = vld [vmem:[%s6932_s17 + $0x190] sm:$0xff]  }
0x20da   :  { %v4152_v20 = vmax.f32 %v4024_v14, 0.0  ;;  %v4156_v13 = vmax.f32 %v4106_v15, 0.0  ;;  %v4287_v29 = vpack.c.bf16 %v4151_v12, %v4151_v12  ;;  %v5625_v14 = vld [vmem:[%s6932_s17 + $0x1d0] sm:$0xff]   ;;  %v5626_v15 = vld [vmem:[%s6932_s17 + $0x100] sm:$0xff]   ;;  %v4155_v9 = vmax.f32 %v4104_v4, 0.0  ;;  %v5628_v12 = vld [vmem:[%s6932_s17 + $0x1c8] sm:$0xff]  }
0x20db   :  { %v4026_v23 = vpop.f32.mrf.mxu1  ;;  %v4108_v24 = vpop.f32.mrf.mxu0  ;;  %v3884_v16 = vrot.slane %v6802_v1, %v3883_v6  ;;  %v5629_v17 = vld [vmem:[%s6932_s17 + $0x188] sm:$0xff]   ;;  %v5631_v1 = vld [vmem:[%s6932_s17 + $0x180] sm:$0xff]  }
0x20dc   :  { %v4288_v25 = vpack.c.bf16 %v4152_v20, %v4152_v20  ;;  %v4292_v33 = vpack.c.bf16 %v4156_v13, %v4156_v13  ;;  %v4291_v19 = vpack.c.bf16 %v4155_v9, %v4155_v9  ;;  %v5630_v13 = vld [vmem:[%s6932_s17 + $0x1c0] sm:$0xff]  }
0x20dd   :  { %v4062_v27 = vpop.f32.mrf.mxu1 }
0x20de   :  { %v4063_v18 = vadd.f32 %v4062_v27, %v3868_v22  ;;  %4718 = vmatprep.mubr.bf16.mxu0 %v4288_v25 }
0x20df   :  { %v4064_v35 = vpop.f32.mrf.mxu1  ;;  %4719 = vmatmul.mubr.bf16.vlgmr.msra.gmra.mxu0 %v4287_v29 }
0x20e0   :  { %v4065_v36 = vadd.f32 %v4064_v35, %v3872_v26  ;;  %5197 = vmatpush3.bf16.msra.mxu0 %v5599_v28  ;;  %4798 = vmatprep.mubr.bf16.mxu0 %v4292_v33  ;;  %v4153_v38 = vmax.f32 %v4063_v18, 0.0 }
0x20e1   :  { %v4066_v39 = vpop.f32.mrf.mxu1  ;;  %5198 = vmatprep.subr.bf16.mxu0 %v5601_v32 }
0x20e2   :  { %v4154_v40 = vmax.f32 %v4065_v36, 0.0  ;;  %v4289_v49 = vpack.c.bf16 %v4153_v38, %v4153_v38 }
0x20e3   :  { %v4067_v41 = vpop.f32.mrf.mxu1 }
0x20e4   :  { %v4290_v43 = vpack.c.bf16 %v4154_v40, %v4154_v40  ;;  %5199 = vmatpush3.bf16.msra.mxu0 %v5603_v37  ;;  %v4992_v37 = vld [vmem:[#allocation24] ss:$0 sm:$0xff] }
0x20e5   :  { %v4144_v31 = vpop.f32.mrf.mxu1  ;;  %5200 = vmatprep.subr.bf16.mxu0 %v5604_v30 }
0x20e6   :  { %4758 = vmatprep.mubr.bf16.mxu1 %v4290_v43  ;;  %v4145_v20 = vadd.f32 %v4144_v31, %v3884_v16 }
0x20e7   :  { %v4146_v44 = vpop.f32.mrf.mxu1  ;;  %4759 = vmatmul.mubr.bf16.vlgmr.msra.gmra.mxu1 %v4289_v49 }
0x20e8   :  { %v4147_v46 = vadd.f32 %v4146_v44, %v3888_v45  ;;  %5201 = vmatpush3.bf16.msra.mxu0 %v5606_v47  ;;  %5219 = vmatpush3.bf16.msra.mxu1 %v5607_v48  ;;  %v4157_v22 = vmax.f32 %v4145_v20, 0.0 }
0x20e9   :  { %v4148_v52 = vpop.f32.mrf.mxu1  ;;  %5202 = vmatprep.subr.bf16.mxu0 %v5608_v34  ;;  %5220 = vmatprep.subr.bf16.mxu1 %v5609_v42 }
0x20ea   :  { %v4158_v56 = vmax.f32 %v4147_v46, 0.0  ;;  %v4293_v23 = vpack.c.bf16 %v4157_v22, %v4157_v22 }
0x20eb   :  { %v4149_v58 = vpop.f32.mrf.mxu1 }
0x20ec   :  { %v4294_v59 = vpack.c.bf16 %v4158_v56, %v4158_v56  ;;  %5203 = vmatpush3.bf16.msra.mxu0 %v5610_v50  ;;  %5221 = vmatpush3.bf16.msra.mxu1 %v5611_v51 }
0x20ed   :  { %5204 = vmatprep.subr.bf16.mxu0 %v5612_v53  ;;  %5222 = vmatprep.subr.bf16.mxu1 %v5613_v54 }
0x20ee   :  { %4838 = vmatprep.mubr.bf16.mxu1 %v4294_v59 }
0x20f0   :  { %5205 = vmatpush3.bf16.msra.mxu0 %v5614_v60  ;;  %5223 = vmatpush3.bf16.msra.mxu1 %v5615_v61 }
0x20f1   :  { %5206 = vmatprep.subr.bf16.mxu0 %v5616_v62  ;;  %5224 = vmatprep.subr.bf16.mxu1 %v5617_v55 }
0x20f4   :  { %5207 = vmatpush3.bf16.msra.mxu0 %v5618_v0  ;;  %5225 = vmatpush3.bf16.msra.mxu1 %v5619_v2 }
0x20f5   :  { %5208 = vmatprep.subr.bf16.mxu0 %v5620_v5  ;;  %5226 = vmatprep.subr.bf16.mxu1 %v5621_v7 }
0x20f8   :  { %5209 = vmatpush3.bf16.msra.mxu0 %v5622_v8  ;;  %5227 = vmatpush3.bf16.msra.mxu1 %v5623_v10 }
0x20f9   :  { %5210 = vmatprep.subr.bf16.mxu0 %v5624_v11  ;;  %5228 = vmatprep.subr.bf16.mxu1 %v5625_v14 }
0x20fc   :  { %5211 = vmatpush3.bf16.msra.mxu0 %v5626_v15  ;;  %5229 = vmatpush3.bf16.msra.mxu1 %v5627_v63 }
0x20fd   :  { %5230 = vmatprep.subr.bf16.mxu1 %v5628_v12 }
0x20ff   :  { %4799 = vmatmul.mubr.bf16.vlgmr.msra.gmra.mxu0 %v4291_v19 }
0x2100   :  { %5231 = vmatpush3.bf16.msra.mxu1 %v5629_v17 }
0x2101   :  { %5232 = vmatprep.subr.bf16.mxu1 %v5630_v13 }
0x2104   :  { %5233 = vmatpush3.bf16.msra.mxu1 %v5631_v1 }
0x2107   :  { %4839 = vmatmul.mubr.bf16.vlgmr.msra.gmra.mxu1 %v4293_v23 }
0x219f   :  { %v5168_v24 = vpop.f32.mrf.mxu0 }
0x21a1   :  { %v5169_v25 = vpop.f32.mrf.mxu0 }
0x21a2   :  { %v5170_v36 = vadd.f32 %v5169_v25, %v5168_v24 }
0x21a3   :  { %v5171_v26 = vpop.f32.mrf.mxu0 }
0x21a4   :  { %v4721_v30 = vadd.f32 %v5170_v36, %v4992_v37 }
0x21a5   :  { %v5172_v28 = vpop.f32.mrf.mxu0 }
0x21a7   :  { %v5190_v29 = vpop.f32.mrf.mxu1 }
0x21a9   :  { %v5191_v27 = vpop.f32.mrf.mxu1 }
0x21aa   :  { %v5192_v38 = vadd.f32 %v5191_v27, %v5190_v29 }
0x21ab   :  { %v5193_v32 = vpop.f32.mrf.mxu1 }
0x21ac   :  { %v4761_v43 = vadd.f32 %v5192_v38, %v4721_v30 }
0x21ad   :  { %v5194_v33 = vpop.f32.mrf.mxu1 }
0x21bf   :  { %v5212_v18 = vpop.f32.mrf.mxu0 }
0x21c1   :  { %v5213_v35 = vpop.f32.mrf.mxu0 }
0x21c2   :  { %v5214_v40 = vadd.f32 %v5213_v35, %v5212_v18 }
0x21c3   :  { %v5215_v21 = vpop.f32.mrf.mxu0 }
0x21c4   :  { %v4801_v47 = vadd.f32 %v5214_v40, %v4761_v43 }
0x21c5   :  { %v5216_v39 = vpop.f32.mrf.mxu0 }
0x21c7   :  { %v5234_v41 = vpop.f32.mrf.mxu1 }
0x21c9   :  { %v5235_v45 = vpop.f32.mrf.mxu1 }
0x21ca   :  { %v5236_v48 = vadd.f32 %v5235_v45, %v5234_v41 }
0x21cb   :  { %v5237_v49 = vpop.f32.mrf.mxu1 }
0x21cc   :  { %v4841_v31 = vadd.f32 %v5236_v48, %v4801_v47 }
0x21cd   :  { %v5238_v34 = vpop.f32.mrf.mxu1 }
0x21ce   :  { %v4846_v42 = vand.u32 2147483647, %v4841_v31  ;;  %vm4851_vm7 = vcmp.ge.f32.partialorder %v4841_v31, 0.0 }
0x21d0   :  { %v4847_v44 = vsub.f32 0.0, %v4846_v42 }
0x21d2   :  { %v4848_v46 = vmul.f32 1.442695, %v4847_v44 }
0x21d4   :  { %5712 = vpow2.f32 %v4848_v46 }
0x21e1   :  { %v5713_v50 = vpop.eup %5712 }
0x21e2   :  { %v4850_v51 = vadd.f32 1.0, %v5713_v50 }
0x21e4   :  { %5714 = vrcp.f32 %v4850_v51 }
0x21f1   :  { %v5715_v52 = vpop.eup %5714 }
0x21f2   :  { %v4854_v53 = vmul.f32 %v5715_v52, %v5713_v50 }
0x21f4   :  { %v4855_v54 = vsel %vm4851_vm7, %v5715_v52, %v4854_v53 }
0x21f5   :  { %4856 = vst [vmem:[%s6934_s19] sm:$0x3] %v4855_v54 }
0x21f6   :  { %4861 = vsyncpa [#allocation3], 1 }
0x21f7   :  { %4862 = vsyncpa [#allocation5], 1 }
0x21f8   :  { %4863 = vsyncpa [#allocation8], 1 }
0x21f9   :  { %4864 = vsyncpa [#allocation11], 1 }
0x21fa   :  { %4865 = vsyncpa [#allocation14], 1 }
0x21fb   :  { %4866 = vsyncpa [#allocation17], 1 }
0x21fc   :  { %4867 = vsyncpa [#allocation20], 1 }
0x21fd   :  { %4868 = vsyncpa [#allocation23], 1 }

</bundles_post_ra>
